<compile_context>
chip_gen: v6e
topology: v6e:2x2x1
jax: 0.10.0
libtpu: 0.0.40
codegen_flags: <defaults>
</compile_context>

<pallas_src>
import numpy as np
import jax
import jax.numpy as jnp
from jax.experimental import pallas as pl
from jax.experimental.pallas import tpu as pltpu

LN_EPS = 1e-5       # torch.nn.LayerNorm default eps
NEG_BIG = 1e30


def _gelu_tanh(x):
    # tanh-approximation GELU; tanh runs on the EUP (its own VLIW slot).
    return 0.5 * x * (1.0 + jnp.tanh(0.7978845608028654 * (x + 0.044715 * x * x * x)))


def _layernorm(x, gamma, beta):
    mu = jnp.mean(x, axis=-1, keepdims=True)
    var = jnp.mean((x - mu) ** 2, axis=-1, keepdims=True)
    return (x - mu) * jax.lax.rsqrt(var + LN_EPS) * gamma + beta


def _pillar_attention_kernel(x_ref, m_ref,
                             wqkv_ref, bqkv_ref, wo_ref, bo_ref,
                             g1_ref, be1_ref, g2_ref, be2_ref,
                             w1_ref, b1_ref, w2_ref, b2_ref,
                             out_ref):
    bf16 = jnp.bfloat16
    C = wo_ref.shape[0]

    # Channel-major input slab (C, S) -> token-major (S, C): one XLU transpose.
    x = x_ref[0].T                                    # (S, C) f32

    m = m_ref[0]                                      # (1, S): 1 = valid pillar
    key_bias = (m - 1.0) * NEG_BIG                    # (1, S): 0 / -1e30 additive key mask

    # norm1 over every token (invalid tokens produce garbage that is masked out
    # of the softmax keys and zeroed at the output — per-token ops make this
    # exactly equivalent to the PyTorch gather/scatter of valid pillars).
    xn = _layernorm(x, g1_ref[...], be1_ref[...])     # (S, C) f32

    # Fused Q|K|V projection (C, 3C); 1/sqrt(C) is folded into the Q block.
    qkv = jnp.dot(xn.astype(bf16), wqkv_ref[...],
                  preferred_element_type=jnp.float32) + bqkv_ref[...]
    q = qkv[:, :C].astype(bf16)
    k = qkv[:, C:2 * C].astype(bf16)
    v = qkv[:, 2 * C:].astype(bf16)

    # Attention: additive key mask, stable softmax, deferred normalization.
    logits = jax.lax.dot_general(q, k, (((1,), (1,)), ((), ())),
                                 preferred_element_type=jnp.float32)  # (S, S)
    logits = logits + key_bias
    logits = logits - jnp.max(logits, axis=-1, keepdims=True)
    p = jnp.exp(logits)                               # f32, values in [0, 1]
    rowsum = jnp.sum(p, axis=-1, keepdims=True)       # (S, 1) f32, >= 1

    att = jnp.dot(p.astype(bf16), v, preferred_element_type=jnp.float32)
    att = att * pl.reciprocal(rowsum, approx=True)    # normalize the small (S, C) tensor
    att = jnp.dot(att.astype(bf16), wo_ref[...],
                  preferred_element_type=jnp.float32) + bo_ref[...]

    # Residual adds the *normalized* features (as in the PyTorch module),
    # then norm2 and FFN residual.
    y = xn + att
    y2 = _layernorm(y, g2_ref[...], be2_ref[...])
    h = jnp.dot(y2.astype(bf16), w1_ref[...],
                preferred_element_type=jnp.float32) + b1_ref[...]
    h = _gelu_tanh(h)
    ffn = jnp.dot(h.astype(bf16), w2_ref[...],
                  preferred_element_type=jnp.float32) + b2_ref[...]
    y3 = y2 + ffn                                     # (S, C)

    # Channel-major, lane-dense store; invalid pillar columns zeroed (matches
    # the PyTorch scatter into a zero buffer).
    out_ref[0] = (y3.T * m).astype(out_ref.dtype)


def pillar_attention(x, mask, params):
    """Pallas TPU forward pass equivalent to PillarAttention.forward."""
    B, C, H, W = x.shape
    S = H * W
    Hd = params["w1"].shape[1]
    scale = float(C) ** (-0.5)
    f32, bf16 = jnp.float32, jnp.bfloat16

    x_cs = x.reshape(B, C, S).astype(f32)             # free view of NCHW
    m = mask.reshape(B, 1, S).astype(f32)             # 1 = valid pillar

    # Fused Q|K|V weight with 1/sqrt(C) folded into the Q block; bf16 weights.
    wqkv = jnp.concatenate([params["wq"] * scale, params["wk"], params["wv"]],
                           axis=1).astype(bf16)
    bqkv = jnp.concatenate([params["bq"] * scale, params["bk"], params["bv"]],
                           axis=1).astype(f32)
    wo = params["wo"].astype(bf16)
    w1 = params["w1"].astype(bf16)
    w2 = params["w2"].astype(bf16)

    def rep(shape):                  # whole-array operand, same block every step
        return pl.BlockSpec(shape, lambda b, n=len(shape): (0,) * n)

    in_specs = [
        pl.BlockSpec((1, C, S), lambda b: (b, 0, 0)),   # x, channel-major slab
        pl.BlockSpec((1, 1, S), lambda b: (b, 0, 0)),   # validity mask (row + key bias)
        rep((C, 3 * C)), rep((1, 3 * C)),               # fused q|k|v projection
        rep((C, C)), rep((1, C)),                       # out projection
        rep((1, C)), rep((1, C)),                       # norm1 gamma/beta
        rep((1, C)), rep((1, C)),                       # norm2 gamma/beta
        rep((C, Hd)), rep((1, Hd)),                     # ffn linear1
        rep((Hd, C)), rep((1, C)),                      # ffn linear2
    ]

    # Explicit VMEM budget: double-buffered I/O blocks + weights + intermediates.
    wbytes = 2 * (3 * C * C + C * C + 2 * C * Hd) + 4 * (3 * C + 6 * C + Hd)
    inter = S * S * 6 + S * (3 * C + Hd + 6 * C) * 4
    est = 4 * (2 * C * S * 4) + 2 * S * 4 + 2 * wbytes + inter
    vmem_limit = int(min(max(4 * est, 16 << 20), 64 << 20))

    cost = pl.CostEstimate(
        flops=int(2 * B * S * (3 * C * C + 2 * S * C + C * C + 2 * C * Hd)),
        transcendentals=int(B * (S * S + S * Hd)),
        bytes_accessed=int(2 * B * C * S * 4 + B * S * 4 + wbytes))

    out = pl.pallas_call(
        _pillar_attention_kernel,
        out_shape=jax.ShapeDtypeStruct((B, C, S), f32),
        grid_spec=pltpu.PrefetchScalarGridSpec(
            num_scalar_prefetch=0,
            grid=(B,),
            in_specs=in_specs,
            out_specs=pl.BlockSpec((1, C, S), lambda b: (b, 0, 0)),
        ),
        compiler_params=pltpu.CompilerParams(
            dimension_semantics=("parallel",),
            vmem_limit_bytes=vmem_limit),
        cost_estimate=cost,
    )(x_cs, m, wqkv, bqkv, wo, params["bo"],
      params["g1"], params["be1"], params["g2"], params["be2"],
      w1, params["b1"], w2, params["b2"])

    # Channel-major kernel output -> NCHW is a free reshape (no XLA transpose).
    return out.reshape(B, C, H, W).astype(x.dtype)


def init_params(key, channels, hidden_dim):
    """Deterministic init (torch.nn.Linear-style uniform); weights stored as (in, out)."""
    def linear(k, fan_in, fan_out):
        kw, kb = jax.random.split(k)
        bound = 1.0 / np.sqrt(fan_in)
        w = jax.random.uniform(kw, (fan_in, fan_out), jnp.float32, -bound, bound)
        b = jax.random.uniform(kb, (1, fan_out), jnp.float32, -bound, bound)
        return w, b

    ks = jax.random.split(key, 6)
    wq, bq = linear(ks[0], channels, channels)
    wk, bk = linear(ks[1], channels, channels)
    wv, bv = linear(ks[2], channels, channels)
    wo, bo = linear(ks[3], channels, channels)
    w1, b1 = linear(ks[4], channels, hidden_dim)
    w2, b2 = linear(ks[5], hidden_dim, channels)
    return dict(
        wq=wq, bq=bq, wk=wk, bk=bk, wv=wv, bv=bv, wo=wo, bo=bo,
        g1=jnp.ones((1, channels), jnp.float32),
        be1=jnp.zeros((1, channels), jnp.float32),
        g2=jnp.ones((1, channels), jnp.float32),
        be2=jnp.zeros((1, channels), jnp.float32),
        w1=w1, b1=b1, w2=w2, b2=b2)


def reference_forward(x, mask, params):
    """PyTorch-equivalent reference (explicit gather of valid pillars, scatter back)."""
    p = {k: np.asarray(v, np.float32) for k, v in params.items()}
    x = np.asarray(x, np.float32)
    m = np.asarray(mask).astype(bool)
    B, C, H, W = x.shape
    S = H * W
    scale = C ** (-0.5)
    xr = np.transpose(x, (0, 2, 3, 1)).reshape(B, S, C)
    mf = m.reshape(B, S)
    out = np.zeros((B, S, C), np.float32)

    def layernorm(z, g, b):
        mu = z.mean(-1, keepdims=True)
        var = ((z - mu) ** 2).mean(-1, keepdims=True)
        return (z - mu) / np.sqrt(var + LN_EPS) * g + b

    def erf(z):
        return np.asarray(jax.scipy.special.erf(jnp.asarray(z)))

    for b in range(B):
        idx = mf[b]
        feat = xr[b][idx]
        if feat.shape[0] == 0:
            continue
        xn = layernorm(feat, p["g1"], p["be1"])
        q = xn @ p["wq"] + p["bq"]
        k = xn @ p["wk"] + p["bk"]
        v = xn @ p["wv"] + p["bv"]
        a = q @ k.T * scale
        a = a - a.max(-1, keepdims=True)
        a = np.exp(a)
        a = a / a.sum(-1, keepdims=True)
        att = (a @ v) @ p["wo"] + p["bo"]
        y = xn + att
        y2 = layernorm(y, p["g2"], p["be2"])
        h = y2 @ p["w1"] + p["b1"]
        h = 0.5 * h * (1.0 + erf(h / np.sqrt(2.0)))
        y3 = y2 + h @ p["w2"] + p["b2"]
        out[b][idx] = y3
    return np.transpose(out.reshape(B, H, W, C), (0, 3, 1, 2))


if __name__ == "__main__":
    B, C, H, W = 2, 32, 16, 16
    hidden_dim = 4 * C  # module default: channels * 4

    key = jax.random.PRNGKey(0)
    kx, km, kp = jax.random.split(key, 3)
    x = jax.random.normal(kx, (B, C, H, W), jnp.float32)
    mask = jax.random.bernoulli(km, 0.6, (B, H, W))
    params = init_params(kp, C, hidden_dim)

    out = pillar_attention(x, mask, params)
    out = jax.block_until_ready(out)

    ref = reference_forward(x, mask, params)
    # bf16 MXU operands + tanh-GELU + approx reciprocal -> slightly looser bound.
    np.testing.assert_allclose(np.asarray(out), ref, rtol=3e-2, atol=3e-2)
    print("KERNEL_OK")
</pallas_src>

<mosaic_0001>
module attributes {stable_mosaic.version = 11 : i64} {
  func.func @_pillar_attention_kernel(%arg0: i32, %arg1: memref<1x32x256xf32, #tpu.memory_space<vmem>>, %arg2: memref<1x1x256xf32, #tpu.memory_space<vmem>>, %arg3: memref<32x96xbf16, #tpu.memory_space<vmem>>, %arg4: memref<1x96xf32, #tpu.memory_space<vmem>>, %arg5: memref<32x32xbf16, #tpu.memory_space<vmem>>, %arg6: memref<1x32xf32, #tpu.memory_space<vmem>>, %arg7: memref<1x32xf32, #tpu.memory_space<vmem>>, %arg8: memref<1x32xf32, #tpu.memory_space<vmem>>, %arg9: memref<1x32xf32, #tpu.memory_space<vmem>>, %arg10: memref<1x32xf32, #tpu.memory_space<vmem>>, %arg11: memref<32x128xbf16, #tpu.memory_space<vmem>>, %arg12: memref<1x128xf32, #tpu.memory_space<vmem>>, %arg13: memref<128x32xbf16, #tpu.memory_space<vmem>>, %arg14: memref<1x32xf32, #tpu.memory_space<vmem>>, %arg15: memref<1x32x256xf32, #tpu.memory_space<vmem>>) attributes {dimension_semantics = [#tpu.dimension_semantics<parallel>], iteration_bounds = array<i64: 2>, scalar_prefetch = 0 : i64, scratch_operands = 0 : i64, tpu.core_type = #tpu.core_type<tc>, window_params = [{transform_indices = @transform_0, window_bounds = array<i64: 1, 32, 256>}, {transform_indices = @transform_1, window_bounds = array<i64: 1, 1, 256>}, {pipeline_mode = #tpu.pipeline_mode<synchronous>, transform_indices = @transform_2, window_bounds = array<i64: 32, 96>}, {pipeline_mode = #tpu.pipeline_mode<synchronous>, transform_indices = @transform_3, window_bounds = array<i64: 1, 96>}, {pipeline_mode = #tpu.pipeline_mode<synchronous>, transform_indices = @transform_4, window_bounds = array<i64: 32, 32>}, {pipeline_mode = #tpu.pipeline_mode<synchronous>, transform_indices = @transform_5, window_bounds = array<i64: 1, 32>}, {pipeline_mode = #tpu.pipeline_mode<synchronous>, transform_indices = @transform_6, window_bounds = array<i64: 1, 32>}, {pipeline_mode = #tpu.pipeline_mode<synchronous>, transform_indices = @transform_7, window_bounds = array<i64: 1, 32>}, {pipeline_mode = #tpu.pipeline_mode<synchronous>, transform_indices = @transform_8, window_bounds = array<i64: 1, 32>}, {pipeline_mode = #tpu.pipeline_mode<synchronous>, transform_indices = @transform_9, window_bounds = array<i64: 1, 32>}, {pipeline_mode = #tpu.pipeline_mode<synchronous>, transform_indices = @transform_10, window_bounds = array<i64: 32, 128>}, {pipeline_mode = #tpu.pipeline_mode<synchronous>, transform_indices = @transform_11, window_bounds = array<i64: 1, 128>}, {pipeline_mode = #tpu.pipeline_mode<synchronous>, transform_indices = @transform_12, window_bounds = array<i64: 128, 32>}, {pipeline_mode = #tpu.pipeline_mode<synchronous>, transform_indices = @transform_13, window_bounds = array<i64: 1, 32>}, {transform_indices = @transform_14, window_bounds = array<i64: 1, 32, 256>}]} {
    %c0 = arith.constant 0 : index
    %c0_0 = arith.constant 0 : index
    %c0_1 = arith.constant 0 : index
    %0 = vector.load %arg1[%c0, %c0_0, %c0_1] : memref<1x32x256xf32, #tpu.memory_space<vmem>>, vector<1x32x256xf32>
    %1 = vector.shape_cast %0 : vector<1x32x256xf32> to vector<32x256xf32>
    %2 = tpu.transpose %1, [1, 0] : vector<32x256xf32> -> vector<256x32xf32>
    %c0_2 = arith.constant 0 : index
    %c0_3 = arith.constant 0 : index
    %c0_4 = arith.constant 0 : index
    %3 = vector.load %arg2[%c0_2, %c0_3, %c0_4] : memref<1x1x256xf32, #tpu.memory_space<vmem>>, vector<1x1x256xf32>
    %4 = vector.shape_cast %3 : vector<1x1x256xf32> to vector<1x256xf32>
    %cst = arith.constant 1.000000e+00 : f32
    %5 = vector.broadcast %cst : f32 to vector<1x256xf32>
    %6 = arith.subf %4, %5 : vector<1x256xf32>
    %cst_5 = arith.constant 1.000000e+30 : f32
    %7 = vector.broadcast %cst_5 : f32 to vector<1x256xf32>
    %8 = arith.mulf %6, %7 : vector<1x256xf32>
    %c0_6 = arith.constant 0 : index
    %c0_7 = arith.constant 0 : index
    %9 = vector.load %arg7[%c0_6, %c0_7] : memref<1x32xf32, #tpu.memory_space<vmem>>, vector<1x32xf32>
    %c0_8 = arith.constant 0 : index
    %c0_9 = arith.constant 0 : index
    %10 = vector.load %arg8[%c0_8, %c0_9] : memref<1x32xf32, #tpu.memory_space<vmem>>, vector<1x32xf32>
    %cst_10 = arith.constant dense<0.000000e+00> : vector<256xf32>
    %11 = vector.multi_reduction <add>, %2, %cst_10 [1] : vector<256x32xf32> to vector<256xf32>
    %12 = vector.shape_cast %11 : vector<256xf32> to vector<256x1xf32>
    %cst_11 = arith.constant 3.200000e+01 : f32
    %13 = vector.broadcast %cst_11 : f32 to vector<256x1xf32>
    %14 = arith.divf %12, %13 : vector<256x1xf32>
    %15 = vector.broadcast %14 : vector<256x1xf32> to vector<256x32xf32>
    %16 = arith.subf %2, %15 : vector<256x32xf32>
    %17 = arith.mulf %16, %16 : vector<256x32xf32>
    %cst_12 = arith.constant dense<0.000000e+00> : vector<256xf32>
    %18 = vector.multi_reduction <add>, %17, %cst_12 [1] : vector<256x32xf32> to vector<256xf32>
    %19 = vector.shape_cast %18 : vector<256xf32> to vector<256x1xf32>
    %cst_13 = arith.constant 3.200000e+01 : f32
    %20 = vector.broadcast %cst_13 : f32 to vector<256x1xf32>
    %21 = arith.divf %19, %20 : vector<256x1xf32>
    %22 = vector.broadcast %14 : vector<256x1xf32> to vector<256x32xf32>
    %23 = arith.subf %2, %22 : vector<256x32xf32>
    %cst_14 = arith.constant 9.99999974E-6 : f32
    %24 = vector.broadcast %cst_14 : f32 to vector<256x1xf32>
    %25 = arith.addf %21, %24 : vector<256x1xf32>
    %26 = math.rsqrt %25 : vector<256x1xf32>
    %27 = vector.broadcast %26 : vector<256x1xf32> to vector<256x32xf32>
    %28 = arith.mulf %23, %27 : vector<256x32xf32>
    %29 = vector.broadcast %9 : vector<1x32xf32> to vector<256x32xf32>
    %30 = arith.mulf %28, %29 : vector<256x32xf32>
    %31 = vector.broadcast %10 : vector<1x32xf32> to vector<256x32xf32>
    %32 = arith.addf %30, %31 : vector<256x32xf32>
    %33 = arith.truncf %32 : vector<256x32xf32> to vector<256x32xbf16>
    %c0_15 = arith.constant 0 : index
    %c0_16 = arith.constant 0 : index
    %34 = vector.load %arg3[%c0_15, %c0_16] : memref<32x96xbf16, #tpu.memory_space<vmem>>, vector<32x96xbf16>
    %cst_17 = arith.constant dense<0.000000e+00> : vector<256x96xf32>
    %35 = tpu.matmul %33, %34, %cst_17 {dimension_numbers = #tpu.dot_dimension_numbers<[1], [0], [0], [1], [0, 0, 1, 1], [], []>} : vector<256x32xbf16>, vector<32x96xbf16>, vector<256x96xf32> -> vector<256x96xf32>
    %c0_18 = arith.constant 0 : index
    %c0_19 = arith.constant 0 : index
    %36 = vector.load %arg4[%c0_18, %c0_19] : memref<1x96xf32, #tpu.memory_space<vmem>>, vector<1x96xf32>
    %37 = vector.broadcast %36 : vector<1x96xf32> to vector<256x96xf32>
    %38 = arith.addf %35, %37 : vector<256x96xf32>
    %39 = vector.extract_strided_slice %38 {offsets = [0, 0], sizes = [256, 32], strides = [1, 1]} : vector<256x96xf32> to vector<256x32xf32>
    %40 = arith.truncf %39 : vector<256x32xf32> to vector<256x32xbf16>
    %41 = vector.extract_strided_slice %38 {offsets = [0, 32], sizes = [256, 32], strides = [1, 1]} : vector<256x96xf32> to vector<256x32xf32>
    %42 = arith.truncf %41 : vector<256x32xf32> to vector<256x32xbf16>
    %43 = vector.extract_strided_slice %38 {offsets = [0, 64], sizes = [256, 32], strides = [1, 1]} : vector<256x96xf32> to vector<256x32xf32>
    %44 = arith.truncf %43 : vector<256x32xf32> to vector<256x32xbf16>
    %cst_20 = arith.constant dense<0.000000e+00> : vector<256x256xf32>
    %45 = tpu.matmul %40, %42, %cst_20 {dimension_numbers = #tpu.dot_dimension_numbers<[1], [1], [0], [0], [0, 0, 1, 0], [], []>} : vector<256x32xbf16>, vector<256x32xbf16>, vector<256x256xf32> -> vector<256x256xf32>
    %46 = vector.broadcast %8 : vector<1x256xf32> to vector<256x256xf32>
    %47 = arith.addf %45, %46 : vector<256x256xf32>
    %cst_21 = arith.constant dense<0xFF800000> : vector<256xf32>
    %48 = vector.multi_reduction <maximumf>, %47, %cst_21 [1] : vector<256x256xf32> to vector<256xf32>
    %49 = vector.shape_cast %48 : vector<256xf32> to vector<256x1xf32>
    %50 = vector.broadcast %49 : vector<256x1xf32> to vector<256x256xf32>
    %51 = arith.subf %47, %50 : vector<256x256xf32>
    %52 = math.exp %51 : vector<256x256xf32>
    %cst_22 = arith.constant dense<0.000000e+00> : vector<256xf32>
    %53 = vector.multi_reduction <add>, %52, %cst_22 [1] : vector<256x256xf32> to vector<256xf32>
    %54 = vector.shape_cast %53 : vector<256xf32> to vector<256x1xf32>
    %55 = arith.truncf %52 : vector<256x256xf32> to vector<256x256xbf16>
    %cst_23 = arith.constant dense<0.000000e+00> : vector<256x32xf32>
    %56 = tpu.matmul %55, %44, %cst_23 {dimension_numbers = #tpu.dot_dimension_numbers<[1], [0], [0], [1], [0, 0, 1, 1], [], []>} : vector<256x256xbf16>, vector<256x32xbf16>, vector<256x32xf32> -> vector<256x32xf32>
    %57 = tpu.reciprocal %54 {approx = true} : vector<256x1xf32> -> vector<256x1xf32>
    %58 = vector.broadcast %57 : vector<256x1xf32> to vector<256x32xf32>
    %59 = arith.mulf %56, %58 : vector<256x32xf32>
    %60 = arith.truncf %59 : vector<256x32xf32> to vector<256x32xbf16>
    %c0_24 = arith.constant 0 : index
    %c0_25 = arith.constant 0 : index
    %61 = vector.load %arg5[%c0_24, %c0_25] : memref<32x32xbf16, #tpu.memory_space<vmem>>, vector<32x32xbf16>
    %cst_26 = arith.constant dense<0.000000e+00> : vector<256x32xf32>
    %62 = tpu.matmul %60, %61, %cst_26 {dimension_numbers = #tpu.dot_dimension_numbers<[1], [0], [0], [1], [0, 0, 1, 1], [], []>} : vector<256x32xbf16>, vector<32x32xbf16>, vector<256x32xf32> -> vector<256x32xf32>
    %c0_27 = arith.constant 0 : index
    %c0_28 = arith.constant 0 : index
    %63 = vector.load %arg6[%c0_27, %c0_28] : memref<1x32xf32, #tpu.memory_space<vmem>>, vector<1x32xf32>
    %64 = vector.broadcast %63 : vector<1x32xf32> to vector<256x32xf32>
    %65 = arith.addf %62, %64 : vector<256x32xf32>
    %66 = arith.addf %32, %65 : vector<256x32xf32>
    %c0_29 = arith.constant 0 : index
    %c0_30 = arith.constant 0 : index
    %67 = vector.load %arg9[%c0_29, %c0_30] : memref<1x32xf32, #tpu.memory_space<vmem>>, vector<1x32xf32>
    %c0_31 = arith.constant 0 : index
    %c0_32 = arith.constant 0 : index
    %68 = vector.load %arg10[%c0_31, %c0_32] : memref<1x32xf32, #tpu.memory_space<vmem>>, vector<1x32xf32>
    %cst_33 = arith.constant dense<0.000000e+00> : vector<256xf32>
    %69 = vector.multi_reduction <add>, %66, %cst_33 [1] : vector<256x32xf32> to vector<256xf32>
    %70 = vector.shape_cast %69 : vector<256xf32> to vector<256x1xf32>
    %cst_34 = arith.constant 3.200000e+01 : f32
    %71 = vector.broadcast %cst_34 : f32 to vector<256x1xf32>
    %72 = arith.divf %70, %71 : vector<256x1xf32>
    %73 = vector.broadcast %72 : vector<256x1xf32> to vector<256x32xf32>
    %74 = arith.subf %66, %73 : vector<256x32xf32>
    %75 = arith.mulf %74, %74 : vector<256x32xf32>
    %cst_35 = arith.constant dense<0.000000e+00> : vector<256xf32>
    %76 = vector.multi_reduction <add>, %75, %cst_35 [1] : vector<256x32xf32> to vector<256xf32>
    %77 = vector.shape_cast %76 : vector<256xf32> to vector<256x1xf32>
    %cst_36 = arith.constant 3.200000e+01 : f32
    %78 = vector.broadcast %cst_36 : f32 to vector<256x1xf32>
    %79 = arith.divf %77, %78 : vector<256x1xf32>
    %80 = vector.broadcast %72 : vector<256x1xf32> to vector<256x32xf32>
    %81 = arith.subf %66, %80 : vector<256x32xf32>
    %cst_37 = arith.constant 9.99999974E-6 : f32
    %82 = vector.broadcast %cst_37 : f32 to vector<256x1xf32>
    %83 = arith.addf %79, %82 : vector<256x1xf32>
    %84 = math.rsqrt %83 : vector<256x1xf32>
    %85 = vector.broadcast %84 : vector<256x1xf32> to vector<256x32xf32>
    %86 = arith.mulf %81, %85 : vector<256x32xf32>
    %87 = vector.broadcast %67 : vector<1x32xf32> to vector<256x32xf32>
    %88 = arith.mulf %86, %87 : vector<256x32xf32>
    %89 = vector.broadcast %68 : vector<1x32xf32> to vector<256x32xf32>
    %90 = arith.addf %88, %89 : vector<256x32xf32>
    %91 = arith.truncf %90 : vector<256x32xf32> to vector<256x32xbf16>
    %c0_38 = arith.constant 0 : index
    %c0_39 = arith.constant 0 : index
    %92 = vector.load %arg11[%c0_38, %c0_39] : memref<32x128xbf16, #tpu.memory_space<vmem>>, vector<32x128xbf16>
    %cst_40 = arith.constant dense<0.000000e+00> : vector<256x128xf32>
    %93 = tpu.matmul %91, %92, %cst_40 {dimension_numbers = #tpu.dot_dimension_numbers<[1], [0], [0], [1], [0, 0, 1, 1], [], []>} : vector<256x32xbf16>, vector<32x128xbf16>, vector<256x128xf32> -> vector<256x128xf32>
    %c0_41 = arith.constant 0 : index
    %c0_42 = arith.constant 0 : index
    %94 = vector.load %arg12[%c0_41, %c0_42] : memref<1x128xf32, #tpu.memory_space<vmem>>, vector<1x128xf32>
    %95 = vector.broadcast %94 : vector<1x128xf32> to vector<256x128xf32>
    %96 = arith.addf %93, %95 : vector<256x128xf32>
    %cst_43 = arith.constant 5.000000e-01 : f32
    %97 = vector.broadcast %cst_43 : f32 to vector<256x128xf32>
    %98 = arith.mulf %97, %96 : vector<256x128xf32>
    %cst_44 = arith.constant 4.471500e-02 : f32
    %99 = vector.broadcast %cst_44 : f32 to vector<256x128xf32>
    %100 = arith.mulf %99, %96 : vector<256x128xf32>
    %101 = arith.mulf %100, %96 : vector<256x128xf32>
    %102 = arith.mulf %101, %96 : vector<256x128xf32>
    %103 = arith.addf %96, %102 : vector<256x128xf32>
    %cst_45 = arith.constant 0.797884583 : f32
    %104 = vector.broadcast %cst_45 : f32 to vector<256x128xf32>
    %105 = arith.mulf %104, %103 : vector<256x128xf32>
    %106 = math.tanh %105 : vector<256x128xf32>
    %cst_46 = arith.constant 1.000000e+00 : f32
    %107 = vector.broadcast %cst_46 : f32 to vector<256x128xf32>
    %108 = arith.addf %107, %106 : vector<256x128xf32>
    %109 = arith.mulf %98, %108 : vector<256x128xf32>
    %110 = arith.truncf %109 : vector<256x128xf32> to vector<256x128xbf16>
    %c0_47 = arith.constant 0 : index
    %c0_48 = arith.constant 0 : index
    %111 = vector.load %arg13[%c0_47, %c0_48] : memref<128x32xbf16, #tpu.memory_space<vmem>>, vector<128x32xbf16>
    %cst_49 = arith.constant dense<0.000000e+00> : vector<256x32xf32>
    %112 = tpu.matmul %110, %111, %cst_49 {dimension_numbers = #tpu.dot_dimension_numbers<[1], [0], [0], [1], [0, 0, 1, 1], [], []>} : vector<256x128xbf16>, vector<128x32xbf16>, vector<256x32xf32> -> vector<256x32xf32>
    %c0_50 = arith.constant 0 : index
    %c0_51 = arith.constant 0 : index
    %113 = vector.load %arg14[%c0_50, %c0_51] : memref<1x32xf32, #tpu.memory_space<vmem>>, vector<1x32xf32>
    %114 = vector.broadcast %113 : vector<1x32xf32> to vector<256x32xf32>
    %115 = arith.addf %112, %114 : vector<256x32xf32>
    %116 = arith.addf %90, %115 : vector<256x32xf32>
    %117 = tpu.transpose %116, [1, 0] : vector<256x32xf32> -> vector<32x256xf32>
    %118 = vector.broadcast %4 : vector<1x256xf32> to vector<32x256xf32>
    %119 = arith.mulf %117, %118 : vector<32x256xf32>
    %c0_52 = arith.constant 0 : index
    %c0_53 = arith.constant 0 : index
    %c0_54 = arith.constant 0 : index
    %120 = vector.load %arg15[%c0_52, %c0_53, %c0_54] : memref<1x32x256xf32, #tpu.memory_space<vmem>>, vector<1x32x256xf32>
    %121 = vector.shape_cast %120 : vector<1x32x256xf32> to vector<32x256xf32>
    %122 = vector.shape_cast %119 : vector<32x256xf32> to vector<1x32x256xf32>
    tpu.vector_store %arg15[%c0_52, %c0_53, %c0_54], %122 {strides = array<i32>} : memref<1x32x256xf32, #tpu.memory_space<vmem>>, vector<1x32x256xf32>,
    return
  }
  func.func @transform_0(%arg0: i32) -> (i32, i32, i32) {
    %c0_i32 = arith.constant 0 : i32
    %c0_i32_0 = arith.constant 0 : i32
    %c0_i32_1 = arith.constant 0 : i32
    return %arg0, %c0_i32, %c0_i32_0 : i32, i32, i32
  }
  func.func @transform_1(%arg0: i32) -> (i32, i32, i32) {
    %c0_i32 = arith.constant 0 : i32
    %c0_i32_0 = arith.constant 0 : i32
    %c0_i32_1 = arith.constant 0 : i32
    return %arg0, %c0_i32, %c0_i32_0 : i32, i32, i32
  }
  func.func @transform_2(%arg0: i32) -> (i32, i32) {
    %c0_i32 = arith.constant 0 : i32
    %c0_i32_0 = arith.constant 0 : i32
    %c0_i32_1 = arith.constant 0 : i32
    return %c0_i32, %c0_i32_0 : i32, i32
  }
  func.func @transform_3(%arg0: i32) -> (i32, i32) {
    %c0_i32 = arith.constant 0 : i32
    %c0_i32_0 = arith.constant 0 : i32
    %c0_i32_1 = arith.constant 0 : i32
    return %c0_i32, %c0_i32_0 : i32, i32
  }
  func.func @transform_4(%arg0: i32) -> (i32, i32) {
    %c0_i32 = arith.constant 0 : i32
    %c0_i32_0 = arith.constant 0 : i32
    %c0_i32_1 = arith.constant 0 : i32
    return %c0_i32, %c0_i32_0 : i32, i32
  }
  func.func @transform_5(%arg0: i32) -> (i32, i32) {
    %c0_i32 = arith.constant 0 : i32
    %c0_i32_0 = arith.constant 0 : i32
    %c0_i32_1 = arith.constant 0 : i32
    return %c0_i32, %c0_i32_0 : i32, i32
  }
  func.func @transform_6(%arg0: i32) -> (i32, i32) {
    %c0_i32 = arith.constant 0 : i32
    %c0_i32_0 = arith.constant 0 : i32
    %c0_i32_1 = arith.constant 0 : i32
    return %c0_i32, %c0_i32_0 : i32, i32
  }
  func.func @transform_7(%arg0: i32) -> (i32, i32) {
    %c0_i32 = arith.constant 0 : i32
    %c0_i32_0 = arith.constant 0 : i32
    %c0_i32_1 = arith.constant 0 : i32
    return %c0_i32, %c0_i32_0 : i32, i32
  }
  func.func @transform_8(%arg0: i32) -> (i32, i32) {
    %c0_i32 = arith.constant 0 : i32
    %c0_i32_0 = arith.constant 0 : i32
    %c0_i32_1 = arith.constant 0 : i32
    return %c0_i32, %c0_i32_0 : i32, i32
  }
  func.func @transform_9(%arg0: i32) -> (i32, i32) {
    %c0_i32 = arith.constant 0 : i32
    %c0_i32_0 = arith.constant 0 : i32
    %c0_i32_1 = arith.constant 0 : i32
    return %c0_i32, %c0_i32_0 : i32, i32
  }
  func.func @transform_10(%arg0: i32) -> (i32, i32) {
    %c0_i32 = arith.constant 0 : i32
    %c0_i32_0 = arith.constant 0 : i32
    %c0_i32_1 = arith.constant 0 : i32
    return %c0_i32, %c0_i32_0 : i32, i32
  }
  func.func @transform_11(%arg0: i32) -> (i32, i32) {
    %c0_i32 = arith.constant 0 : i32
    %c0_i32_0 = arith.constant 0 : i32
    %c0_i32_1 = arith.constant 0 : i32
    return %c0_i32, %c0_i32_0 : i32, i32
  }
  func.func @transform_12(%arg0: i32) -> (i32, i32) {
    %c0_i32 = arith.constant 0 : i32
    %c0_i32_0 = arith.constant 0 : i32
    %c0_i32_1 = arith.constant 0 : i32
    return %c0_i32, %c0_i32_0 : i32, i32
  }
  func.func @transform_13(%arg0: i32) -> (i32, i32) {
    %c0_i32 = arith.constant 0 : i32
    %c0_i32_0 = arith.constant 0 : i32
    %c0_i32_1 = arith.constant 0 : i32
    return %c0_i32, %c0_i32_0 : i32, i32
  }
  func.func @transform_14(%arg0: i32) -> (i32, i32, i32) {
    %c0_i32 = arith.constant 0 : i32
    %c0_i32_0 = arith.constant 0 : i32
    %c0_i32_1 = arith.constant 0 : i32
    return %arg0, %c0_i32, %c0_i32_0 : i32, i32, i32
  }
}

</mosaic_0001>

<bundles_post_ra>
// kernel: tpu_custom_call.1
= control target key start
LH: loop header
LB: loop body
LE: loop exit
PB: predicated region body
PF: predicated region fallthrough
CT: control target
= control target key end

     0   :  { %s7583_s0 = inlined_call_operand.hbm [shape: f32[2,32,256], index: 0, kind: input, shape index: {}]   ;;  %s7584_s1 = inlined_call_operand.vmem [shape: f32[2,1,256], index: 1, kind: input, shape index: {}]   ;;  %s7585_s2 = inlined_call_operand.vmem [shape: bf16[32,96], index: 2, kind: input, shape index: {}]   ;;  %s7586_s3 = inlined_call_operand.vmem [shape: f32[1,96], index: 3, kind: input, shape index: {}]   ;;  %s7587_s4 = inlined_call_operand.vmem [shape: bf16[32,32], index: 4, kind: input, shape index: {}]   ;;  %s7588_s5 = inlined_call_operand.vmem [shape: f32[1,32], index: 5, kind: input, shape index: {}]   ;;  %s7589_s6 = inlined_call_operand.vmem [shape: f32[1,32], index: 6, kind: input, shape index: {}]   ;;  %s7590_s7 = inlined_call_operand.vmem [shape: f32[1,32], index: 7, kind: input, shape index: {}]   ;;  %s7591_s8 = inlined_call_operand.vmem [shape: f32[1,32], index: 8, kind: input, shape index: {}]   ;;  %s7592_s9 = inlined_call_operand.vmem [shape: f32[1,32], index: 9, kind: input, shape index: {}]   ;;  %s7593_s10 = inlined_call_operand.vmem [shape: bf16[32,128], index: 10, kind: input, shape index: {}]   ;;  %s7594_s11 = inlined_call_operand.vmem [shape: f32[1,128], index: 11, kind: input, shape index: {}]   ;;  %s7595_s12 = inlined_call_operand.vmem [shape: bf16[128,32], index: 12, kind: input, shape index: {}]   ;;  %s7596_s13 = inlined_call_operand.vmem [shape: f32[1,32], index: 13, kind: input, shape index: {}]   ;;  %s7597_s14 = inlined_call_operand.hbm [shape: f32[2,32,256], index: 14, kind: output, shape index: {}]  }
   0x1   :  { %7657 = sst [smem:[#allocation60_spill]] %s7597_s14 }
   0x2   :  { %19 = vsyncpa [#allocation3], 0 }
   0x3   :  { %21 = vsyncpa [#allocation3 + $0x1], 0 }
   0x4   :  { %22 = vsyncpa [#allocation4], 0 }
   0x5   :  { %24 = vsyncpa [#allocation4 + $0x1], 0  ;;  %s5295_s29 = smov 0   ;;  %s5297_s30 = smov 0  }
   0x6   :  { %s5299_s15 = smov 0   ;;  %s5301_s16 = smov 0  }
   0x7 LB: > { %7658 = sst [smem:[#allocation8_spill]] %s5198_s29  ;;  %s5316_s17 = sadd.s32 4294967295, %s5210_s16   ;;  %s5210_s16 = sphi %s5301_s16, %s7771_s16   ;;  %s5206_s15 = sphi %s5299_s15, %s7773_s15   ;;  %s5202_s30 = sphi %s5297_s30, %s7775_s30   ;;  %s5198_s29 = sphi %s5295_s29, %s7774_s29  }
   0x8   : > { %7659 = sst [smem:[#allocation9_spill]] %s5206_s15  ;;  %s4156_s18 = sadd.s32 4294967294, %s5210_s16  }
   0x9   : > { %s5320_s19 = sadd.s32 1, %s5210_s16   ;;  %s37_s20 = sadd.s32 1, %s5206_s15 }
   0xa   : > { %7660 = sst [smem:[#allocation10_spill]] %s5320_s19  ;;  %s34_s21 = ssub.s32 %s5210_s16, %s5320_s19 }
   0xb   : > { %p44_p0 = scmp.ne.s32.totalorder %s5206_s15, %s5202_s30  ;;  %p35_p1 = scmp.eq.s32.totalorder %s34_s21, 0 }
   0xc   : > { %p45_p2 = scmp.eq.s32.totalorder %s5210_s16, 0  ;;  %p50_p3 = scmp.ne.s32.totalorder %s5202_s30, %s5198_s29 }
   0xd   : > { %p51_p4 = scmp.eq.s32.totalorder %s5316_s17, 0  ;;  %p352_p7 = scmp.eq.s32.totalorder %s5316_s17, 1 }
   0xe   : > { %s5332_s22 = scalar_select %p35_p1, %s5206_s15, %s37_s20  }
   0xf   : > { %p5334_p5 = por %p45_p2, %p44_p0  ;;  %p5338_p6 = por %p51_p4, %p50_p3 }
  0x10   : > { %7661 = sst [smem:[#allocation11_spill]] %s5332_s22  ;;  %p358_p8 = scmp.eq.s32.totalorder %s4156_s18, 1 }
  0x11   : > { %s7663_s24 = scalar_select %p5338_p6, 1, 0 }
  0x12   : > { %p4678_p10 = scmp.lt.s32.totalorder %s5210_s16, 2  ;;  %p5345_p11 = por %p352_p7, %p44_p0 }
  0x13   : > { %p5349_p12 = por %p358_p8, %p50_p3  ;;  %s414_s27 = sand.u32 1, %s5206_s15  }
  0x14   : > { %s7664_s25 = scalar_select %p5345_p11, 1, 0 }
  0x15   : > { %s7666_s26 = scalar_select %p5349_p12, 1, 0 }
  0x16   : > { %7665 = sst [smem:[#allocation12_spill]] %s7664_s25  ;;  %s4258_s28 = sshll.u32 %s5210_s16, 10 }
  0x17   : > { %7667 = sst [smem:[#allocation13_spill]] %s7666_s26  ;;  %s4159_s20 = sshll.u32 %s414_s27, 6 }
  0x18   : > { %s5358_s19 = scalar_lea.hbm %s7583_s0, %s4258_s28  ;;  %s418_s18 = scalar_lea.vmem [#allocation2], %s4159_s20 }
  0x19   : > { %s425_s29 = sshll.u32 %s418_s18, 4  ;;  %p5362_p13 = pnand %p4678_p10, %p5334_p5  ;;  %s5366_s29 = int_to_ptr.vmem [resolvable:$true] %s425_s29 }
  0x1a   : > { %s5368_s15 = scalar_lea.sflag [#allocation3], %s414_s27  ;;  %s5118_s26 = scalar_lea.hbm %s5358_s19, 1024 }
  0x1b   : > { %p5119_p0 = scmp.ne.s32.totalorder %s5358_s19, %s5118_s26  ;;  %p5120_p1 = pneg %p5362_p13 }
  0x1c   : > { %s5123_s20 = scalar_lea.hbm %s7583_s0, 2048  ;;  %p5124_p4 = scmp.lt.s32.totalorder %s5358_s19, %s7583_s0 }
  0x1d   : > { %p5121_p2 = pnand %p5120_p1, %p5119_p0  ;;  %p5125_p5 = scmp.lt.s32.totalorder %s5123_s20, %s5118_s26 }
  0x1f   : > { %p5122_p3 = pneg %p5121_p2  ;;  %p5126_p7 = por %p5125_p5, %p5124_p4 }
  0x21   : > { %p5127_p8 = pnand %p5126_p7, %p5122_p3 }
  0x23   : > { %5130 = shalt.err (!%p5127_p8)
}
  0x24   : > { %s5131_s27 = scalar_lea.vmem %s5366_s29, 1024  ;;  %s5212_s18 = smov [#allocation2]  }
  0x25   : > { %p5132_p10 = scmp.ne.s32.totalorder %s5366_s29, %s5131_s27  ;;  %s5136_s25 = sshll.u32 %s5212_s18, 4  ;;  %s5137_s25 = int_to_ptr.vmem [resolvable:$false] %s5136_s25 }
  0x26   : > { %s5138_s22 = scalar_lea.vmem %s5137_s25, 2048  ;;  %p5139_p2 = scmp.lt.s32.totalorder %s5366_s29, %s5137_s25 }
  0x27   : > { %p5134_p9 = pnand %p5132_p10, %p5120_p1  ;;  %p5140_p12 = scmp.lt.s32.totalorder %s5138_s22, %s5131_s27 }
  0x29   : > { %p5135_p0 = pneg %p5134_p9  ;;  %p5141_p11 = por %p5140_p12, %p5139_p2 }
  0x2b   : > { %p5142_p6 = pnand %p5141_p11, %p5135_p0 }
  0x2d   : > { %5145 = shalt.err (!%p5142_p6)
}
  0x2e   : > { %s5213_s26 = smov 256   ;;  %s5214_s28 = smov 16  }
  0x2f   : > { %4673 = dma.hbm_to_vmem [thread:$0]  (!%p5362_p13), %s5358_s19, 1024, %s5366_s29, %s5368_s15, %s5213_s26, %s5213_s26, %s5214_s28  }
  0x30   : > { %p4162_p9 = scmp.ge.s32.totalorder %s5210_s16, 1  ;;  %p440_p1 = scmp.lt.s32.totalorder %s5210_s16, 3 }
  0x32   : > { %p441_p3 = pnand %p4162_p9, %p440_p1 }
  0x34   : > { %444 = sbr.rel (%p441_p3) target bundleno = 2758 (0xac6), region = 76 }
  0x39   : > { %s5392_s25 = sand.u32 1, %s5202_s30   ;;  %p7669_p6 = scmp.ne.s32.totalorder %s7663_s24, 0 }
  0x3a   : > { %s4163_s20 = sshll.u32 %s5392_s25, 6  ;;  %s447_s23 = scalar_lea.sflag [#allocation3], %s5392_s25 }
  0x3b   : > { %s450_s21 = scalar_lea.vmem [#allocation2], %s4163_s20 }
  0x3c   : > { %5189 = dma.done.wait (%p7669_p6), %s447_s23, 1024  }
  0x3d   : > { %5191 = vsyncadd (%p7669_p6), %s447_s23, 4294966272  ;;  %v504_v0 = vld [vmem:[%s450_s21] sm:$0xff]  ;;  %v505_v1 = vld [vmem:[%s450_s21 + $0x8] sm:$0xff]  ;;  %vm581_vm0 = vcmask 261120   ;;  %s5215_s23 = smov 96   ;;  %p499_p11 = scmp.lt.s32.totalorder %s5316_s17, 1 }
  0x3e   : > { %512 = vxpose.xlu0.b32.start [1/4] (short) %v504_v0, 128  ;;  %v506_v2 = vld [vmem:[%s450_s21 + $0x10] sm:$0xff]  ;;  %544 = vxpose.xlu1.b32.start [1/4] (short) %v505_v1, 128  ;;  %v507_v3 = vld [vmem:[%s450_s21 + $0x18] sm:$0xff]  ;;  %v508_v4 = vld [vmem:[%s450_s21 + $0x20] sm:$0xff]  ;;  %s498_s18 = scalar_lea.vmem [#allocation5], %s4163_s20  ;;  %s7764_s20 = sld [smem:[#allocation12_spill]] }
  0x3f   : > { %v509_v5 = vld [vmem:[%s450_s21 + $0x28] sm:$0xff]  ;;  %v510_v6 = vld [vmem:[%s450_s21 + $0x30] sm:$0xff]  ;;  %v511_v7 = vld [vmem:[%s450_s21 + $0x38] sm:$0xff]  ;;  %s5216_s21 = smov 64   ;;  %s4259_s22 = sshll.u32 %s5316_s17, 10 }
  0x40   : > { %s500_s14 = scalar_select %p499_p11, %s5316_s17, 1 }
  0x41   : > { %s5217_s17 = smov [#allocation5]  }
  0x42   : > { %513 = vxpose.xlu0.b32.cont [2/4] (short) %v506_v2, 128  ;;  %545 = vxpose.xlu1.b32.cont [2/4] (short) %v507_v3, 128  ;;  %s4165_s29 = sshll.u32 %s500_s14, 1  ;;  %s4058_s14 = scalar_lea.sflag [#allocation4], %s5392_s25 }
  0x43   : > { %s6163_s24 = scalar_lea.vmem %s7584_s1, %s4165_s29  ;;  %s5150_s15 = sshll.u32 %s5217_s17, 4  ;;  %s5151_s15 = int_to_ptr.vmem [resolvable:$false] %s5150_s15 }
  0x44   : > { %p7766_p13 = scmp.ne.s32.totalorder %s7764_s20, 0  ;;  %s5152_s19 = scalar_lea.vmem %s5151_s15, 2048 }
  0x46   : > { %514 = vxpose.xlu0.b32.cont [3/4] (short) %v508_v4, 128  ;;  %546 = vxpose.xlu1.b32.cont [3/4] (short) %v509_v5, 128 }
  0x4a   : > { %515 = vxpose.xlu0.b32.end [4/4] (short) %v510_v6, 128  ;;  %547 = vxpose.xlu1.b32.end [4/4] (short) %v511_v7, 128 }
  0xba   : > { %v5402_v8 = vpop.trf.xlu0  ;;  %v5406_v10 = vpop.trf.xlu1 }
  0xbb   : > { %v582_v9 = vsel %vm581_vm0, %v5402_v8, 0.0  ;;  %v630_v50 = vsel %vm581_vm0, %v5406_v10, 0.0 }
  0xbc   : > { %583 = vadd.xlane.f32.xlu0 %v582_v9 }
  0xbe   : > { %v5408_v11 = vpop.trf.xlu0  ;;  %v5412_v13 = vpop.trf.xlu1 }
  0xbf   : > { %v585_v12 = vsel %vm581_vm0, %v5408_v11, 0.0  ;;  %v633_v54 = vsel %vm581_vm0, %v5412_v13, 0.0 }
  0xc0   : > { %586 = vadd.xlane.f32.xlu1 %v585_v12 }
  0xc2   : > { %v5414_v14 = vpop.trf.xlu0  ;;  %v5418_v16 = vpop.trf.xlu1 }
  0xc3   : > { %v588_v15 = vsel %vm581_vm0, %v5414_v14, 0.0  ;;  %v636_v53 = vsel %vm581_vm0, %v5418_v16, 0.0 }
  0xc4   : > { %589 = vadd.xlane.f32.xlu1 %v588_v15 }
  0xc6   : > { %v5420_v17 = vpop.trf.xlu0  ;;  %v5426_v20 = vpop.trf.xlu1 }
  0xc7   : > { %v591_v18 = vsel %vm581_vm0, %v5420_v17, 0.0  ;;  %v639_v56 = vsel %vm581_vm0, %v5426_v20, 0.0 }
  0xc8   : > { %592 = vadd.xlane.f32.xlu1 %v591_v18 }
  0xca   : > { %v5424_v19 = vpop.trf.xlu0  ;;  %v5434_v24 = vpop.trf.xlu1 }
  0xcb   : > { %v594_v21 = vsel %vm581_vm0, %v5424_v19, 0.0  ;;  %v642_v55 = vsel %vm581_vm0, %v5434_v24, 0.0 }
  0xcc   : > { %595 = vadd.xlane.f32.xlu0 %v594_v21 }
  0xce   : > { %v5430_v22 = vpop.trf.xlu0  ;;  %v5442_v28 = vpop.trf.xlu1 }
  0xcf   : > { %v597_v23 = vsel %vm581_vm0, %v5430_v22, 0.0  ;;  %v645_v59 = vsel %vm581_vm0, %v5442_v28, 0.0 }
  0xd0   : > { %598 = vadd.xlane.f32.xlu1 %v597_v23 }
  0xd2   : > { %v5436_v25 = vpop.trf.xlu0  ;;  %v5450_v32 = vpop.trf.xlu1 }
  0xd3   : > { %v600_v26 = vsel %vm581_vm0, %v5436_v25, 0.0  ;;  %v648_v58 = vsel %vm581_vm0, %v5450_v32, 0.0 }
  0xd4   : > { %601 = vadd.xlane.f32.xlu0 %v600_v26 }
  0xd6   : > { %v5440_v27 = vpop.trf.xlu0  ;;  %v5458_v36 = vpop.trf.xlu1 }
  0xd7   : > { %v603_v29 = vsel %vm581_vm0, %v5440_v27, 0.0  ;;  %v651_v62 = vsel %vm581_vm0, %v5458_v36, 0.0 }
  0xd8   : > { %604 = vadd.xlane.f32.xlu1 %v603_v29 }
  0xda   : > { %v5446_v30 = vpop.trf.xlu0  ;;  %v5466_v40 = vpop.trf.xlu1 }
  0xdb   : > { %v606_v31 = vsel %vm581_vm0, %v5446_v30, 0.0  ;;  %v654_v61 = vsel %vm581_vm0, %v5466_v40, 0.0 }
  0xdc   : > { %607 = vadd.xlane.f32.xlu0 %v606_v31 }
  0xde   : > { %v5452_v33 = vpop.trf.xlu0  ;;  %v5474_v44 = vpop.trf.xlu1 }
  0xdf   : > { %v609_v34 = vsel %vm581_vm0, %v5452_v33, 0.0  ;;  %v657_v0 = vsel %vm581_vm0, %v5474_v44, 0.0 }
  0xe0   : > { %610 = vadd.xlane.f32.xlu1 %v609_v34 }
  0xe2   : > { %v5456_v35 = vpop.trf.xlu0  ;;  %v5482_v48 = vpop.trf.xlu1 }
  0xe3   : > { %v612_v37 = vsel %vm581_vm0, %v5456_v35, 0.0  ;;  %v660_v63 = vsel %vm581_vm0, %v5482_v48, 0.0 }
  0xe4   : > { %613 = vadd.xlane.f32.xlu0 %v612_v37 }
  0xe6   : > { %v5462_v38 = vpop.trf.xlu0  ;;  %v5490_v52 = vpop.trf.xlu1 }
  0xe7   : > { %v615_v39 = vsel %vm581_vm0, %v5462_v38, 0.0  ;;  %v663_v3 = vsel %vm581_vm0, %v5490_v52, 0.0 }
  0xe8   : > { %616 = vadd.xlane.f32.xlu1 %v615_v39 }
  0xea   : > { %v5468_v41 = vpop.trf.xlu0  ;;  %v5500_v57 = vpop.trf.xlu1 }
  0xeb   : > { %v618_v42 = vsel %vm581_vm0, %v5468_v41, 0.0  ;;  %v666_v2 = vsel %vm581_vm0, %v5500_v57, 0.0 }
  0xec   : > { %619 = vadd.xlane.f32.xlu0 %v618_v42 }
  0xee   : > { %v5472_v43 = vpop.trf.xlu0  ;;  %v5506_v60 = vpop.trf.xlu1 }
  0xef   : > { %v621_v45 = vsel %vm581_vm0, %v5472_v43, 0.0  ;;  %v669_v6 = vsel %vm581_vm0, %v5506_v60, 0.0 }
  0xf0   : > { %622 = vadd.xlane.f32.xlu1 %v621_v45 }
  0xf2   : > { %v5478_v46 = vpop.trf.xlu0  ;;  %v5516_v1 = vpop.trf.xlu1 }
  0xf3   : > { %v624_v47 = vsel %vm581_vm0, %v5478_v46, 0.0  ;;  %v672_v4 = vsel %vm581_vm0, %v5516_v1, 0.0 }
  0xf4   : > { %625 = vadd.xlane.f32.xlu0 %v624_v47 }
  0xf6   : > { %v5484_v49 = vpop.trf.xlu0  ;;  %v5524_v5 = vpop.trf.xlu1 }
  0xf7   : > { %v627_v51 = vsel %vm581_vm0, %v5484_v49, 0.0  ;;  %v675_v7 = vsel %vm581_vm0, %v5524_v5, 0.0 }
  0xf8   : > { %631 = vadd.xlane.f32.xlu0 %v630_v50  ;;  %628 = vadd.xlane.f32.xlu1 %v627_v51 }
  0xfc   : > { %637 = vadd.xlane.f32.xlu0 %v636_v53  ;;  %634 = vadd.xlane.f32.xlu1 %v633_v54 }
 0x100   : > { %643 = vadd.xlane.f32.xlu0 %v642_v55  ;;  %640 = vadd.xlane.f32.xlu1 %v639_v56 }
 0x104   : > { %649 = vadd.xlane.f32.xlu0 %v648_v58  ;;  %646 = vadd.xlane.f32.xlu1 %v645_v59 }
 0x108   : > { %655 = vadd.xlane.f32.xlu0 %v654_v61  ;;  %652 = vadd.xlane.f32.xlu1 %v651_v62 }
 0x10c   : > { %661 = vadd.xlane.f32.xlu0 %v660_v63  ;;  %658 = vadd.xlane.f32.xlu1 %v657_v0 }
 0x110   : > { %667 = vadd.xlane.f32.xlu0 %v666_v2  ;;  %664 = vadd.xlane.f32.xlu1 %v663_v3 }
 0x114   : > { %673 = vadd.xlane.f32.xlu0 %v672_v4  ;;  %670 = vadd.xlane.f32.xlu1 %v669_v6 }
 0x118   : > { %676 = vadd.xlane.f32.xlu1 %v675_v7 }
 0x145   : > { %v584_v9 = vpop.xlane.xlu0 %583 }
 0x146   : > { %v679_v12 = vmul.f32 0.03125, %v584_v9 }
 0x148   : > { %v5531_v15 = vsub.f32 %v5402_v8, %v679_v12 }
 0x149   : > { %v587_v18 = vpop.xlane.xlu1 %586 }
 0x14a   : > { %v680_v21 = vmul.f32 0.03125, %v587_v18  ;;  %v743_v23 = vmul.f32 %v5531_v15, %v5531_v15 }
 0x14c   : > { %v5536_v26 = vsub.f32 %v5408_v11, %v680_v21  ;;  %v775_v29 = vsel %vm581_vm0, %v743_v23, 0.0 }
 0x14d   : > { %v590_v31 = vpop.xlane.xlu1 %589  ;;  %776 = vadd.xlane.f32.xlu0 %v775_v29 }
 0x14e   : > { %v681_v34 = vmul.f32 0.03125, %v590_v31  ;;  %v744_v37 = vmul.f32 %v5536_v26, %v5536_v26 }
 0x150   : > { %v5542_v39 = vsub.f32 %v5414_v14, %v681_v34  ;;  %v778_v8 = vsel %vm581_vm0, %v744_v37, 0.0 }
 0x151   : > { %v593_v42 = vpop.xlane.xlu1 %592  ;;  %779 = vadd.xlane.f32.xlu1 %v778_v8 }
 0x152   : > { %v682_v45 = vmul.f32 0.03125, %v593_v42  ;;  %v745_v11 = vmul.f32 %v5542_v39, %v5542_v39 }
 0x154   : > { %v5548_v47 = vsub.f32 %v5420_v17, %v682_v45  ;;  %v781_v50 = vsel %vm581_vm0, %v745_v11, 0.0 }
 0x155   : > { %782 = vadd.xlane.f32.xlu0 %v781_v50  ;;  %v596_v51 = vpop.xlane.xlu0 %595 }
 0x156   : > { %v683_v53 = vmul.f32 0.03125, %v596_v51  ;;  %v746_v14 = vmul.f32 %v5548_v47, %v5548_v47  ;;  %v4719_v51 = vld [vmem:[%s7585_s2 + $0x8] sm:$0xff]  }
 0x157   : > { %4498 = vmatprep.subr.bf16.mxu0 %v4719_v51 }
 0x158   : > { %v5554_v54 = vsub.f32 %v5424_v19, %v683_v53  ;;  %v784_v55 = vsel %vm581_vm0, %v746_v14, 0.0  ;;  %4499 = vmatpush3.bf16.msra.mxu0 %v4719_v51 }
 0x159   : > { %v599_v56 = vpop.xlane.xlu1 %598  ;;  %785 = vadd.xlane.f32.xlu1 %v784_v55 }
 0x15a   : > { %v684_v58 = vmul.f32 0.03125, %v599_v56  ;;  %v747_v17 = vmul.f32 %v5554_v54, %v5554_v54 }
 0x15c   : > { %v5560_v59 = vsub.f32 %v5430_v22, %v684_v58  ;;  %v787_v61 = vsel %vm581_vm0, %v747_v17, 0.0  ;;  %v4720_v58 = vld [vmem:[%s7585_s2] sm:$0xff]  }
 0x15d   : > { %788 = vadd.xlane.f32.xlu0 %v787_v61  ;;  %v602_v62 = vpop.xlane.xlu0 %601  ;;  %4500 = vmatprep.subr.bf16.mxu0 %v4720_v58 }
 0x15e   : > { %v685_v63 = vmul.f32 0.03125, %v602_v62  ;;  %v748_v19 = vmul.f32 %v5560_v59, %v5560_v59  ;;  %4501 = vmatpush3.bf16.msra.mxu0 %v4720_v58 }
 0x160   : > { %v5566_v0 = vsub.f32 %v5436_v25, %v685_v63  ;;  %v790_v2 = vsel %vm581_vm0, %v748_v19, 0.0 }
 0x161   : > { %v605_v3 = vpop.xlane.xlu1 %604  ;;  %791 = vadd.xlane.f32.xlu1 %v790_v2 }
 0x162   : > { %v686_v4 = vmul.f32 0.03125, %v605_v3  ;;  %v749_v22 = vmul.f32 %v5566_v0, %v5566_v0 }
 0x164   : > { %v5572_v6 = vsub.f32 %v5440_v27, %v686_v4  ;;  %v793_v7 = vsel %vm581_vm0, %v749_v22, 0.0 }
 0x165   : > { %794 = vadd.xlane.f32.xlu0 %v793_v7  ;;  %v608_v9 = vpop.xlane.xlu0 %607 }
 0x166   : > { %v687_v12 = vmul.f32 0.03125, %v608_v9  ;;  %v750_v25 = vmul.f32 %v5572_v6, %v5572_v6 }
 0x168   : > { %v5578_v18 = vsub.f32 %v5446_v30, %v687_v12  ;;  %v796_v21 = vsel %vm581_vm0, %v750_v25, 0.0 }
 0x169   : > { %v611_v23 = vpop.xlane.xlu1 %610  ;;  %797 = vadd.xlane.f32.xlu1 %v796_v21 }
 0x16a   : > { %v688_v29 = vmul.f32 0.03125, %v611_v23  ;;  %v751_v27 = vmul.f32 %v5578_v18, %v5578_v18 }
 0x16c   : > { %v5584_v31 = vsub.f32 %v5452_v33, %v688_v29  ;;  %v799_v34 = vsel %vm581_vm0, %v751_v27, 0.0 }
 0x16d   : > { %800 = vadd.xlane.f32.xlu0 %v799_v34  ;;  %v614_v37 = vpop.xlane.xlu0 %613 }
 0x16e   : > { %v689_v8 = vmul.f32 0.03125, %v614_v37  ;;  %v752_v30 = vmul.f32 %v5584_v31, %v5584_v31 }
 0x170   : > { %v5590_v42 = vsub.f32 %v5456_v35, %v689_v8  ;;  %v802_v45 = vsel %vm581_vm0, %v752_v30, 0.0 }
 0x171   : > { %v617_v11 = vpop.xlane.xlu1 %616  ;;  %803 = vadd.xlane.f32.xlu1 %v802_v45 }
 0x172   : > { %v690_v50 = vmul.f32 0.03125, %v617_v11  ;;  %v753_v33 = vmul.f32 %v5590_v42, %v5590_v42 }
 0x174   : > { %v5599_v53 = vsub.f32 %v5462_v38, %v690_v50  ;;  %v805_v14 = vsel %vm581_vm0, %v753_v33, 0.0 }
 0x175   : > { %806 = vadd.xlane.f32.xlu0 %v805_v14  ;;  %v620_v35 = vpop.xlane.xlu0 %619 }
 0x176   : > { %v691_v55 = vmul.f32 0.03125, %v620_v35  ;;  %v754_v56 = vmul.f32 %v5599_v53, %v5599_v53 }
 0x178   : > { %v5608_v17 = vsub.f32 %v5468_v41, %v691_v55  ;;  %v808_v38 = vsel %vm581_vm0, %v754_v56, 0.0 }
 0x179   : > { %v623_v61 = vpop.xlane.xlu1 %622  ;;  %809 = vadd.xlane.f32.xlu1 %v808_v38 }
 0x17a   : > { %v692_v62 = vmul.f32 0.03125, %v623_v61  ;;  %v755_v63 = vmul.f32 %v5608_v17, %v5608_v17 }
 0x17c   : > { %v5614_v19 = vsub.f32 %v5472_v43, %v692_v62  ;;  %v811_v2 = vsel %vm581_vm0, %v755_v63, 0.0 }
 0x17d   : > { %812 = vadd.xlane.f32.xlu0 %v811_v2  ;;  %v626_v3 = vpop.xlane.xlu0 %625 }
 0x17e   : > { %v693_v4 = vmul.f32 0.03125, %v626_v3  ;;  %v756_v41 = vmul.f32 %v5614_v19, %v5614_v19 }
 0x180   : > { %v5620_v22 = vsub.f32 %v5478_v46, %v693_v4  ;;  %v814_v7 = vsel %vm581_vm0, %v756_v41, 0.0 }
 0x181   : > { %815 = vadd.xlane.f32.xlu1 %v814_v7  ;;  %v629_v9 = vpop.xlane.xlu1 %628  ;;  %v632_v12 = vpop.xlane.xlu0 %631 }
 0x182   : > { %v694_v25 = vmul.f32 0.03125, %v629_v9  ;;  %v695_v21 = vmul.f32 0.03125, %v632_v12  ;;  %v757_v43 = vmul.f32 %v5620_v22, %v5620_v22 }
 0x184   : > { %v5626_v23 = vsub.f32 %v5484_v49, %v694_v25  ;;  %v5629_v29 = vsub.f32 %v5406_v10, %v695_v21  ;;  %v817_v27 = vsel %vm581_vm0, %v757_v43, 0.0 }
 0x185   : > { %v635_v46 = vpop.xlane.xlu1 %634  ;;  %818 = vadd.xlane.f32.xlu0 %v817_v27  ;;  %v638_v34 = vpop.xlane.xlu0 %637 }
 0x186   : > { %v696_v37 = vmul.f32 0.03125, %v635_v46  ;;  %v697_v8 = vmul.f32 0.03125, %v638_v34  ;;  %v758_v30 = vmul.f32 %v5626_v23, %v5626_v23  ;;  %v759_v45 = vmul.f32 %v5629_v29, %v5629_v29 }
 0x188   : > { %v5637_v11 = vsub.f32 %v5412_v13, %v696_v37  ;;  %v5640_v49 = vsub.f32 %v5418_v16, %v697_v8  ;;  %v820_v10 = vsel %vm581_vm0, %v758_v30, 0.0  ;;  %v823_v50 = vsel %vm581_vm0, %v759_v45, 0.0 }
 0x189   : > { %821 = vadd.xlane.f32.xlu1 %v820_v10  ;;  %v641_v33 = vpop.xlane.xlu1 %640  ;;  %824 = vadd.xlane.f32.xlu0 %v823_v50  ;;  %v644_v51 = vpop.xlane.xlu0 %643 }
 0x18a   : > { %v698_v14 = vmul.f32 0.03125, %v641_v33  ;;  %v699_v35 = vmul.f32 0.03125, %v644_v51  ;;  %v760_v55 = vmul.f32 %v5637_v11, %v5637_v11  ;;  %v761_v13 = vmul.f32 %v5640_v49, %v5640_v49 }
 0x18c   : > { %v5649_v56 = vsub.f32 %v5426_v20, %v698_v14  ;;  %v5652_v16 = vsub.f32 %v5434_v24, %v699_v35  ;;  %v826_v58 = vsel %vm581_vm0, %v760_v55, 0.0  ;;  %v829_v38 = vsel %vm581_vm0, %v761_v13, 0.0 }
 0x18d   : > { %827 = vadd.xlane.f32.xlu1 %v826_v58  ;;  %v647_v61 = vpop.xlane.xlu1 %646  ;;  %830 = vadd.xlane.f32.xlu0 %v829_v38  ;;  %v650_v62 = vpop.xlane.xlu0 %649 }
 0x18e   : > { %v700_v63 = vmul.f32 0.03125, %v647_v61  ;;  %v701_v2 = vmul.f32 0.03125, %v650_v62  ;;  %v762_v3 = vmul.f32 %v5649_v56, %v5649_v56  ;;  %v763_v20 = vmul.f32 %v5652_v16, %v5652_v16 }
 0x190   : > { %v5661_v4 = vsub.f32 %v5442_v28, %v700_v63  ;;  %v5664_v24 = vsub.f32 %v5450_v32, %v701_v2  ;;  %v832_v41 = vsel %vm581_vm0, %v762_v3, 0.0  ;;  %v835_v7 = vsel %vm581_vm0, %v763_v20, 0.0 }
 0x191   : > { %833 = vadd.xlane.f32.xlu1 %v832_v41  ;;  %v653_v9 = vpop.xlane.xlu1 %652  ;;  %836 = vadd.xlane.f32.xlu0 %v835_v7  ;;  %v656_v12 = vpop.xlane.xlu0 %655 }
 0x192   : > { %v702_v25 = vmul.f32 0.03125, %v653_v9  ;;  %v703_v21 = vmul.f32 0.03125, %v656_v12  ;;  %v764_v43 = vmul.f32 %v5661_v4, %v5661_v4  ;;  %v765_v28 = vmul.f32 %v5664_v24, %v5664_v24 }
 0x194   : > { %v5673_v27 = vsub.f32 %v5458_v36, %v702_v25  ;;  %v5676_v32 = vsub.f32 %v5466_v40, %v703_v21  ;;  %v838_v46 = vsel %vm581_vm0, %v764_v43, 0.0  ;;  %v841_v34 = vsel %vm581_vm0, %v765_v28, 0.0 }
 0x195   : > { %839 = vadd.xlane.f32.xlu1 %v838_v46  ;;  %v659_v37 = vpop.xlane.xlu1 %658  ;;  %842 = vadd.xlane.f32.xlu0 %v841_v34  ;;  %v662_v8 = vpop.xlane.xlu0 %661 }
 0x196   : > { %v704_v30 = vmul.f32 0.03125, %v659_v37  ;;  %v705_v45 = vmul.f32 0.03125, %v662_v8  ;;  %v766_v10 = vmul.f32 %v5673_v27, %v5673_v27  ;;  %v767_v36 = vmul.f32 %v5676_v32, %v5676_v32 }
 0x198   : > { %v5685_v50 = vsub.f32 %v5474_v44, %v704_v30  ;;  %v5688_v40 = vsub.f32 %v5482_v48, %v705_v45  ;;  %v844_v33 = vsel %vm581_vm0, %v766_v10, 0.0  ;;  %v847_v51 = vsel %vm581_vm0, %v767_v36, 0.0 }
 0x199   : > { %845 = vadd.xlane.f32.xlu1 %v844_v33  ;;  %v665_v14 = vpop.xlane.xlu1 %664  ;;  %848 = vadd.xlane.f32.xlu0 %v847_v51  ;;  %v668_v35 = vpop.xlane.xlu0 %667 }
 0x19a   : > { %v706_v55 = vmul.f32 0.03125, %v665_v14  ;;  %v707_v13 = vmul.f32 0.03125, %v668_v35  ;;  %v768_v58 = vmul.f32 %v5685_v50, %v5685_v50  ;;  %v769_v44 = vmul.f32 %v5688_v40, %v5688_v40 }
 0x19c   : > { %v5697_v38 = vsub.f32 %v5490_v52, %v706_v55  ;;  %v5700_v48 = vsub.f32 %v5500_v57, %v707_v13  ;;  %v850_v61 = vsel %vm581_vm0, %v768_v58, 0.0  ;;  %v853_v62 = vsel %vm581_vm0, %v769_v44, 0.0 }
 0x19d   : > { %851 = vadd.xlane.f32.xlu1 %v850_v61  ;;  %v671_v63 = vpop.xlane.xlu1 %670  ;;  %854 = vadd.xlane.f32.xlu0 %v853_v62  ;;  %v674_v2 = vpop.xlane.xlu0 %673 }
 0x19e   : > { %v708_v3 = vmul.f32 0.03125, %v671_v63  ;;  %v709_v20 = vmul.f32 0.03125, %v674_v2  ;;  %v770_v41 = vmul.f32 %v5697_v38, %v5697_v38  ;;  %v771_v52 = vmul.f32 %v5700_v48, %v5700_v48 }
 0x1a0   : > { %v5709_v7 = vsub.f32 %v5506_v60, %v708_v3  ;;  %v5712_v57 = vsub.f32 %v5516_v1, %v709_v20  ;;  %v856_v9 = vsel %vm581_vm0, %v770_v41, 0.0  ;;  %v859_v12 = vsel %vm581_vm0, %v771_v52, 0.0  ;;  %v5732_v3 = vld [vmem:[%s7589_s6] ss:$0 sm:$0xff] }
 0x1a1   : > { %857 = vadd.xlane.f32.xlu1 %v856_v9  ;;  %v677_v25 = vpop.xlane.xlu1 %676  ;;  %860 = vadd.xlane.f32.xlu0 %v859_v12 }
 0x1a2   : > { %v710_v21 = vmul.f32 0.03125, %v677_v25  ;;  %v772_v43 = vmul.f32 %v5709_v7, %v5709_v7  ;;  %v773_v28 = vmul.f32 %v5712_v57, %v5712_v57 }
 0x1a4   : > { %v5721_v60 = vsub.f32 %v5524_v5, %v710_v21  ;;  %v862_v1 = vsel %vm581_vm0, %v772_v43, 0.0  ;;  %v865_v46 = vsel %vm581_vm0, %v773_v28, 0.0  ;;  %v5739_v21 = vld [vmem:[%s7590_s7] ss:$0 sm:$0xff] }
 0x1a5   : > { %863 = vadd.xlane.f32.xlu1 %v862_v1  ;;  %866 = vadd.xlane.f32.xlu0 %v865_v46 }
 0x1a6   : > { %v774_v34 = vmul.f32 %v5721_v60, %v5721_v60 }
 0x1a8   : > { %v868_v37 = vsel %vm581_vm0, %v774_v34, 0.0 }
 0x1a9   : > { %869 = vadd.xlane.f32.xlu1 %v868_v37 }
 0x1d6   : > { %v777_v8 = vpop.xlane.xlu0 %776 }
 0x1d7   : > { %v871_v30 = vmul.f32 0.03125, %v777_v8 }
 0x1d9   : > { %v903_v45 = vadd.f32 1e-05, %v871_v30 }
 0x1da   : > { %v780_v10 = vpop.xlane.xlu1 %779 }
 0x1db   : > { %4733 = vrsqrt.f32 %v903_v45  ;;  %v872_v36 = vmul.f32 0.03125, %v780_v10 }
 0x1dd   : > { %v904_v5 = vadd.f32 1e-05, %v872_v36 }
 0x1de   : > { %v783_v33 = vpop.xlane.xlu0 %782 }
 0x1df   : > { %4735 = vrsqrt.f32 %v904_v5  ;;  %v873_v51 = vmul.f32 0.03125, %v783_v33 }
 0x1e1   : > { %v905_v14 = vadd.f32 1e-05, %v873_v51 }
 0x1e2   : > { %v786_v35 = vpop.xlane.xlu1 %785 }
 0x1e3   : > { %4737 = vrsqrt.f32 %v905_v14  ;;  %v874_v55 = vmul.f32 0.03125, %v786_v35 }
 0x1e5   : > { %v906_v13 = vadd.f32 1e-05, %v874_v55 }
 0x1e6   : > { %v789_v58 = vpop.xlane.xlu0 %788 }
 0x1e7   : > { %4739 = vrsqrt.f32 %v906_v13  ;;  %v875_v44 = vmul.f32 0.03125, %v789_v58 }
 0x1e8   : > { %v4734_v61 = vpop.eup %4733 }
 0x1e9   : > { %v907_v62 = vadd.f32 1e-05, %v875_v44  ;;  %v967_v63 = vmul.f32 %v4734_v61, %v5531_v15 }
 0x1ea   : > { %v792_v2 = vpop.xlane.xlu1 %791 }
 0x1eb   : > { %4741 = vrsqrt.f32 %v907_v62  ;;  %v876_v20 = vmul.f32 0.03125, %v792_v2  ;;  %v1005_v12 = vmul.f32 %v5732_v3, %v967_v63 }
 0x1ec   : > { %v4736_v41 = vpop.eup %4735 }
 0x1ed   : > { %v908_v52 = vadd.f32 1e-05, %v876_v20  ;;  %v968_v9 = vmul.f32 %v4736_v41, %v5536_v26  ;;  %v5743_v46 = vadd.f32 %v5739_v21, %v1005_v12 }
 0x1ee   : > { %v795_v25 = vpop.xlane.xlu0 %794 }
 0x1ef   : > { %4743 = vrsqrt.f32 %v908_v52  ;;  %v877_v15 = vmul.f32 0.03125, %v795_v25  ;;  %v1006_v43 = vmul.f32 %v5732_v3, %v968_v9  ;;  %7670 = vst [vmem:[#allocation14_spill] sm:$0xff] %v5743_v46 }
 0x1f0   : > { %v4738_v28 = vpop.eup %4737 }
 0x1f1   : > { %v909_v1 = vadd.f32 1e-05, %v877_v15  ;;  %v5746_v34 = vadd.f32 %v5739_v21, %v1006_v43  ;;  %v969_v26 = vmul.f32 %v4738_v28, %v5542_v39 }
 0x1f2   : > { %v798_v37 = vpop.xlane.xlu1 %797 }
 0x1f3   : > { %7671 = vst [vmem:[#allocation15_spill] sm:$0xff] %v5746_v34  ;;  %4745 = vrsqrt.f32 %v909_v1  ;;  %v878_v8 = vmul.f32 0.03125, %v798_v37  ;;  %v1075_v30 = vpack.c.bf16 %v5746_v34, %v5743_v46  ;;  %v1007_v5 = vmul.f32 %v5732_v3, %v969_v26 }
 0x1f4   : > { %v4740_v45 = vpop.eup %4739 }
 0x1f5   : > { %v910_v10 = vadd.f32 1e-05, %v878_v8  ;;  %4502 = vmatprep.mubr.msk.bf16.mxu0 %vm581_vm0, %v1075_v30  ;;  %v970_v36 = vmul.f32 %v4740_v45, %v5548_v47  ;;  %v5756_v55 = vadd.f32 %v5739_v21, %v1007_v5 }
 0x1f6   : > { %v801_v33 = vpop.xlane.xlu0 %800 }
 0x1f7   : > { %4747 = vrsqrt.f32 %v910_v10  ;;  %v879_v51 = vmul.f32 0.03125, %v801_v33  ;;  %v1008_v14 = vmul.f32 %v5732_v3, %v970_v36  ;;  %7672 = vst [vmem:[#allocation16_spill] sm:$0xff] %v5756_v55 }
 0x1f8   : > { %v4742_v39 = vpop.eup %4741 }
 0x1f9   : > { %v911_v35 = vadd.f32 1e-05, %v879_v51  ;;  %v5759_v13 = vadd.f32 %v5739_v21, %v1008_v14  ;;  %v971_v58 = vmul.f32 %v4742_v39, %v5554_v54 }
 0x1fa   : > { %v804_v44 = vpop.xlane.xlu1 %803 }
 0x1fb   : > { %7673 = vst [vmem:[#allocation17_spill] sm:$0xff] %v5759_v13  ;;  %4749 = vrsqrt.f32 %v911_v35  ;;  %v880_v47 = vmul.f32 0.03125, %v804_v44  ;;  %v1076_v61 = vpack.c.bf16 %v5759_v13, %v5756_v55  ;;  %v1009_v20 = vmul.f32 %v5732_v3, %v971_v58 }
 0x1fc   : > { %v4744_v62 = vpop.eup %4743 }
 0x1fd   : > { %v912_v63 = vadd.f32 1e-05, %v880_v47  ;;  %4503 = vmatmul.mubr.msk.bf16.vlgmr.msra.gmra.mxu0 %vm581_vm0, %v1076_v61  ;;  %v972_v2 = vmul.f32 %v4744_v62, %v5560_v59  ;;  %v5769_v25 = vadd.f32 %v5739_v21, %v1009_v20 }
 0x1fe   : > { %v807_v41 = vpop.xlane.xlu0 %806 }
 0x1ff   : > { %4751 = vrsqrt.f32 %v912_v63  ;;  %v881_v52 = vmul.f32 0.03125, %v807_v41  ;;  %v1010_v9 = vmul.f32 %v5732_v3, %v972_v2  ;;  %7674 = vst [vmem:[#allocation18_spill] sm:$0xff] %v5769_v25 }
 0x200   : > { %v4746_v54 = vpop.eup %4745 }
 0x201   : > { %v913_v12 = vadd.f32 1e-05, %v881_v52  ;;  %v5772_v15 = vadd.f32 %v5739_v21, %v1010_v9  ;;  %v973_v43 = vmul.f32 %v4746_v54, %v5566_v0 }
 0x202   : > { %v810_v28 = vpop.xlane.xlu1 %809 }
 0x203   : > { %7675 = vst [vmem:[#allocation19_spill] sm:$0xff] %v5772_v15  ;;  %4753 = vrsqrt.f32 %v913_v12  ;;  %v882_v59 = vmul.f32 0.03125, %v810_v28  ;;  %v1077_v1 = vpack.c.bf16 %v5772_v15, %v5769_v25  ;;  %v1011_v30 = vmul.f32 %v5732_v3, %v973_v43 }
 0x204   : > { %v4748_v26 = vpop.eup %4747 }
 0x205   : > { %v914_v37 = vadd.f32 1e-05, %v882_v59  ;;  %4506 = vmatprep.mubr.msk.bf16.mxu0 %vm581_vm0, %v1077_v1  ;;  %v974_v8 = vmul.f32 %v4748_v26, %v5572_v6  ;;  %v5782_v33 = vadd.f32 %v5739_v21, %v1011_v30 }
 0x206   : > { %v813_v45 = vpop.xlane.xlu0 %812 }
 0x207   : > { %4755 = vrsqrt.f32 %v914_v37  ;;  %v883_v10 = vmul.f32 0.03125, %v813_v45  ;;  %v1012_v36 = vmul.f32 %v5732_v3, %v974_v8  ;;  %7676 = vst [vmem:[#allocation20_spill] sm:$0xff] %v5782_v33 }
 0x208   : > { %v4750_v0 = vpop.eup %4749 }
 0x209   : > { %v915_v5 = vadd.f32 1e-05, %v883_v10  ;;  %v5785_v51 = vadd.f32 %v5739_v21, %v1012_v36  ;;  %v975_v14 = vmul.f32 %v4750_v0, %v5578_v18 }
 0x20a   : > { %v816_v39 = vpop.xlane.xlu1 %815 }
 0x20b   : > { %7677 = vst [vmem:[#allocation21_spill] sm:$0xff] %v5785_v51  ;;  %4757 = vrsqrt.f32 %v915_v5  ;;  %v884_v6 = vmul.f32 0.03125, %v816_v39  ;;  %v1078_v35 = vpack.c.bf16 %v5785_v51, %v5782_v33  ;;  %v1013_v61 = vmul.f32 %v5732_v3, %v975_v14 }
 0x20c   : > { %v4752_v58 = vpop.eup %4751 }
 0x20d   : > { %v916_v44 = vadd.f32 1e-05, %v884_v6  ;;  %4507 = vmatmul.mubr.msk.bf16.gmra.mxu0 %vm581_vm0, %v1078_v35  ;;  %v976_v47 = vmul.f32 %v4752_v58, %v5584_v31  ;;  %v5795_v41 = vadd.f32 %v5739_v21, %v1013_v61 }
 0x20e   : > { %v819_v62 = vpop.xlane.xlu0 %818 }
 0x20f   : > { %4759 = vrsqrt.f32 %v916_v44  ;;  %v885_v63 = vmul.f32 0.03125, %v819_v62  ;;  %v1014_v2 = vmul.f32 %v5732_v3, %v976_v47  ;;  %7678 = vst [vmem:[#allocation22_spill] sm:$0xff] %v5795_v41 }
 0x210   : > { %v4754_v18 = vpop.eup %4753 }
 0x211   : > { %v917_v20 = vadd.f32 1e-05, %v885_v63  ;;  %v5798_v52 = vadd.f32 %v5739_v21, %v1014_v2  ;;  %v977_v9 = vmul.f32 %v4754_v18, %v5590_v42 }
 0x212   : > { %v822_v54 = vpop.xlane.xlu1 %821  ;;  %v825_v12 = vpop.xlane.xlu0 %824 }
 0x213   : > { %7679 = vst [vmem:[#allocation23_spill] sm:$0xff] %v5798_v52  ;;  %4761 = vrsqrt.f32 %v917_v20  ;;  %v886_v31 = vmul.f32 0.03125, %v822_v54  ;;  %v887_v43 = vmul.f32 0.03125, %v825_v12  ;;  %v1079_v28 = vpack.c.bf16 %v5798_v52, %v5795_v41 }
 0x214   : > { %v4756_v59 = vpop.eup %4755  ;;  %v1015_v1 = vmul.f32 %v5732_v3, %v977_v9 }
 0x215   : > { %v918_v26 = vadd.f32 1e-05, %v886_v31  ;;  %v919_v37 = vadd.f32 1e-05, %v887_v43  ;;  %4510 = vmatprep.mubr.msk.bf16.mxu0 %vm581_vm0, %v1079_v28  ;;  %v978_v8 = vmul.f32 %v4756_v59, %v5599_v53 }
 0x216   : > { %v828_v30 = vpop.xlane.xlu1 %827  ;;  %v831_v45 = vpop.xlane.xlu0 %830  ;;  %v5808_v5 = vadd.f32 %v5739_v21, %v1015_v1 }
 0x217   : > { %4763 = vrsqrt.f32 %v918_v26  ;;  %v888_v42 = vmul.f32 0.03125, %v828_v30  ;;  %v889_v10 = vmul.f32 0.03125, %v831_v45  ;;  %v1016_v36 = vmul.f32 %v5732_v3, %v978_v8 }
 0x218   : > { %v4758_v0 = vpop.eup %4757  ;;  %4765 = vrsqrt.f32 %v919_v37  ;;  %7680 = vst [vmem:[#allocation24_spill] sm:$0xff] %v5808_v5 }
 0x219   : > { %v920_v14 = vadd.f32 1e-05, %v888_v42  ;;  %v921_v39 = vadd.f32 1e-05, %v889_v10  ;;  %v5811_v6 = vadd.f32 %v5739_v21, %v1016_v36  ;;  %v979_v35 = vmul.f32 %v4758_v0, %v5608_v17 }
 0x21a   : > { %v834_v53 = vpop.xlane.xlu1 %833  ;;  %v837_v58 = vpop.xlane.xlu0 %836 }
 0x21b   : > { %7681 = vst [vmem:[#allocation25_spill] sm:$0xff] %v5811_v6  ;;  %4767 = vrsqrt.f32 %v920_v14  ;;  %v890_v44 = vmul.f32 0.03125, %v834_v53  ;;  %v891_v47 = vmul.f32 0.03125, %v837_v58  ;;  %v1080_v61 = vpack.c.bf16 %v5811_v6, %v5808_v5 }
 0x21c   : > { %v4760_v62 = vpop.eup %4759  ;;  %4769 = vrsqrt.f32 %v921_v39  ;;  %v1017_v63 = vmul.f32 %v5732_v3, %v979_v35 }
 0x21d   : > { %v922_v2 = vadd.f32 1e-05, %v890_v44  ;;  %v923_v18 = vadd.f32 1e-05, %v891_v47  ;;  %4511 = vmatmul.mubr.msk.bf16.gmra.mxu0 %vm581_vm0, %v1080_v61  ;;  %v980_v20 = vmul.f32 %v4760_v62, %v5614_v19 }
 0x21e   : > { %v840_v9 = vpop.xlane.xlu1 %839  ;;  %v843_v17 = vpop.xlane.xlu0 %842  ;;  %v5821_v28 = vadd.f32 %v5739_v21, %v1017_v63 }
 0x21f   : > { %4771 = vrsqrt.f32 %v922_v2  ;;  %v892_v54 = vmul.f32 0.03125, %v840_v9  ;;  %v893_v12 = vmul.f32 0.03125, %v843_v17  ;;  %v1018_v31 = vmul.f32 %v5732_v3, %v980_v20 }
 0x220   : > { %v4762_v43 = vpop.eup %4761  ;;  %4773 = vrsqrt.f32 %v923_v18  ;;  %7682 = vst [vmem:[#allocation26_spill] sm:$0xff] %v5821_v28 }
 0x221   : > { %v924_v59 = vadd.f32 1e-05, %v892_v54  ;;  %v925_v1 = vadd.f32 1e-05, %v893_v12  ;;  %v5824_v26 = vadd.f32 %v5739_v21, %v1018_v31  ;;  %v981_v37 = vmul.f32 %v4762_v43, %v5620_v22 }
 0x222   : > { %v846_v19 = vpop.xlane.xlu1 %845  ;;  %v849_v8 = vpop.xlane.xlu0 %848 }
 0x223   : > { %7683 = vst [vmem:[#allocation27_spill] sm:$0xff] %v5824_v26  ;;  %4775 = vrsqrt.f32 %v924_v59  ;;  %v894_v30 = vmul.f32 0.03125, %v846_v19  ;;  %v895_v45 = vmul.f32 0.03125, %v849_v8  ;;  %v1081_v42 = vpack.c.bf16 %v5824_v26, %v5821_v28 }
 0x224   : > { %v4764_v10 = vpop.eup %4763  ;;  %4777 = vrsqrt.f32 %v925_v1  ;;  %v1019_v36 = vmul.f32 %v5732_v3, %v981_v37 }
 0x225   : > { %v4766_v0 = vpop.eup %4765  ;;  %v926_v14 = vadd.f32 1e-05, %v894_v30  ;;  %v927_v39 = vadd.f32 1e-05, %v895_v45  ;;  %4514 = vmatprep.mubr.msk.bf16.mxu0 %vm581_vm0, %v1081_v42  ;;  %v982_v35 = vmul.f32 %v4764_v10, %v5626_v23 }
 0x226   : > { %v852_v22 = vpop.xlane.xlu1 %851  ;;  %v855_v53 = vpop.xlane.xlu0 %854  ;;  %v983_v58 = vmul.f32 %v4766_v0, %v5629_v29  ;;  %v5835_v63 = vadd.f32 %v5739_v21, %v1019_v36 }
 0x227   : > { %4779 = vrsqrt.f32 %v926_v14  ;;  %v896_v44 = vmul.f32 0.03125, %v852_v22  ;;  %v897_v47 = vmul.f32 0.03125, %v855_v53  ;;  %v1020_v61 = vmul.f32 %v5732_v3, %v982_v35 }
 0x228   : > { %v4768_v62 = vpop.eup %4767  ;;  %4781 = vrsqrt.f32 %v927_v39  ;;  %7684 = vst [vmem:[#allocation28_spill] sm:$0xff] %v5835_v63  ;;  %v1021_v54 = vmul.f32 %v5732_v3, %v983_v58 }
 0x229   : > { %v4770_v2 = vpop.eup %4769  ;;  %v928_v18 = vadd.f32 1e-05, %v896_v44  ;;  %v929_v20 = vadd.f32 1e-05, %v897_v47  ;;  %v5838_v9 = vadd.f32 %v5739_v21, %v1020_v61  ;;  %v984_v23 = vmul.f32 %v4768_v62, %v5637_v11 }
 0x22a   : > { %v858_v17 = vpop.xlane.xlu1 %857  ;;  %v861_v29 = vpop.xlane.xlu0 %860  ;;  %v985_v12 = vmul.f32 %v4770_v2, %v5640_v49  ;;  %v5850_v10 = vadd.f32 %v5739_v21, %v1021_v54 }
 0x22b   : > { %7685 = vst [vmem:[#allocation29_spill] sm:$0xff] %v5838_v9  ;;  %4783 = vrsqrt.f32 %v928_v18  ;;  %v898_v31 = vmul.f32 0.03125, %v858_v17  ;;  %v899_v43 = vmul.f32 0.03125, %v861_v29  ;;  %v1082_v59 = vpack.c.bf16 %v5838_v9, %v5835_v63 }
 0x22c   : > { %v4772_v1 = vpop.eup %4771  ;;  %4785 = vrsqrt.f32 %v929_v20  ;;  %v1022_v37 = vmul.f32 %v5732_v3, %v984_v23  ;;  %v1023_v19 = vmul.f32 %v5732_v3, %v985_v12  ;;  %7686 = vst [vmem:[#allocation30_spill] sm:$0xff] %v5850_v10 }
 0x22d   : > { %v4774_v8 = vpop.eup %4773  ;;  %v930_v11 = vadd.f32 1e-05, %v898_v31  ;;  %v931_v30 = vadd.f32 1e-05, %v899_v43  ;;  %4515 = vmatmul.mubr.msk.bf16.gmra.mxu0 %vm581_vm0, %v1082_v59  ;;  %v986_v45 = vmul.f32 %v4772_v1, %v5649_v56 }
 0x22e   : > { %v864_v49 = vpop.xlane.xlu1 %863  ;;  %v867_v42 = vpop.xlane.xlu0 %866  ;;  %v5853_v36 = vadd.f32 %v5739_v21, %v1022_v37  ;;  %v987_v0 = vmul.f32 %v4774_v8, %v5652_v16  ;;  %v5860_v53 = vadd.f32 %v5739_v21, %v1023_v19 }
 0x22f   : > { %4787 = vrsqrt.f32 %v930_v11  ;;  %v900_v14 = vmul.f32 0.03125, %v864_v49  ;;  %v901_v39 = vmul.f32 0.03125, %v867_v42  ;;  %v1024_v35 = vmul.f32 %v5732_v3, %v986_v45 }
 0x230   : > { %7687 = vst [vmem:[#allocation31_spill] sm:$0xff] %v5853_v36  ;;  %v4776_v22 = vpop.eup %4775  ;;  %4789 = vrsqrt.f32 %v931_v30  ;;  %v1083_v56 = vpack.c.bf16 %v5853_v36, %v5850_v10  ;;  %7688 = vst [vmem:[#allocation32_spill] sm:$0xff] %v5860_v53  ;;  %v1025_v58 = vmul.f32 %v5732_v3, %v987_v0 }
 0x231   : > { %v4778_v44 = vpop.eup %4777  ;;  %v932_v47 = vadd.f32 1e-05, %v900_v14  ;;  %v933_v61 = vadd.f32 1e-05, %v901_v39  ;;  %v5864_v16 = vadd.f32 %v5739_v21, %v1024_v35  ;;  %v988_v62 = vmul.f32 %v4776_v22, %v5661_v4 }
 0x232   : > { %4518 = vmatprep.mubr.msk.bf16.mxu0 %vm581_vm0, %v1083_v56  ;;  %v870_v2 = vpop.xlane.xlu1 %869  ;;  %v989_v18 = vmul.f32 %v4778_v44, %v5664_v24  ;;  %v5873_v54 = vadd.f32 %v5739_v21, %v1025_v58 }
 0x233   : > { %7689 = vst [vmem:[#allocation33_spill] sm:$0xff] %v5864_v16  ;;  %4791 = vrsqrt.f32 %v932_v47  ;;  %v902_v20 = vmul.f32 0.03125, %v870_v2  ;;  %v1084_v23 = vpack.c.bf16 %v5864_v16, %v5860_v53  ;;  %v1026_v17 = vmul.f32 %v5732_v3, %v988_v62 }
 0x234   : > { %v4780_v29 = vpop.eup %4779  ;;  %4793 = vrsqrt.f32 %v933_v61  ;;  %7690 = vst [vmem:[#allocation34_spill] sm:$0xff] %v5873_v54  ;;  %v1027_v43 = vmul.f32 %v5732_v3, %v989_v18 }
 0x235   : > { %v4782_v12 = vpop.eup %4781  ;;  %v934_v31 = vadd.f32 1e-05, %v902_v20  ;;  %4519 = vmatmul.mubr.msk.bf16.gmra.mxu0 %vm581_vm0, %v1084_v23  ;;  %v5877_v4 = vadd.f32 %v5739_v21, %v1026_v17  ;;  %v990_v24 = vmul.f32 %v4780_v29, %v5673_v27 }
 0x236   : > { %v991_v59 = vmul.f32 %v4782_v12, %v5676_v32  ;;  %v5887_v11 = vadd.f32 %v5739_v21, %v1027_v43 }
 0x237   : > { %7691 = vst [vmem:[#allocation35_spill] sm:$0xff] %v5877_v4  ;;  %4795 = vrsqrt.f32 %v934_v31  ;;  %v1085_v1 = vpack.c.bf16 %v5877_v4, %v5873_v54  ;;  %v1028_v37 = vmul.f32 %v5732_v3, %v990_v24 }
 0x238   : > { %v4784_v19 = vpop.eup %4783  ;;  %7692 = vst [vmem:[#allocation36_spill] sm:$0xff] %v5887_v11  ;;  %v1029_v32 = vmul.f32 %v5732_v3, %v991_v59 }
 0x239   : > { %v4786_v8 = vpop.eup %4785  ;;  %4522 = vmatprep.mubr.msk.bf16.mxu0 %vm581_vm0, %v1085_v1  ;;  %v5890_v30 = vadd.f32 %v5739_v21, %v1028_v37  ;;  %v992_v27 = vmul.f32 %v4784_v19, %v5685_v50  ;;  %v5949_v1 = vld [vmem:[%s7586_s3] ss:$0 sm:$0xff] }
 0x23a   : > { %v993_v45 = vmul.f32 %v4786_v8, %v5688_v40  ;;  %v5900_v39 = vadd.f32 %v5739_v21, %v1029_v32 }
 0x23b   : > { %7693 = vst [vmem:[#allocation37_spill] sm:$0xff] %v5890_v30  ;;  %v1086_v49 = vpack.c.bf16 %v5890_v30, %v5887_v11  ;;  %v1030_v42 = vmul.f32 %v5732_v3, %v992_v27 }
 0x23c   : > { %v4788_v0 = vpop.eup %4787  ;;  %7694 = vst [vmem:[#allocation38_spill] sm:$0xff] %v5900_v39  ;;  %v1031_v22 = vmul.f32 %v5732_v3, %v993_v45 }
 0x23d   : > { %v4790_v14 = vpop.eup %4789  ;;  %4523 = vmatmul.mubr.msk.bf16.gmra.mxu0 %vm581_vm0, %v1086_v49  ;;  %v5903_v35 = vadd.f32 %v5739_v21, %v1030_v42  ;;  %v994_v50 = vmul.f32 %v4788_v0, %v5697_v38 }
 0x23e   : > { %v995_v40 = vmul.f32 %v4790_v14, %v5700_v48  ;;  %v5913_v61 = vadd.f32 %v5739_v21, %v1031_v22 }
 0x23f   : > { %7695 = vst [vmem:[#allocation39_spill] sm:$0xff] %v5903_v35  ;;  %v1087_v56 = vpack.c.bf16 %v5903_v35, %v5900_v39  ;;  %v1032_v58 = vmul.f32 %v5732_v3, %v994_v50 }
 0x240   : > { %v4792_v44 = vpop.eup %4791  ;;  %7696 = vst [vmem:[#allocation40_spill] sm:$0xff] %v5913_v61  ;;  %v1033_v2 = vmul.f32 %v5732_v3, %v995_v40 }
 0x241   : > { %v4794_v47 = vpop.eup %4793  ;;  %4526 = vmatprep.mubr.msk.bf16.mxu0 %vm581_vm0, %v1087_v56  ;;  %v5916_v62 = vadd.f32 %v5739_v21, %v1032_v58  ;;  %v996_v38 = vmul.f32 %v4792_v44, %v5709_v7 }
 0x242   : > { %v997_v48 = vmul.f32 %v4794_v47, %v5712_v57  ;;  %v5926_v17 = vadd.f32 %v5739_v21, %v1033_v2 }
 0x243   : > { %7697 = vst [vmem:[#allocation41_spill] sm:$0xff] %v5916_v62  ;;  %v1088_v18 = vpack.c.bf16 %v5916_v62, %v5913_v61  ;;  %v1034_v20 = vmul.f32 %v5732_v3, %v996_v38 }
 0x244   : > { %v4796_v23 = vpop.eup %4795  ;;  %7698 = vst [vmem:[#allocation42_spill] sm:$0xff] %v5926_v17  ;;  %v1035_v12 = vmul.f32 %v5732_v3, %v997_v48 }
 0x245   : > { %4527 = vmatmul.mubr.msk.bf16.gmra.mxu0 %vm581_vm0, %v1088_v18  ;;  %v5929_v29 = vadd.f32 %v5739_v21, %v1034_v20  ;;  %v998_v7 = vmul.f32 %v4796_v23, %v5721_v60 }
 0x246   : > { %v5938_v24 = vadd.f32 %v5739_v21, %v1035_v12 }
 0x247   : > { %7699 = vst [vmem:[#allocation43_spill] sm:$0xff] %v5929_v29  ;;  %v1089_v57 = vpack.c.bf16 %v5929_v29, %v5926_v17  ;;  %v1036_v31 = vmul.f32 %v5732_v3, %v998_v7 }
 0x248   : > { %7700 = vst [vmem:[#allocation44_spill] sm:$0xff] %v5938_v24 }
 0x249   : > { %4530 = vmatprep.mubr.msk.bf16.mxu0 %vm581_vm0, %v1089_v57  ;;  %v5941_v43 = vadd.f32 %v5739_v21, %v1036_v31 }
 0x24b   : > { %7701 = vst [vmem:[#allocation45_spill] sm:$0xff] %v5941_v43  ;;  %v1090_v59 = vpack.c.bf16 %v5941_v43, %v5938_v24 }
 0x24d   : > { %4531 = vmatmul.mubr.msk.bf16.gmra.mxu0 %vm581_vm0, %v1090_v59 }
 0x2bd   : > { %v4504_v60 = vpop.f32.mrf.mxu0 }
 0x2be   : > { %v1205_v19 = vadd.f32 %v4504_v60, %v5949_v1 }
 0x2bf   : > { %v1196_v3 = vpop.f32.mrf.mxu0 }
 0x2c0   : > { %v1197_v21 = vadd.f32 %v5949_v1, %v1196_v3 }
 0x2c1   : > { %v4505_v37 = vpop.f32.mrf.mxu0 }
 0x2c2   : > { %v1208_v8 = vadd.f32 %v4505_v37, %v5949_v1 }
 0x2c3   : > { %v1199_v27 = vpop.f32.mrf.mxu0 }
 0x2c4   : > { %v5954_v32 = vpack.c.bf16 %v1208_v8, %v1205_v19  ;;  %v1200_v45 = vadd.f32 %v5949_v1, %v1199_v27 }
 0x2c6   : > { %v5957_v49 = vpack.c.bf16 %v1200_v45, %v1197_v21 }
 0x2c8   : > { %4294 = vmatprep.mubr.msk.bf16.mxu1 %vm581_vm0, %v5957_v49 }
 0x2cd   : > { %v4508_v42 = vpop.f32.mrf.mxu0 }
 0x2ce   : > { %v1221_v50 = vadd.f32 %v4508_v42, %v5949_v1 }
 0x2cf   : > { %v5961_v0 = vpop.f32.mrf.mxu0 }
 0x2d1   : > { %v4509_v14 = vpop.f32.mrf.mxu0 }
 0x2d2   : > { %v1224_v22 = vadd.f32 %v4509_v14, %v5949_v1 }
 0x2d3   : > { %v1215_v56 = vpop.f32.mrf.mxu0 }
 0x2d4   : > { %v5965_v40 = vpack.c.bf16 %v1224_v22, %v1221_v50 }
 0x2dd   : > { %v4512_v58 = vpop.f32.mrf.mxu0 }
 0x2df   : > { %v1228_v44 = vpop.f32.mrf.mxu0 }
 0x2e1   : > { %v4513_v47 = vpop.f32.mrf.mxu0 }
 0x2e3   : > { %v1231_v38 = vpop.f32.mrf.mxu0 }
 0x2ed   : > { %v4516_v2 = vpop.f32.mrf.mxu0 }
 0x2ee   : > { %v1253_v20 = vadd.f32 %v4516_v2, %v5949_v1 }
 0x2ef   : > { %v1244_v48 = vpop.f32.mrf.mxu0 }
 0x2f0   : > { %v1245_v17 = vadd.f32 %v5949_v1, %v1244_v48 }
 0x2f1   : > { %v4517_v18 = vpop.f32.mrf.mxu0 }
 0x2f2   : > { %v1256_v23 = vadd.f32 %v4517_v18, %v5949_v1 }
 0x2f3   : > { %v1247_v7 = vpop.f32.mrf.mxu0 }
 0x2f4   : > { %v5969_v12 = vpack.c.bf16 %v1256_v23, %v1253_v20  ;;  %v1248_v23 = vadd.f32 %v5949_v1, %v1247_v7 }
 0x2f5   : > { %v4520_v57 = vpop.f32.mrf.mxu0 }
 0x2f6   : > { %1380 = vrot.lane.b32.xlu0 %v5969_v12, %s5215_s23 }
 0x2f7   : > { %v1260_v31 = vpop.f32.mrf.mxu0 }
 0x2f9   : > { %v4521_v59 = vpop.f32.mrf.mxu0 }
 0x2fb   : > { %v1263_v60 = vpop.f32.mrf.mxu0 }
 0x2fd   : > { %v4524_v3 = vpop.f32.mrf.mxu0 }
 0x2ff   : > { %v1276_v37 = vpop.f32.mrf.mxu0 }
 0x301   : > { %v4525_v19 = vpop.f32.mrf.mxu0 }
 0x303   : > { %v1279_v8 = vpop.f32.mrf.mxu0 }
 0x305   : > { %v4528_v27 = vpop.f32.mrf.mxu0 }
 0x306   : > { %v1301_v7 = vadd.f32 %v4528_v27, %v5949_v1 }
 0x307   : > { %v1292_v21 = vpop.f32.mrf.mxu0 }
 0x309   : > { %v4529_v45 = vpop.f32.mrf.mxu0 }
 0x30a   : > { %v1304_v62 = vadd.f32 %v4529_v45, %v5949_v1  ;;  %v1285_v45 = vadd.f32 %v4524_v3, %v5949_v1  ;;  %v1213_v3 = vadd.f32 %v5949_v1, %v5961_v0  ;;  %v1261_v0 = vadd.f32 %v5949_v1, %v1260_v31 }
 0x30b   : > { %v1295_v42 = vpop.f32.mrf.mxu0 }
 0x30c   : > { %v1296_v48 = vadd.f32 %v5949_v1, %v1295_v42  ;;  %v1272_v42 = vadd.f32 %v4521_v59, %v5949_v1 }
 0x30d   : > { %v4532_v14 = vpop.f32.mrf.mxu0 }
 0x30e   : > { %v1317_v2 = vadd.f32 %v4532_v14, %v5949_v1  ;;  %v1240_v14 = vadd.f32 %v4513_v47, %v5949_v1  ;;  %v1229_v47 = vadd.f32 %v5949_v1, %v1228_v44  ;;  %v1216_v44 = vadd.f32 %v5949_v1, %v1215_v56 }
 0x30f   : > { %v1308_v50 = vpop.f32.mrf.mxu0 }
 0x310   : > { %v1309_v43 = vadd.f32 %v5949_v1, %v1308_v50  ;;  %v1237_v50 = vadd.f32 %v4512_v58, %v5949_v1  ;;  %v1288_v58 = vadd.f32 %v4525_v19, %v5949_v1  ;;  %v1277_v19 = vadd.f32 %v5949_v1, %v1276_v37 }
 0x311   : > { %v4533_v22 = vpop.f32.mrf.mxu0  ;;  %v1264_v37 = vadd.f32 %v5949_v1, %v1263_v60 }
 0x312   : > { %v1320_v18 = vadd.f32 %v4533_v22, %v5949_v1  ;;  %v5987_v22 = vpack.c.bf16 %v1248_v23, %v1245_v17  ;;  %v1293_v17 = vadd.f32 %v5949_v1, %v1292_v21  ;;  %v1280_v21 = vadd.f32 %v5949_v1, %v1279_v8 }
 0x313   : > { %v1311_v20 = vpop.f32.mrf.mxu0  ;;  %v6031_v8 = vpack.c.bf16 %v1216_v44, %v1213_v3  ;;  %v6044_v59 = vpack.c.bf16 %v1264_v37, %v1261_v0 }
 0x314   : > { %v5977_v29 = vpack.c.bf16 %v1320_v18, %v1317_v2  ;;  %v1312_v24 = vadd.f32 %v5949_v1, %v1311_v20  ;;  %v5993_v2 = vpack.c.bf16 %v1304_v62, %v1301_v7  ;;  %v6006_v62 = vpack.c.bf16 %v1296_v48, %v1293_v17 }
 0x315   : > { %v6027_v18 = vpack.c.bf16 %v1280_v21, %v1277_v19  ;;  %v1269_v20 = vadd.f32 %v4520_v57, %v5949_v1 }
 0x316   : > { %v5982_v35 = vpack.c.bf16 %v1312_v24, %v1309_v43  ;;  %1396 = vrot.lane.b32.xlu1 %v5977_v29, %s5215_s23  ;;  %v5998_v24 = vpack.c.bf16 %v1240_v14, %v1237_v50  ;;  %v1232_v43 = vadd.f32 %v5949_v1, %v1231_v38  ;;  %v6015_v38 = vpack.c.bf16 %v1288_v58, %v1285_v45 }
 0x317   : > { %v6036_v56 = vpack.c.bf16 %v1272_v42, %v1269_v20 }
 0x318   : > { %1394 = vrot.lane.b32.xlu0 %v5982_v35, %s5215_s23  ;;  %v6010_v27 = vpack.c.bf16 %v1232_v43, %v1229_v47 }
 0x31a   : > { %1378 = vrot.lane.b32.xlu1 %v5987_v22, %s5215_s23 }
 0x31c   : > { %1392 = vrot.lane.b32.xlu0 %v5993_v2, %s5215_s23 }
 0x31e   : > { %1376 = vrot.lane.b32.xlu1 %v5998_v24, %s5215_s23 }
 0x320   : > { %1390 = vrot.lane.b32.xlu0 %v6006_v62, %s5215_s23 }
 0x322   : > { %1374 = vrot.lane.b32.xlu1 %v6010_v27, %s5215_s23 }
 0x324   : > { %1388 = vrot.lane.b32.xlu0 %v6015_v38, %s5215_s23 }
 0x326   : > { %1372 = vrot.lane.b32.xlu1 %v5965_v40, %s5215_s23 }
 0x328   : > { %1386 = vrot.lane.b32.xlu0 %v6027_v18, %s5215_s23 }
 0x32a   : > { %1370 = vrot.lane.b32.xlu1 %v6031_v8, %s5215_s23 }
 0x32c   : > { %1384 = vrot.lane.b32.xlu0 %v6036_v56, %s5215_s23 }
 0x32e   : > { %1368 = vrot.lane.b32.xlu1 %v5954_v32, %s5215_s23 }
 0x330   : > { %1382 = vrot.lane.b32.xlu0 %v6044_v59, %s5215_s23 }
 0x332   : > { %1366 = vrot.lane.b32.xlu1 %v5957_v49, %s5215_s23  ;;  %s7765_s23 = sld [smem:[#allocation60_spill]] }
 0x334   : > { %2133 = vrot.lane.b32.xlu0 %v5977_v29, %s5216_s21 }
 0x336   : > { %2117 = vrot.lane.b32.xlu1 %v5969_v12, %s5216_s21 }
 0x338   : > { %2115 = vrot.lane.b32.xlu0 %v5987_v22, %s5216_s21 }
 0x33a   : > { %2113 = vrot.lane.b32.xlu1 %v5998_v24, %s5216_s21 }
 0x33c   : > { %2129 = vrot.lane.b32.xlu0 %v5993_v2, %s5216_s21 }
 0x33e   : > { %2127 = vrot.lane.b32.xlu1 %v6006_v62, %s5216_s21 }
 0x340   : > { %2111 = vrot.lane.b32.xlu0 %v6010_v27, %s5216_s21 }
 0x342   : > { %2109 = vrot.lane.b32.xlu1 %v5965_v40, %s5216_s21 }
 0x344   : > { %2125 = vrot.lane.b32.xlu0 %v6015_v38, %s5216_s21 }
 0x346   : > { %2123 = vrot.lane.b32.xlu1 %v6027_v18, %s5216_s21 }
 0x348   : > { %2107 = vrot.lane.b32.xlu0 %v6031_v8, %s5216_s21 }
 0x34a   : > { %2105 = vrot.lane.b32.xlu1 %v5954_v32, %s5216_s21 }
 0x34c   : > { %2121 = vrot.lane.b32.xlu0 %v6036_v56, %s5216_s21 }
 0x34e   : > { %2131 = vrot.lane.b32.xlu1 %v5982_v35, %s5216_s21 }
 0x368   : > { %v1381_v1 = vpop.permute.xlu0 %1380 }
 0x369   : > { %v1468_v31 = vsel %vm581_vm0, %v1381_v1, 0 }
 0x388   : > { %v1397_v57 = vpop.permute.xlu1 %1396 }
 0x389   : > { %4658 = vmatprep.subr.msk.bf16.mxu1 %vm581_vm0, %v1397_v57 }
 0x38a   : > { %4279 = vmatpush3.bf16.xpose.msra.mxu1 %v1468_v31  ;;  %v1395_v60 = vpop.permute.xlu0 %1394 }
 0x38b   : > { %4659 = vmatprep.subr.msk.bf16.mxu1 %vm581_vm0, %v1395_v60 }
 0x38c   : > { %v1379_v23 = vpop.permute.xlu1 %1378 }
 0x38d   : > { %v1465_v50 = vsel %vm581_vm0, %v1379_v23, 0 }
 0x38e   : > { %v1393_v14 = vpop.permute.xlu0 %1392 }
 0x390   : > { %v1377_v7 = vpop.permute.xlu1 %1376 }
 0x391   : > { %v1462_v58 = vsel %vm581_vm0, %v1377_v7, 0 }
 0x392   : > { %4281 = vmatpush3.bf16.xpose.msra.mxu1 %v1465_v50  ;;  %v1391_v48 = vpop.permute.xlu0 %1390 }
 0x393   : > { %4660 = vmatprep.subr.msk.bf16.mxu1 %vm581_vm0, %v1393_v14 }
 0x394   : > { %v1375_v43 = vpop.permute.xlu1 %1374 }
 0x395   : > { %v1459_v3 = vsel %vm581_vm0, %v1375_v43, 0 }
 0x396   : > { %v1389_v17 = vpop.permute.xlu0 %1388 }
 0x398   : > { %v1373_v47 = vpop.permute.xlu1 %1372 }
 0x399   : > { %v1456_v1 = vsel %vm581_vm0, %v1373_v47, 0 }
 0x39a   : > { %4283 = vmatpush3.bf16.xpose.msra.mxu1 %v1462_v58  ;;  %v1387_v45 = vpop.permute.xlu0 %1386 }
 0x39b   : > { %4661 = vmatprep.subr.msk.bf16.mxu1 %vm581_vm0, %v1391_v48 }
 0x39c   : > { %v1371_v21 = vpop.permute.xlu1 %1370 }
 0x39d   : > { %v1453_v60 = vsel %vm581_vm0, %v1371_v21, 0 }
 0x39e   : > { %v1385_v44 = vpop.permute.xlu0 %1384 }
 0x3a0   : > { %v1369_v19 = vpop.permute.xlu1 %1368 }
 0x3a1   : > { %v1450_v50 = vsel %vm581_vm0, %v1369_v19, 0 }
 0x3a2   : > { %4285 = vmatpush3.bf16.xpose.msra.mxu1 %v1459_v3  ;;  %v1383_v42 = vpop.permute.xlu0 %1382 }
 0x3a3   : > { %4662 = vmatprep.subr.msk.bf16.mxu1 %vm581_vm0, %v1389_v17 }
 0x3a4   : > { %v1367_v20 = vpop.permute.xlu1 %1366 }
 0x3a5   : > { %v1447_v58 = vsel %vm581_vm0, %v1367_v20, 0 }
 0x3a6   : > { %v2134_v37 = vpop.permute.xlu0 %2133 }
 0x3a7   : > { %4326 = vmatprep.subr.bf16.mxu0 %v2134_v37 }
 0x3a8   : > { %v2118_v0 = vpop.permute.xlu1 %2117 }
 0x3a9   : > { %4327 = vmatpush3.bf16.msra.mxu0 %v2118_v0 }
 0x3aa   : > { %4287 = vmatpush3.bf16.xpose.msra.mxu1 %v1456_v1  ;;  %v2116_v23 = vpop.permute.xlu0 %2115 }
 0x3ab   : > { %4663 = vmatprep.subr.msk.bf16.mxu1 %vm581_vm0, %v1387_v45 }
 0x3ac   : > { %v2114_v57 = vpop.permute.xlu1 %2113 }
 0x3ae   : > { %v2130_v48 = vpop.permute.xlu0 %2129 }
 0x3b0   : > { %v2128_v31 = vpop.permute.xlu1 %2127 }
 0x3b2   : > { %4289 = vmatpush3.bf16.xpose.msra.mxu1 %v1453_v60  ;;  %v2112_v17 = vpop.permute.xlu0 %2111 }
 0x3b3   : > { %4664 = vmatprep.subr.msk.bf16.mxu1 %vm581_vm0, %v1385_v44 }
 0x3b4   : > { %v2110_v14 = vpop.permute.xlu1 %2109 }
 0x3b6   : > { %v2126_v45 = vpop.permute.xlu0 %2125 }
 0x3b8   : > { %v2124_v7 = vpop.permute.xlu1 %2123 }
 0x3ba   : > { %4291 = vmatpush3.bf16.xpose.msra.mxu1 %v1450_v50  ;;  %v2108_v21 = vpop.permute.xlu0 %2107 }
 0x3bb   : > { %4665 = vmatprep.subr.msk.bf16.mxu1 %vm581_vm0, %v1383_v42 }
 0x3bc   : > { %v2106_v43 = vpop.permute.xlu1 %2105 }
 0x3be   : > { %v2122_v44 = vpop.permute.xlu0 %2121 }
 0x3c0   : > { %v2132_v47 = vpop.permute.xlu1 %2131 }
 0x3c1   : > { %4328 = vmatprep.subr.bf16.mxu0 %v2132_v47 }
 0x3c2   : > { %4293 = vmatpush3.bf16.xpose.msra.mxu1 %v1447_v58  ;;  %4329 = vmatpush3.bf16.msra.mxu0 %v2116_v23 }
 0x3c3   : > { %4330 = vmatprep.subr.bf16.mxu0 %v2130_v48 }
 0x3c6   : > { %4331 = vmatpush3.bf16.msra.mxu0 %v2114_v57 }
 0x3c7   : > { %4332 = vmatprep.subr.bf16.mxu0 %v2128_v31 }
 0x3c9   : > { %4295 = vmatmul.mubr.msk.bf16.vlgmr.msra.gmra.mxu1 %vm581_vm0, %v5957_v49 }
 0x3ca   : > { %4296 = vmatprep.mubr.msk.bf16.mxu1 %vm581_vm0, %v5954_v32  ;;  %4333 = vmatpush3.bf16.msra.mxu0 %v2112_v17 }
 0x3cb   : > { %4334 = vmatprep.subr.bf16.mxu0 %v2126_v45 }
 0x3ce   : > { %4335 = vmatpush3.bf16.msra.mxu0 %v2110_v14 }
 0x3cf   : > { %4336 = vmatprep.subr.bf16.mxu0 %v2124_v7 }
 0x3d1   : > { %4297 = vmatmul.mubr.msk.bf16.gmra.mxu1 %vm581_vm0, %v5954_v32  ;;  %v1340_v32 = vlaneseq }
 0x3d2   : > { %4298 = vmatprep.mubr.msk.bf16.mxu1 %vm581_vm0, %v6031_v8  ;;  %4337 = vmatpush3.bf16.msra.mxu0 %v2108_v21 }
 0x3d3   : > { %4338 = vmatprep.subr.bf16.mxu0 %v2122_v44 }
 0x3d6   : > { %4339 = vmatpush3.bf16.msra.mxu0 %v2106_v43 }
 0x3d9   : > { %4299 = vmatmul.mubr.msk.bf16.gmra.mxu1 %vm581_vm0, %v6031_v8 }
 0x3da   : > { %4300 = vmatprep.mubr.msk.bf16.mxu1 %vm581_vm0, %v5965_v40 }
 0x3e1   : > { %4301 = vmatmul.mubr.msk.bf16.gmra.mxu1 %vm581_vm0, %v5965_v40  ;;  %v576_v40 = vld [vmem:[%s6163_s24] sm:$0x3] }
 0x3e2   : > { %4302 = vmatprep.mubr.msk.bf16.mxu1 %vm581_vm0, %v6010_v27 }
 0x3e9   : > { %4303 = vmatmul.mubr.msk.bf16.gmra.mxu1 %vm581_vm0, %v6010_v27 }
 0x3ea   : > { %4304 = vmatprep.mubr.msk.bf16.mxu1 %vm581_vm0, %v5998_v24 }
 0x3f1   : > { %4305 = vmatmul.mubr.msk.bf16.gmra.mxu1 %vm581_vm0, %v5998_v24 }
 0x3f2   : > { %4306 = vmatprep.mubr.msk.bf16.mxu1 %vm581_vm0, %v5987_v22 }
 0x3f9   : > { %4307 = vmatmul.mubr.msk.bf16.gmra.mxu1 %vm581_vm0, %v5987_v22  ;;  %v6166_v22 = vshrl.u32 %v1340_v32, 7 }
 0x3fa   : > { %4308 = vmatprep.mubr.msk.bf16.mxu1 %vm581_vm0, %v5969_v12 }
 0x3fb   : > { %7702 = vst [vmem:[#allocation46_spill] sm:$0xff] %v6166_v22  ;;  %v7614_v24 = vsub.s32 1, %v6166_v22 }
 0x401   : > { %4309 = vmatmul.mubr.msk.bf16.gmra.mxu1 %vm581_vm0, %v5969_v12  ;;  %v4166_v12 = vadd.f32 -1.0, %v576_v40 }
 0x402   : > { %4310 = vmatprep.mubr.msk.bf16.mxu1 %vm581_vm0, %v6044_v59 }
 0x409   : > { %4311 = vmatmul.mubr.msk.bf16.gmra.mxu1 %vm581_vm0, %v6044_v59 }
 0x40a   : > { %4312 = vmatprep.mubr.msk.bf16.mxu1 %vm581_vm0, %v6036_v56 }
 0x411   : > { %4313 = vmatmul.mubr.msk.bf16.gmra.mxu1 %vm581_vm0, %v6036_v56 }
 0x412   : > { %4314 = vmatprep.mubr.msk.bf16.mxu1 %vm581_vm0, %v6027_v18 }
 0x419   : > { %4315 = vmatmul.mubr.msk.bf16.gmra.mxu1 %vm581_vm0, %v6027_v18 }
 0x41a   : > { %4316 = vmatprep.mubr.msk.bf16.mxu1 %vm581_vm0, %v6015_v38 }
 0x421   : > { %4317 = vmatmul.mubr.msk.bf16.gmra.mxu1 %vm581_vm0, %v6015_v38 }
 0x422   : > { %4318 = vmatprep.mubr.msk.bf16.mxu1 %vm581_vm0, %v6006_v62 }
 0x429   : > { %4319 = vmatmul.mubr.msk.bf16.gmra.mxu1 %vm581_vm0, %v6006_v62 }
 0x42a   : > { %4320 = vmatprep.mubr.msk.bf16.mxu1 %vm581_vm0, %v5993_v2 }
 0x431   : > { %4321 = vmatmul.mubr.msk.bf16.gmra.mxu1 %vm581_vm0, %v5993_v2  ;;  %v7615_v2 = vsub.s32 0, %v6166_v22 }
 0x432   : > { %4322 = vmatprep.mubr.msk.bf16.mxu1 %vm581_vm0, %v5982_v35 }
 0x439   : > { %4323 = vmatmul.mubr.msk.bf16.gmra.mxu1 %vm581_vm0, %v5982_v35  ;;  %v578_v35 = vmul.f32 1e+30, %v4166_v12 }
 0x43a   : > { %4324 = vmatprep.mubr.msk.bf16.mxu1 %vm581_vm0, %v5977_v29 }
 0x43b   : > { %v6176_v62 = vrot.slane %v578_v35, %v7614_v24 }
 0x441   : > { %4325 = vmatmul.mubr.msk.bf16.gmra.mxu1 %vm581_vm0, %v5977_v29  ;;  %v6172_v29 = vrot.slane %v578_v35, %v7615_v2 }
 0x489   : > { %v1528_v27 = vpop.f32.mrf.mxu1 }
 0x48a   : > { %v6179_v18 = vadd.f32 %v1528_v27, %v6172_v29 }
 0x48b   : > { %v1530_v38 = vpop.f32.mrf.mxu1 }
 0x48c   : > { %v6182_v8 = vadd.f32 %v1530_v38, %v6176_v62 }
 0x48d   : > { %v1532_v56 = vpop.f32.mrf.mxu1 }
 0x48e   : > { %v1687_v19 = vmax.f32 %v6179_v18, %v6182_v8  ;;  %v6187_v42 = vadd.f32 %v1532_v56, %v6172_v29 }
 0x48f   : > { %v1534_v3 = vpop.f32.mrf.mxu1 }
 0x490   : > { %v6190_v20 = vadd.f32 %v1534_v3, %v6176_v62  ;;  %1688 = vmax.xlane.f32.xlu1 %v1687_v19 }
 0x491   : > { %v1538_v37 = vpop.f32.mrf.mxu1 }
 0x492   : > { %v1690_v0 = vmax.f32 %v6187_v42, %v6190_v20  ;;  %v6195_v57 = vadd.f32 %v1538_v37, %v6172_v29 }
 0x493   : > { %v1540_v1 = vpop.f32.mrf.mxu1 }
 0x494   : > { %v6198_v31 = vadd.f32 %v1540_v1, %v6176_v62  ;;  %1691 = vmax.xlane.f32.xlu0 %v1690_v0 }
 0x495   : > { %v1542_v60 = vpop.f32.mrf.mxu1 }
 0x496   : > { %v1693_v23 = vmax.f32 %v6195_v57, %v6198_v31  ;;  %v6203_v7 = vadd.f32 %v1542_v60, %v6172_v29 }
 0x497   : > { %v1544_v14 = vpop.f32.mrf.mxu1 }
 0x498   : > { %v6206_v50 = vadd.f32 %v1544_v14, %v6176_v62  ;;  %1694 = vmax.xlane.f32.xlu1 %v1693_v23 }
 0x499   : > { %v1548_v48 = vpop.f32.mrf.mxu1 }
 0x49a   : > { %v1696_v43 = vmax.f32 %v6203_v7, %v6206_v50  ;;  %v6211_v47 = vadd.f32 %v1548_v48, %v6172_v29 }
 0x49b   : > { %v1550_v17 = vpop.f32.mrf.mxu1 }
 0x49c   : > { %v6214_v58 = vadd.f32 %v1550_v17, %v6176_v62  ;;  %1697 = vmax.xlane.f32.xlu0 %v1696_v43 }
 0x49d   : > { %v1552_v45 = vpop.f32.mrf.mxu1 }
 0x49e   : > { %v1699_v21 = vmax.f32 %v6211_v47, %v6214_v58  ;;  %v6219_v32 = vadd.f32 %v1552_v45, %v6172_v29 }
 0x49f   : > { %v1554_v44 = vpop.f32.mrf.mxu1 }
 0x4a0   : > { %v6222_v40 = vadd.f32 %v1554_v44, %v6176_v62  ;;  %1700 = vmax.xlane.f32.xlu1 %v1699_v21 }
 0x4a1   : > { %v1558_v12 = vpop.f32.mrf.mxu1 }
 0x4a2   : > { %v1702_v35 = vmax.f32 %v6219_v32, %v6222_v40  ;;  %v6227_v38 = vadd.f32 %v1558_v12, %v6172_v29 }
 0x4a3   : > { %v1560_v27 = vpop.f32.mrf.mxu1 }
 0x4a4   : > { %v6230_v56 = vadd.f32 %v1560_v27, %v6176_v62  ;;  %1703 = vmax.xlane.f32.xlu0 %v1702_v35 }
 0x4a5   : > { %v1562_v19 = vpop.f32.mrf.mxu1 }
 0x4a6   : > { %v1705_v3 = vmax.f32 %v6227_v38, %v6230_v56  ;;  %v6235_v0 = vadd.f32 %v1562_v19, %v6172_v29 }
 0x4a7   : > { %v1564_v37 = vpop.f32.mrf.mxu1 }
 0x4a8   : > { %v6238_v1 = vadd.f32 %v1564_v37, %v6176_v62  ;;  %1706 = vmax.xlane.f32.xlu1 %v1705_v3 }
 0x4a9   : > { %v1568_v60 = vpop.f32.mrf.mxu1 }
 0x4aa   : > { %v1708_v23 = vmax.f32 %v6235_v0, %v6238_v1  ;;  %v6250_v16 = vadd.f32 %v1568_v60, %v6172_v29 }
 0x4ab   : > { %v1570_v14 = vpop.f32.mrf.mxu1 }
 0x4ac   : > { %1709 = vmax.xlane.f32.xlu0 %v1708_v23  ;;  %v6247_v54 = vadd.f32 %v1570_v14, %v6176_v62 }
 0x4ad   : > { %v1572_v48 = vpop.f32.mrf.mxu1 }
 0x4ae   : > { %v6263_v26 = vadd.f32 %v1572_v48, %v6172_v29 }
 0x4af   : > { %v1574_v43 = vpop.f32.mrf.mxu1 }
 0x4b0   : > { %v6257_v53 = vadd.f32 %v1574_v43, %v6176_v62 }
 0x4b1   : > { %v1578_v17 = vpop.f32.mrf.mxu1 }
 0x4b2   : > { %v1714_v63 = vmax.f32 %v6263_v26, %v6257_v53  ;;  %v6279_v48 = vadd.f32 %v1578_v17, %v6172_v29 }
 0x4b3   : > { %v1580_v45 = vpop.f32.mrf.mxu1 }
 0x4b4   : > { %v6271_v28 = vadd.f32 %v1580_v45, %v6176_v62 }
 0x4b5   : > { %v1582_v21 = vpop.f32.mrf.mxu1 }
 0x4b6   : > { %v6266_v14 = vadd.f32 %v1582_v21, %v6172_v29  ;;  %v1717_v45 = vmax.f32 %v6279_v48, %v6271_v28 }
 0x4b7   : > { %v1584_v44 = vpop.f32.mrf.mxu1 }
 0x4b8   : > { %v6260_v10 = vadd.f32 %v1584_v44, %v6176_v62 }
 0x4b9   : > { %v1588_v12 = vpop.f32.mrf.mxu1  ;;  %2119 = vrot.lane.b32.xlu1 %v6044_v59, %s5216_s21 }
 0x4ba   : > { %v1720_v43 = vmax.f32 %v6266_v14, %v6260_v10  ;;  %v6295_v41 = vadd.f32 %v1588_v12, %v6172_v29 }
 0x4bb   : > { %v1590_v35 = vpop.f32.mrf.mxu1 }
 0x4bc   : > { %v6287_v52 = vadd.f32 %v1590_v35, %v6176_v62 }
 0x4bd   : > { %v1592_v27 = vpop.f32.mrf.mxu1 }
 0x4be   : > { %v6282_v21 = vadd.f32 %v1592_v27, %v6172_v29  ;;  %v1723_v35 = vmax.f32 %v6295_v41, %v6287_v52 }
 0x4bf   : > { %v1594_v19 = vpop.f32.mrf.mxu1 }
 0x4c0   : > { %v6276_v44 = vadd.f32 %v1594_v19, %v6176_v62 }
 0x4c1   : > { %v1598_v3 = vpop.f32.mrf.mxu1 }
 0x4c2   : > { %2103 = vrot.lane.b32.xlu0 %v5957_v49, %s5216_s21  ;;  %v1711_v49 = vmax.f32 %v6250_v16, %v6247_v54  ;;  %v1726_v19 = vmax.f32 %v6282_v21, %v6276_v44  ;;  %v6311_v15 = vadd.f32 %v1598_v3, %v6172_v29  ;;  %s7540_s21 = scalar_lea.hbm %s7765_s23, %s4259_s22 }
 0x4c3   : > { %v1600_v37 = vpop.f32.mrf.mxu1 }
 0x4c5   : > { %v1602_v24 = vpop.f32.mrf.mxu1 }
 0x4c6   : > { %v6298_v27 = vadd.f32 %v1602_v24, %v6172_v29 }
 0x4c7   : > { %v1604_v23 = vpop.f32.mrf.mxu1 }
 0x4c8   : > { %v6292_v5 = vadd.f32 %v1604_v23, %v6176_v62 }
 0x4c9   : > { %v1608_v2 = vpop.f32.mrf.mxu1 }
 0x4ca   : > { %v1732_v23 = vmax.f32 %v6298_v27, %v6292_v5  ;;  %v6327_v25 = vadd.f32 %v1608_v2, %v6172_v29 }
 0x4cb   : > { %v1610_v22 = vpop.f32.mrf.mxu1 }
 0x4cd   : > { %v1612_v61 = vpop.f32.mrf.mxu1 }
 0x4ce   : > { %v6314_v24 = vadd.f32 %v1612_v61, %v6172_v29 }
 0x4cf   : > { %v1614_v39 = vpop.f32.mrf.mxu1 }
 0x4d0   : > { %v6308_v51 = vadd.f32 %v1614_v39, %v6176_v62 }
 0x4d1   : > { %v1618_v30 = vpop.f32.mrf.mxu1 }
 0x4d2   : > { %v1738_v39 = vmax.f32 %v6314_v24, %v6308_v51  ;;  %v6343_v34 = vadd.f32 %v1618_v30, %v6172_v29 }
 0x4d3   : > { %v1620_v4 = vpop.f32.mrf.mxu1 }
 0x4d4   : > { %7704 = vst [vmem:[#allocation48_spill] sm:$0xff] %v6343_v34 }
 0x4d5   : > { %v1622_v11 = vpop.f32.mrf.mxu1 }
 0x4d6   : > { %v6330_v61 = vadd.f32 %v1622_v11, %v6172_v29 }
 0x4d7   : > { %v1624_v59 = vpop.f32.mrf.mxu1 }
 0x4d8   : > { %v6324_v33 = vadd.f32 %v1624_v59, %v6176_v62 }
 0x4d9   : > { %v6252_v36 = vpop.f32.mrf.mxu1 }
 0x4da   : > { %v1744_v59 = vmax.f32 %v6330_v61, %v6324_v33 }
 0x4db   : > { %v1630_v9 = vpop.f32.mrf.mxu1 }
 0x4dd   : > { %v1632_v60 = vpop.f32.mrf.mxu1  ;;  %1712 = vmax.xlane.f32.xlu1 %v1711_v49 }
 0x4de   : > { %v6346_v11 = vadd.f32 %v1632_v60, %v6172_v29  ;;  %v6360_v60 = vadd.f32 %v6252_v36, %v6172_v29 }
 0x4df   : > { %v1634_v6 = vpop.f32.mrf.mxu1 }
 0x4e0   : > { %v6340_v13 = vadd.f32 %v1634_v6, %v6176_v62  ;;  %7706 = vst [vmem:[#allocation50_spill] sm:$0xff] %v6360_v60 }
 0x4e1   : > { %v1638_v49 = vpop.f32.mrf.mxu1  ;;  %1715 = vmax.xlane.f32.xlu0 %v1714_v63  ;;  %1721 = vmax.xlane.f32.xlu1 %v1720_v43  ;;  %v6303_v43 = vadd.f32 %v1600_v37, %v6176_v62 }
 0x4e2   : > { %v1750_v6 = vmax.f32 %v6346_v11, %v6340_v13 }
 0x4e3   : > { %v1640_v17 = vpop.f32.mrf.mxu1  ;;  %v1729_v37 = vmax.f32 %v6311_v15, %v6303_v43 }
 0x4e4   : > { %v6368_v46 = vadd.f32 %v1640_v17, %v6176_v62 }
 0x4e5   : > { %v1642_v63 = vpop.f32.mrf.mxu1  ;;  %1718 = vmax.xlane.f32.xlu0 %v1717_v45  ;;  %1727 = vmax.xlane.f32.xlu1 %v1726_v19  ;;  %v6319_v19 = vadd.f32 %v1610_v22, %v6176_v62 }
 0x4e6   : > { %7707 = vst [vmem:[#allocation51_spill] sm:$0xff] %v6368_v46 }
 0x4e7   : > { %v1644_v12 = vpop.f32.mrf.mxu1  ;;  %v1735_v22 = vmax.f32 %v6327_v25, %v6319_v19 }
 0x4e8   : > { %v6356_v55 = vadd.f32 %v1644_v12, %v6176_v62 }
 0x4e9   : > { %v1648_v45 = vpop.f32.mrf.mxu1  ;;  %1724 = vmax.xlane.f32.xlu0 %v1723_v35  ;;  %1733 = vmax.xlane.f32.xlu1 %v1732_v23  ;;  %v6335_v23 = vadd.f32 %v1620_v4, %v6176_v62 }
 0x4eb   : > { %v1650_v3 = vpop.f32.mrf.mxu1  ;;  %7703 = vst [vmem:[#allocation47_spill] sm:$0xff] %v6335_v23  ;;  %v1741_v4 = vmax.f32 %v6343_v34, %v6335_v23  ;;  %v6376_v34 = vadd.f32 %v1638_v49, %v6172_v29 }
 0x4ed   : > { %v1652_v35 = vpop.f32.mrf.mxu1  ;;  %1730 = vmax.xlane.f32.xlu0 %v1729_v37  ;;  %1739 = vmax.xlane.f32.xlu1 %v1738_v39  ;;  %v6351_v39 = vadd.f32 %v1630_v9, %v6176_v62  ;;  %7708 = vst [vmem:[#allocation52_spill] sm:$0xff] %v6376_v34  ;;  %v1753_v17 = vmax.f32 %v6376_v34, %v6368_v46 }
 0x4ef   : > { %v1654_v2 = vpop.f32.mrf.mxu1  ;;  %7705 = vst [vmem:[#allocation49_spill] sm:$0xff] %v6351_v39  ;;  %v1747_v9 = vmax.f32 %v6360_v60, %v6351_v39  ;;  %v6392_v60 = vadd.f32 %v1648_v45, %v6172_v29 }
 0x4f0   : > { %v6373_v23 = vadd.f32 %v1654_v2, %v6176_v62 }
 0x4f1   : > { %v1658_v37 = vpop.f32.mrf.mxu1  ;;  %1736 = vmax.xlane.f32.xlu0 %v1735_v22  ;;  %1745 = vmax.xlane.f32.xlu1 %v1744_v59  ;;  %v6363_v22 = vadd.f32 %v1642_v63, %v6172_v29  ;;  %v6379_v63 = vadd.f32 %v1652_v35, %v6172_v29  ;;  %7710 = vst [vmem:[#allocation54_spill] sm:$0xff] %v6392_v60 }
 0x4f3   : > { %v1660_v30 = vpop.f32.mrf.mxu1  ;;  %v1756_v12 = vmax.f32 %v6363_v22, %v6356_v55  ;;  %v1762_v2 = vmax.f32 %v6379_v63, %v6373_v23 }
 0x4f5   : > { %v1662_v59 = vpop.f32.mrf.mxu1  ;;  %1742 = vmax.xlane.f32.xlu0 %v1741_v4  ;;  %1751 = vmax.xlane.f32.xlu1 %v1750_v6  ;;  %v6384_v6 = vadd.f32 %v1650_v3, %v6176_v62 }
 0x4f6   : > { %v6395_v35 = vadd.f32 %v1662_v59, %v6172_v29  ;;  %v6411_v59 = vadd.f32 %v1658_v37, %v6172_v29 }
 0x4f7   : > { %v1664_v36 = vpop.f32.mrf.mxu1  ;;  %7709 = vst [vmem:[#allocation53_spill] sm:$0xff] %v6384_v6  ;;  %v1759_v3 = vmax.f32 %v6392_v60, %v6384_v6 }
 0x4f8   : > { %v6389_v39 = vadd.f32 %v1664_v36, %v6176_v62 }
 0x4f9   : > { %v1668_v4 = vpop.f32.mrf.mxu1  ;;  %1748 = vmax.xlane.f32.xlu0 %v1747_v9  ;;  %1757 = vmax.xlane.f32.xlu1 %v1756_v12  ;;  %v6400_v12 = vadd.f32 %v1660_v30, %v6176_v62 }
 0x4fa   : > { %v1768_v36 = vmax.f32 %v6395_v35, %v6389_v39  ;;  %v6421_v60 = vadd.f32 %v1668_v4, %v6172_v29 }
 0x4fb   : > { %v1670_v49 = vpop.f32.mrf.mxu1  ;;  %7711 = vst [vmem:[#allocation55_spill] sm:$0xff] %v6400_v12 }
 0x4fc   : > { %v6418_v6 = vadd.f32 %v1670_v49, %v6176_v62 }
 0x4fd   : > { %v1672_v9 = vpop.f32.mrf.mxu1  ;;  %1754 = vmax.xlane.f32.xlu0 %v1753_v17  ;;  %1763 = vmax.xlane.f32.xlu1 %v1762_v2  ;;  %v1765_v2 = vmax.f32 %v6411_v59, %v6400_v12 }
 0x4fe   : > { %v6405_v34 = vadd.f32 %v1672_v9, %v6172_v29  ;;  %7713 = vst [vmem:[#allocation57_spill] sm:$0xff] %v6418_v6  ;;  %v1771_v37 = vmax.f32 %v6421_v60, %v6418_v6 }
 0x4ff   : > { %v1674_v46 = vpop.f32.mrf.mxu1 }
 0x500   : > { %v6408_v45 = vadd.f32 %v1674_v46, %v6176_v62 }
 0x501   : > { %v1678_v17 = vpop.f32.mrf.mxu1  ;;  %1760 = vmax.xlane.f32.xlu0 %v1759_v3  ;;  %1769 = vmax.xlane.f32.xlu1 %v1768_v36 }
 0x502   : > { %7712 = vst [vmem:[#allocation56_spill] sm:$0xff] %v6408_v45  ;;  %v1774_v30 = vmax.f32 %v6405_v34, %v6408_v45  ;;  %v6435_v12 = vadd.f32 %v1678_v17, %v6172_v29 }
 0x503   : > { %v1680_v9 = vpop.f32.mrf.mxu1 }
 0x504   : > { %v6426_v3 = vadd.f32 %v1680_v9, %v6176_v62 }
 0x505   : > { %v1682_v46 = vpop.f32.mrf.mxu1  ;;  %1766 = vmax.xlane.f32.xlu0 %v1765_v2  ;;  %1775 = vmax.xlane.f32.xlu1 %v1774_v30 }
 0x506   : > { %v6429_v45 = vadd.f32 %v1682_v46, %v6172_v29  ;;  %v1777_v30 = vmax.f32 %v6435_v12, %v6426_v3 }
 0x507   : > { %v1684_v36 = vpop.f32.mrf.mxu1 }
 0x508   : > { %7714 = vst [vmem:[#allocation58_spill] sm:$0xff] %v6429_v45  ;;  %v6432_v49 = vadd.f32 %v1684_v36, %v6176_v62 }
 0x509   : > { %1772 = vmax.xlane.f32.xlu0 %v1771_v37 }
 0x50a   : > { %7715 = vst [vmem:[#allocation59_spill] sm:$0xff] %v6432_v49  ;;  %v1780_v4 = vmax.f32 %v6429_v45, %v6432_v49 }
 0x50c   : > { %1781 = vmax.xlane.f32.xlu1 %v1780_v4 }
 0x50d   : > { %1778 = vmax.xlane.f32.xlu0 %v1777_v30 }
 0x519   : > { %v1689_v2 = vpop.xlane.xlu1 %1688 }
 0x51a   : > { %v1783_v9 = vsub.f32 %v6179_v18, %v1689_v2  ;;  %v1784_v46 = vsub.f32 %v6182_v8, %v1689_v2 }
 0x51c   : > { %v1847_v6 = vmul.f32 1.442695, %v1783_v9  ;;  %v1849_v62 = vmul.f32 1.442695, %v1784_v46 }
 0x51d   : > { %v1692_v36 = vpop.xlane.xlu0 %1691 }
 0x51e   : > { %4797 = vpow2.f32 %v1847_v6  ;;  %v1785_v29 = vsub.f32 %v6187_v42, %v1692_v36  ;;  %v1786_v17 = vsub.f32 %v6190_v20, %v1692_v36 }
 0x51f   : > { %4799 = vpow2.f32 %v1849_v62 }
 0x520   : > { %v1851_v37 = vmul.f32 1.442695, %v1785_v29  ;;  %v1853_v49 = vmul.f32 1.442695, %v1786_v17 }
 0x521   : > { %v1695_v45 = vpop.xlane.xlu1 %1694 }
 0x522   : > { %4801 = vpow2.f32 %v1851_v37  ;;  %v1787_v4 = vsub.f32 %v6195_v57, %v1695_v45  ;;  %v1788_v30 = vsub.f32 %v6198_v31, %v1695_v45 }
 0x523   : > { %4803 = vpow2.f32 %v1853_v49 }
 0x524   : > { %v1855_v18 = vmul.f32 1.442695, %v1787_v4  ;;  %v1857_v8 = vmul.f32 1.442695, %v1788_v30 }
 0x525   : > { %v1698_v2 = vpop.xlane.xlu0 %1697 }
 0x526   : > { %4805 = vpow2.f32 %v1855_v18  ;;  %v1789_v6 = vsub.f32 %v6203_v7, %v1698_v2  ;;  %v1790_v42 = vsub.f32 %v6206_v50, %v1698_v2 }
 0x527   : > { %4807 = vpow2.f32 %v1857_v8 }
 0x528   : > { %v1859_v20 = vmul.f32 1.442695, %v1789_v6  ;;  %v1861_v9 = vmul.f32 1.442695, %v1790_v42 }
 0x529   : > { %v1701_v46 = vpop.xlane.xlu1 %1700 }
 0x52a   : > { %4809 = vpow2.f32 %v1859_v20  ;;  %v1791_v62 = vsub.f32 %v6211_v47, %v1701_v46  ;;  %v1792_v57 = vsub.f32 %v6214_v58, %v1701_v46 }
 0x52b   : > { %v4798_v36 = vpop.eup %4797  ;;  %4811 = vpow2.f32 %v1861_v9 }
 0x52c   : > { %v4800_v31 = vpop.eup %4799  ;;  %v1863_v45 = vmul.f32 1.442695, %v1791_v62  ;;  %v1865_v49 = vmul.f32 1.442695, %v1792_v57 }
 0x52d   : > { %v1704_v29 = vpop.xlane.xlu0 %1703  ;;  %v1975_v17 = vadd.f32 %v4800_v31, %v4798_v36 }
 0x52e   : > { %4813 = vpow2.f32 %v1863_v45  ;;  %v1793_v7 = vsub.f32 %v6219_v32, %v1704_v29  ;;  %v1794_v50 = vsub.f32 %v6222_v40, %v1704_v29 }
 0x52f   : > { %v4802_v37 = vpop.eup %4801  ;;  %4815 = vpow2.f32 %v1865_v49  ;;  %1976 = vadd.xlane.f32.xlu0 %v1975_v17 }
 0x530   : > { %v4804_v4 = vpop.eup %4803  ;;  %v1867_v30 = vmul.f32 1.442695, %v1793_v7  ;;  %v1869_v47 = vmul.f32 1.442695, %v1794_v50  ;;  %v2071_v50 = vpack.c.bf16 %v4802_v37, %v4798_v36 }
 0x531   : > { %v1707_v18 = vpop.xlane.xlu1 %1706  ;;  %v2072_v58 = vpack.c.bf16 %v4804_v4, %v4800_v31  ;;  %v1978_v8 = vadd.f32 %v4804_v4, %v4802_v37 }
 0x532   : > { %4817 = vpow2.f32 %v1867_v30  ;;  %v1795_v2 = vsub.f32 %v6227_v38, %v1707_v18  ;;  %v1796_v6 = vsub.f32 %v6230_v56, %v1707_v18 }
 0x533   : > { %v4806_v42 = vpop.eup %4805  ;;  %4819 = vpow2.f32 %v1869_v47  ;;  %2183 = vmatprep.mubr.bf16.mxu0 %v2072_v58  ;;  %1979 = vadd.xlane.f32.xlu1 %v1978_v8 }
 0x534   : > { %v4808_v32 = vpop.eup %4807  ;;  %v1871_v40 = vmul.f32 1.442695, %v1795_v2  ;;  %v1873_v20 = vmul.f32 1.442695, %v1796_v6 }
 0x535   : > { %v2120_v9 = vpop.permute.xlu1 %2119  ;;  %v1710_v46 = vpop.xlane.xlu0 %1709  ;;  %v1981_v62 = vadd.f32 %v4808_v32, %v4806_v42 }
 0x536   : > { %4821 = vpow2.f32 %v1871_v40  ;;  %v1797_v57 = vsub.f32 %v6235_v0, %v1710_v46  ;;  %v1798_v31 = vsub.f32 %v6238_v1, %v1710_v46  ;;  %4340 = vmatprep.subr.bf16.mxu0 %v2120_v9 }
 0x537   : > { %v4810_v45 = vpop.eup %4809  ;;  %4823 = vpow2.f32 %v1873_v20  ;;  %1982 = vadd.xlane.f32.xlu0 %v1981_v62 }
 0x538   : > { %v4812_v38 = vpop.eup %4811  ;;  %v1875_v56 = vmul.f32 1.442695, %v1797_v57  ;;  %v1877_v49 = vmul.f32 1.442695, %v1798_v31  ;;  %v2073_v8 = vpack.c.bf16 %v4810_v45, %v4806_v42  ;;  %v4721_v42 = vld [vmem:[%s7587_s4 + $0x8] sm:$0xff]  }
 0x539   : > { %v2104_v29 = vpop.permute.xlu0 %2103  ;;  %v1984_v17 = vadd.f32 %v4812_v38, %v4810_v45  ;;  %v2074_v30 = vpack.c.bf16 %v4812_v38, %v4808_v32  ;;  %4654 = vmatprep.subr.bf16.mxu1 %v4721_v42 }
 0x53a   : > { %4825 = vpow2.f32 %v1875_v56  ;;  %4341 = vmatpush3.bf16.msra.mxu0 %v2104_v29  ;;  %4656 = vmatpush3.bf16.msra.mxu1 %v4721_v42 }
 0x53b   : > { %v4814_v7 = vpop.eup %4813  ;;  %4827 = vpow2.f32 %v1877_v49  ;;  %1985 = vadd.xlane.f32.xlu1 %v1984_v17  ;;  %4534 = vmatprep.subr.bf16.mxu0 %v4721_v42 }
 0x53c   : > { %v4816_v4 = vpop.eup %4815 }
 0x53d   : > { %2184 = vmatmul.mubr.bf16.vlgmr.msra.gmra.mxu0 %v2071_v50  ;;  %v1987_v0 = vadd.f32 %v4816_v4, %v4814_v7 }
 0x53e   : > { %2191 = vmatprep.mubr.bf16.mxu0 %v2074_v30  ;;  %4535 = vmatpush3.bf16.msra.mxu0 %v4721_v42 }
 0x53f   : > { %v4818_v1 = vpop.eup %4817  ;;  %1988 = vadd.xlane.f32.xlu0 %v1987_v0 }
 0x540   : > { %v4820_v47 = vpop.eup %4819  ;;  %v2075_v32 = vpack.c.bf16 %v4818_v1, %v4814_v7 }
 0x541   : > { %v1990_v18 = vadd.f32 %v4820_v47, %v4818_v1  ;;  %v2076_v6 = vpack.c.bf16 %v4820_v47, %v4816_v4 }
 0x543   : > { %v4822_v58 = vpop.eup %4821  ;;  %1991 = vadd.xlane.f32.xlu1 %v1990_v18 }
 0x544   : > { %v4824_v2 = vpop.eup %4823 }
 0x545   : > { %2192 = vmatmul.mubr.bf16.gmra.mxu0 %v2073_v8  ;;  %v1993_v40 = vadd.f32 %v4824_v2, %v4822_v58 }
 0x546   : > { %2199 = vmatprep.mubr.bf16.mxu0 %v2076_v6 }
 0x547   : > { %v4826_v20 = vpop.eup %4825  ;;  %1994 = vadd.xlane.f32.xlu0 %v1993_v40 }
 0x548   : > { %v4828_v36 = vpop.eup %4827  ;;  %v2077_v46 = vpack.c.bf16 %v4826_v20, %v4822_v58 }
 0x549   : > { %v1996_v37 = vadd.f32 %v4828_v36, %v4826_v20  ;;  %v2078_v9 = vpack.c.bf16 %v4828_v36, %v4824_v2 }
 0x54b   : > { %1997 = vadd.xlane.f32.xlu1 %v1996_v37 }
 0x54d   : > { %2200 = vmatmul.mubr.bf16.gmra.mxu0 %v2075_v32 }
 0x54e   : > { %2207 = vmatprep.mubr.bf16.mxu0 %v2078_v9 }
 0x555   : > { %2208 = vmatmul.mubr.bf16.gmra.mxu0 %v2077_v46 }
 0x566   : > { %v1713_v62 = vpop.xlane.xlu1 %1712 }
 0x567   : > { %v1799_v57 = vsub.f32 %v6250_v16, %v1713_v62  ;;  %v1800_v31 = vsub.f32 %v6247_v54, %v1713_v62 }
 0x569   : > { %v1879_v45 = vmul.f32 1.442695, %v1799_v57  ;;  %v1881_v38 = vmul.f32 1.442695, %v1800_v31 }
 0x56a   : > { %v1722_v56 = vpop.xlane.xlu1 %1721  ;;  %v1716_v49 = vpop.xlane.xlu0 %1715 }
 0x56b   : > { %4829 = vpow2.f32 %v1879_v45  ;;  %v1805_v29 = vsub.f32 %v6266_v14, %v1722_v56  ;;  %v1806_v17 = vsub.f32 %v6260_v10, %v1722_v56  ;;  %v1801_v7 = vsub.f32 %v6263_v26, %v1716_v49 }
 0x56c   : > { %4831 = vpow2.f32 %v1881_v38  ;;  %v1802_v50 = vsub.f32 %v6257_v53, %v1716_v49 }
 0x56d   : > { %v1891_v4 = vmul.f32 1.442695, %v1805_v29  ;;  %v1893_v30 = vmul.f32 1.442695, %v1806_v17  ;;  %v1883_v0 = vmul.f32 1.442695, %v1801_v7 }
 0x56e   : > { %v1885_v16 = vmul.f32 1.442695, %v1802_v50  ;;  %v1728_v1 = vpop.xlane.xlu1 %1727  ;;  %v1719_v54 = vpop.xlane.xlu0 %1718 }
 0x56f   : > { %4833 = vpow2.f32 %v1891_v4  ;;  %v1809_v47 = vsub.f32 %v6282_v21, %v1728_v1  ;;  %v1810_v18 = vsub.f32 %v6276_v44, %v1728_v1  ;;  %v1803_v14 = vsub.f32 %v6279_v48, %v1719_v54 }
 0x570   : > { %4835 = vpow2.f32 %v1893_v30  ;;  %v1804_v10 = vsub.f32 %v6271_v28, %v1719_v54  ;;  %v7716_v54 = vld [vmem:[#allocation48_spill] sm:$0xff] }
 0x571   : > { %4837 = vpow2.f32 %v1883_v0  ;;  %v1899_v26 = vmul.f32 1.442695, %v1809_v47  ;;  %v1901_v58 = vmul.f32 1.442695, %v1810_v18  ;;  %v1887_v53 = vmul.f32 1.442695, %v1803_v14 }
 0x572   : > { %4839 = vpow2.f32 %v1885_v16  ;;  %v1889_v8 = vmul.f32 1.442695, %v1804_v10  ;;  %v1734_v2 = vpop.xlane.xlu1 %1733  ;;  %v1725_v6 = vpop.xlane.xlu0 %1724  ;;  %v7717_v18 = vld [vmem:[#allocation47_spill] sm:$0xff] }
 0x573   : > { %4841 = vpow2.f32 %v1899_v26  ;;  %v1813_v40 = vsub.f32 %v6298_v27, %v1734_v2  ;;  %v1814_v21 = vsub.f32 %v6292_v5, %v1734_v2  ;;  %v1807_v44 = vsub.f32 %v6295_v41, %v1725_v6 }
 0x574   : > { %4843 = vpow2.f32 %v1901_v58  ;;  %v1808_v48 = vsub.f32 %v6287_v52, %v1725_v6 }
 0x575   : > { %4845 = vpow2.f32 %v1887_v53  ;;  %v1907_v28 = vmul.f32 1.442695, %v1813_v40  ;;  %v1909_v20 = vmul.f32 1.442695, %v1814_v21  ;;  %v1895_v36 = vmul.f32 1.442695, %v1807_v44 }
 0x576   : > { %4847 = vpow2.f32 %v1889_v8  ;;  %v1897_v37 = vmul.f32 1.442695, %v1808_v48  ;;  %v1740_v32 = vpop.xlane.xlu1 %1739  ;;  %v1731_v9 = vpop.xlane.xlu0 %1730 }
 0x577   : > { %4849 = vpow2.f32 %v1907_v28  ;;  %v1817_v46 = vsub.f32 %v6314_v24, %v1740_v32  ;;  %v1818_v27 = vsub.f32 %v6308_v51, %v1740_v32  ;;  %v1811_v5 = vsub.f32 %v6311_v15, %v1731_v9 }
 0x578   : > { %v4830_v42 = vpop.eup %4829  ;;  %4851 = vpow2.f32 %v1909_v20  ;;  %v1812_v41 = vsub.f32 %v6303_v43, %v1731_v9  ;;  %v7719_v9 = vld [vmem:[#allocation49_spill] sm:$0xff] }
 0x579   : > { %v4832_v52 = vpop.eup %4831  ;;  %4853 = vpow2.f32 %v1895_v36  ;;  %v1915_v62 = vmul.f32 1.442695, %v1817_v46  ;;  %v1917_v57 = vmul.f32 1.442695, %v1818_v27  ;;  %v1903_v31 = vmul.f32 1.442695, %v1811_v5 }
 0x57a   : > { %4855 = vpow2.f32 %v1897_v37  ;;  %v1905_v45 = vmul.f32 1.442695, %v1812_v41  ;;  %v1746_v38 = vpop.xlane.xlu1 %1745  ;;  %v1737_v56 = vpop.xlane.xlu0 %1736  ;;  %v1999_v49 = vadd.f32 %v4832_v52, %v4830_v42  ;;  %v7718_v36 = vld [vmem:[#allocation50_spill] sm:$0xff] }
 0x57b   : > { %4857 = vpow2.f32 %v1915_v62  ;;  %v1821_v24 = vsub.f32 %v6330_v61, %v1746_v38  ;;  %v1822_v51 = vsub.f32 %v6324_v33, %v1746_v38  ;;  %v1815_v15 = vsub.f32 %v6327_v25, %v1737_v56 }
 0x57c   : > { %v6481_v29 = vpop.eup %4833  ;;  %4859 = vpow2.f32 %v1917_v57  ;;  %v1816_v43 = vsub.f32 %v6319_v19, %v1737_v56  ;;  %2000 = vadd.xlane.f32.xlu0 %v1999_v49  ;;  %v7720_v49 = vld [vmem:[#allocation52_spill] sm:$0xff] }
 0x57d   : > { %v4836_v17 = vpop.eup %4835  ;;  %4861 = vpow2.f32 %v1903_v31  ;;  %v1923_v7 = vmul.f32 1.442695, %v1821_v24  ;;  %v1925_v50 = vmul.f32 1.442695, %v1822_v51  ;;  %v1911_v4 = vmul.f32 1.442695, %v1815_v15 }
 0x57e   : > { %v4838_v30 = vpop.eup %4837  ;;  %4863 = vpow2.f32 %v1905_v45  ;;  %v1913_v0 = vmul.f32 1.442695, %v1816_v43  ;;  %v1752_v16 = vpop.xlane.xlu1 %1751  ;;  %v2008_v44 = vadd.f32 %v4836_v17, %v6481_v29  ;;  %v7721_v15 = vld [vmem:[#allocation51_spill] sm:$0xff] }
 0x57f   : > { %v1743_v61 = vpop.xlane.xlu0 %1742  ;;  %v4840_v1 = vpop.eup %4839  ;;  %4865 = vpow2.f32 %v1923_v7  ;;  %v1825_v25 = vsub.f32 %v6346_v11, %v1752_v16  ;;  %v1826_v33 = vsub.f32 %v6340_v13, %v1752_v16  ;;  %v2079_v13 = vpack.c.bf16 %v4838_v30, %v4830_v42 }
 0x580   : > { %v1819_v47 = vsub.f32 %v7716_v54, %v1743_v61  ;;  %v6487_v19 = vpop.eup %4841  ;;  %4867 = vpow2.f32 %v1925_v50  ;;  %v1820_v14 = vsub.f32 %v7717_v18, %v1743_v61  ;;  %v2080_v10 = vpack.c.bf16 %v4840_v1, %v4832_v52  ;;  %v7722_v18 = vld [vmem:[#allocation54_spill] sm:$0xff] }
 0x581   : > { %v2002_v26 = vadd.f32 %v4840_v1, %v4838_v30  ;;  %v6490_v58 = vpop.eup %4843  ;;  %4869 = vpow2.f32 %v1911_v4  ;;  %v1931_v53 = vmul.f32 1.442695, %v1825_v25  ;;  %v1933_v8 = vmul.f32 1.442695, %v1826_v33 }
 0x582   : > { %v1919_v2 = vmul.f32 1.442695, %v1819_v47  ;;  %v6492_v6 = vpop.eup %4845  ;;  %4871 = vpow2.f32 %v1913_v0  ;;  %v1921_v11 = vmul.f32 1.442695, %v1820_v14  ;;  %2215 = vmatprep.mubr.bf16.mxu0 %v2080_v10  ;;  %v1758_v40 = vpop.xlane.xlu1 %1757 }
 0x583   : > { %2003 = vadd.xlane.f32.xlu1 %v2002_v26  ;;  %v1749_v21 = vpop.xlane.xlu0 %1748  ;;  %v4848_v48 = vpop.eup %4847  ;;  %4873 = vpow2.f32 %v1931_v53  ;;  %v1829_v28 = vsub.f32 %v6363_v22, %v1758_v40  ;;  %v1830_v20 = vsub.f32 %v6356_v55, %v1758_v40  ;;  %2216 = vmatmul.mubr.bf16.gmra.mxu0 %v2079_v13  ;;  %v2081_v16 = vpack.c.bf16 %v6481_v29, %v6492_v6  ;;  %v7723_v26 = vld [vmem:[#allocation53_spill] sm:$0xff] }
 0x584   : > { %v1823_v37 = vsub.f32 %v7718_v36, %v1749_v21  ;;  %v6498_v32 = vpop.eup %4849  ;;  %4875 = vpow2.f32 %v1933_v8  ;;  %v1824_v46 = vsub.f32 %v7719_v9, %v1749_v21  ;;  %v2082_v27 = vpack.c.bf16 %v4836_v17, %v4848_v48 }
 0x585   : > { %v2005_v5 = vadd.f32 %v4848_v48, %v6492_v6  ;;  %v6502_v42 = vpop.eup %4851  ;;  %4877 = vpow2.f32 %v1919_v2  ;;  %v1939_v41 = vmul.f32 1.442695, %v1829_v28  ;;  %v1941_v52 = vmul.f32 1.442695, %v1830_v20  ;;  %v7724_v48 = vld [vmem:[#allocation56_spill] sm:$0xff] }
 0x586   : > { %v1927_v62 = vmul.f32 1.442695, %v1823_v37  ;;  %v6504_v22 = vpop.eup %4853  ;;  %4879 = vpow2.f32 %v1921_v11  ;;  %v1929_v55 = vmul.f32 1.442695, %v1824_v46  ;;  %2223 = vmatprep.mubr.bf16.mxu0 %v2082_v27  ;;  %v1764_v57 = vpop.xlane.xlu1 %1763  ;;  %v2014_v17 = vadd.f32 %v6490_v58, %v6487_v19  ;;  %v7725_v37 = vld [vmem:[#allocation55_spill] sm:$0xff] }
 0x587   : > { %2009 = vadd.xlane.f32.xlu1 %v2008_v44  ;;  %v1755_v31 = vpop.xlane.xlu0 %1754  ;;  %v4856_v45 = vpop.eup %4855  ;;  %4881 = vpow2.f32 %v1939_v41  ;;  %2006 = vadd.xlane.f32.xlu0 %v2005_v5  ;;  %v1833_v38 = vsub.f32 %v6379_v63, %v1764_v57  ;;  %v1834_v56 = vsub.f32 %v6373_v23, %v1764_v57  ;;  %v2020_v29 = vadd.f32 %v6502_v42, %v6498_v32 }
 0x588   : > { %v1827_v24 = vsub.f32 %v7720_v49, %v1755_v31  ;;  %v6509_v51 = vpop.eup %4857  ;;  %4883 = vpow2.f32 %v1941_v52  ;;  %v1828_v43 = vsub.f32 %v7721_v15, %v1755_v31  ;;  %v2011_v7 = vadd.f32 %v4856_v45, %v6504_v22  ;;  %v4722_v31 = vld [vmem:[%s7587_s4] sm:$0xff]   ;;  %v7726_v49 = vld [vmem:[#allocation57_spill] sm:$0xff] }
 0x589   : > { %v6515_v50 = vpop.eup %4859  ;;  %4885 = vpow2.f32 %v1927_v62  ;;  %v1947_v4 = vmul.f32 1.442695, %v1833_v38  ;;  %v1949_v30 = vmul.f32 1.442695, %v1834_v56  ;;  %v2084_v61 = vpack.c.bf16 %v6490_v58, %v4856_v45  ;;  %4536 = vmatprep.subr.bf16.mxu0 %v4722_v31  ;;  %4655 = vmatprep.subr.bf16.mxu1 %v4722_v31 }
 0x58a   : > { %v1935_v63 = vmul.f32 1.442695, %v1827_v24  ;;  %v6517_v0 = vpop.eup %4861  ;;  %4887 = vpow2.f32 %v1929_v55  ;;  %v1937_v23 = vmul.f32 1.442695, %v1828_v43  ;;  %v1770_v1 = vpop.xlane.xlu1 %1769  ;;  %v2026_v46 = vadd.f32 %v6515_v50, %v6509_v51  ;;  %4537 = vmatpush3.bf16.msra.mxu0 %v4722_v31  ;;  %4657 = vmatpush3.bf16.msra.mxu1 %v4722_v31 }
 0x58b   : > { %2015 = vadd.xlane.f32.xlu1 %v2014_v17  ;;  %v1761_v25 = vpop.xlane.xlu0 %1760  ;;  %v4864_v33 = vpop.eup %4863  ;;  %4889 = vpow2.f32 %v1947_v4  ;;  %2012 = vadd.xlane.f32.xlu0 %v2011_v7  ;;  %v1837_v54 = vsub.f32 %v6395_v35, %v1770_v1  ;;  %v1838_v47 = vsub.f32 %v6389_v39, %v1770_v1  ;;  %v2083_v55 = vpack.c.bf16 %v6487_v19, %v6504_v22  ;;  %v7727_v4 = vld [vmem:[#allocation58_spill] sm:$0xff] }
 0x58c   : > { %v1831_v14 = vsub.f32 %v7722_v18, %v1761_v25  ;;  %v6525_v10 = vpop.eup %4865  ;;  %4891 = vpow2.f32 %v1949_v30  ;;  %2224 = vmatmul.mubr.bf16.gmra.mxu0 %v2081_v16  ;;  %v1832_v53 = vsub.f32 %v7723_v26, %v1761_v25  ;;  %v2017_v58 = vadd.f32 %v4864_v33, %v6517_v0 }
 0x58d   : > { %v6531_v8 = vpop.eup %4867  ;;  %4893 = vpow2.f32 %v1935_v63  ;;  %2231 = vmatprep.mubr.bf16.mxu0 %v2084_v61  ;;  %v1955_v35 = vmul.f32 1.442695, %v1837_v54  ;;  %v1957_v2 = vmul.f32 1.442695, %v1838_v47  ;;  %v2086_v38 = vpack.c.bf16 %v6502_v42, %v4864_v33  ;;  %v7728_v63 = vld [vmem:[#allocation59_spill] sm:$0xff] }
 0x58e   : > { %v1943_v39 = vmul.f32 1.442695, %v1831_v14  ;;  %v6533_v6 = vpop.eup %4869  ;;  %4895 = vpow2.f32 %v1937_v23  ;;  %v1945_v11 = vmul.f32 1.442695, %v1832_v53  ;;  %v1776_v13 = vpop.xlane.xlu1 %1775  ;;  %v2032_v19 = vadd.f32 %v6531_v8, %v6525_v10 }
 0x58f   : > { %2021 = vadd.xlane.f32.xlu1 %v2020_v29  ;;  %v1767_v40 = vpop.xlane.xlu0 %1766  ;;  %v6535_v21 = vpop.eup %4871  ;;  %4897 = vpow2.f32 %v1955_v35  ;;  %2018 = vadd.xlane.f32.xlu0 %v2017_v58  ;;  %v1841_v44 = vsub.f32 %v6405_v34, %v1776_v13  ;;  %v1842_v28 = vsub.f32 %v7724_v48, %v1776_v13 }
 0x590   : > { %v1835_v20 = vsub.f32 %v6411_v59, %v1767_v40  ;;  %v6540_v36 = vpop.eup %4873  ;;  %4899 = vpow2.f32 %v1957_v2  ;;  %v1836_v9 = vsub.f32 %v7725_v37, %v1767_v40  ;;  %v2023_v27 = vadd.f32 %v6535_v21, %v6533_v6 }
 0x591   : > { %v6547_v5 = vpop.eup %4875  ;;  %4901 = vpow2.f32 %v1943_v39  ;;  %v1963_v41 = vmul.f32 1.442695, %v1841_v44  ;;  %v1965_v34 = vmul.f32 1.442695, %v1842_v28  ;;  %v2088_v35 = vpack.c.bf16 %v6515_v50, %v6535_v21 }
 0x592   : > { %v1951_v52 = vmul.f32 1.442695, %v1835_v20  ;;  %v6549_v62 = vpop.eup %4877  ;;  %4903 = vpow2.f32 %v1945_v11  ;;  %v1953_v59 = vmul.f32 1.442695, %v1836_v9  ;;  %v2038_v33 = vadd.f32 %v6547_v5, %v6540_v36 }
 0x593   : > { %2027 = vadd.xlane.f32.xlu1 %v2026_v46  ;;  %v1773_v57 = vpop.xlane.xlu0 %1772  ;;  %v6556_v45 = vpop.eup %4879  ;;  %4905 = vpow2.f32 %v1963_v41  ;;  %2024 = vadd.xlane.f32.xlu0 %v2023_v27  ;;  %v2087_v28 = vpack.c.bf16 %v6509_v51, %v6533_v6  ;;  %v2089_v51 = vpack.c.bf16 %v6525_v10, %v6549_v62 }
 0x594   : > { %v1839_v56 = vsub.f32 %v6421_v60, %v1773_v57  ;;  %v1840_v24 = vsub.f32 %v7726_v49, %v1773_v57  ;;  %v6561_v15 = vpop.eup %4881  ;;  %4907 = vpow2.f32 %v1965_v34  ;;  %2232 = vmatmul.mubr.bf16.gmra.mxu0 %v2083_v55  ;;  %v2029_v22 = vadd.f32 %v6556_v45, %v6549_v62 }
 0x595   : > { %v6567_v43 = vpop.eup %4883  ;;  %4909 = vpow2.f32 %v1951_v52  ;;  %2239 = vmatprep.mubr.bf16.mxu0 %v2086_v38  ;;  %v1782_v60 = vpop.xlane.xlu1 %1781  ;;  %v2090_v37 = vpack.c.bf16 %v6531_v8, %v6556_v45 }
 0x596   : > { %v1959_v42 = vmul.f32 1.442695, %v1839_v56  ;;  %v1961_v17 = vmul.f32 1.442695, %v1840_v24  ;;  %v6569_v7 = vpop.eup %4885  ;;  %4911 = vpow2.f32 %v1953_v59  ;;  %v1845_v30 = vsub.f32 %v7727_v4, %v1782_v60 }
 0x597   : > { %2033 = vadd.xlane.f32.xlu1 %v2032_v19  ;;  %v1846_v23 = vsub.f32 %v7728_v63, %v1782_v60  ;;  %v1779_v16 = vpop.xlane.xlu0 %1778  ;;  %v6573_v61 = vpop.eup %4887  ;;  %2030 = vadd.xlane.f32.xlu0 %v2029_v22  ;;  %v2044_v39 = vadd.f32 %v6567_v43, %v6561_v15  ;;  %v2091_v38 = vpack.c.bf16 %v6540_v36, %v6569_v7 }
 0x598   : > { %4913 = vpow2.f32 %v1959_v42  ;;  %v1843_v1 = vsub.f32 %v6435_v12, %v1779_v16  ;;  %v1844_v25 = vsub.f32 %v6426_v3, %v1779_v16  ;;  %v6579_v54 = vpop.eup %4889  ;;  %v1971_v47 = vmul.f32 1.442695, %v1845_v30 }
 0x599   : > { %4915 = vpow2.f32 %v1961_v17  ;;  %v1973_v18 = vmul.f32 1.442695, %v1846_v23  ;;  %v2035_v14 = vadd.f32 %v6573_v61, %v6569_v7  ;;  %v6583_v26 = vpop.eup %4891  ;;  %v2085_v12 = vpack.c.bf16 %v6498_v32, %v6517_v0 }
 0x59a   : > { %v1967_v53 = vmul.f32 1.442695, %v1843_v1  ;;  %v1969_v29 = vmul.f32 1.442695, %v1844_v25  ;;  %v4894_v58 = vpop.eup %4893  ;;  %4917 = vpow2.f32 %v1971_v47  ;;  %v2050_v0 = vadd.f32 %v6583_v26, %v6579_v54 }
 0x59b   : > { %2039 = vadd.xlane.f32.xlu1 %v2038_v33  ;;  %v4896_v3 = vpop.eup %4895  ;;  %4919 = vpow2.f32 %v1973_v18  ;;  %2036 = vadd.xlane.f32.xlu0 %v2035_v14  ;;  %v2092_v8 = vpack.c.bf16 %v6547_v5, %v6573_v61  ;;  %v2093_v49 = vpack.c.bf16 %v6561_v15, %v4894_v58 }
 0x59c   : > { %v4898_v2 = vpop.eup %4897  ;;  %4921 = vpow2.f32 %v1967_v53  ;;  %2240 = vmatmul.mubr.bf16.gmra.mxu0 %v2085_v12  ;;  %v2041_v11 = vadd.f32 %v4896_v3, %v4894_v58  ;;  %v2094_v56 = vpack.c.bf16 %v6567_v43, %v4896_v3 }
 0x59d   : > { %v4900_v13 = vpop.eup %4899  ;;  %4923 = vpow2.f32 %v1969_v29  ;;  %2247 = vmatprep.mubr.bf16.mxu0 %v2088_v35 }
 0x59e   : > { %v4902_v40 = vpop.eup %4901  ;;  %v2056_v46 = vadd.f32 %v4900_v13, %v4898_v2 }
 0x59f   : > { %2045 = vadd.xlane.f32.xlu1 %v2044_v39  ;;  %v4904_v44 = vpop.eup %4903  ;;  %2042 = vadd.xlane.f32.xlu0 %v2041_v11  ;;  %v2095_v5 = vpack.c.bf16 %v6579_v54, %v4902_v40 }
 0x5a0   : > { %v4906_v32 = vpop.eup %4905  ;;  %v2047_v48 = vadd.f32 %v4904_v44, %v4902_v40  ;;  %v2096_v10 = vpack.c.bf16 %v6583_v26, %v4904_v44 }
 0x5a1   : > { %v4908_v50 = vpop.eup %4907 }
 0x5a2   : > { %v4910_v21 = vpop.eup %4909  ;;  %v2062_v55 = vadd.f32 %v4908_v50, %v4906_v32 }
 0x5a3   : > { %2051 = vadd.xlane.f32.xlu1 %v2050_v0  ;;  %v4912_v20 = vpop.eup %4911  ;;  %2048 = vadd.xlane.f32.xlu0 %v2047_v48  ;;  %v2097_v24 = vpack.c.bf16 %v4898_v2, %v4910_v21 }
 0x5a4   : > { %2248 = vmatmul.mubr.bf16.gmra.mxu0 %v2087_v28  ;;  %v2053_v27 = vadd.f32 %v4912_v20, %v4910_v21  ;;  %v2098_v62 = vpack.c.bf16 %v4900_v13, %v4912_v20 }
 0x5a5   : > { %v4914_v9 = vpop.eup %4913  ;;  %2255 = vmatprep.mubr.bf16.mxu0 %v2090_v37 }
 0x5a6   : > { %v4916_v41 = vpop.eup %4915  ;;  %v2099_v36 = vpack.c.bf16 %v4906_v32, %v4914_v9 }
 0x5a7   : > { %2057 = vadd.xlane.f32.xlu1 %v2056_v46  ;;  %v4918_v34 = vpop.eup %4917  ;;  %2054 = vadd.xlane.f32.xlu0 %v2053_v27  ;;  %v2059_v52 = vadd.f32 %v4916_v41, %v4914_v9  ;;  %v2100_v19 = vpack.c.bf16 %v4908_v50, %v4916_v41 }
 0x5a8   : > { %v4920_v59 = vpop.eup %4919 }
 0x5a9   : > { %v4922_v57 = vpop.eup %4921  ;;  %v2068_v6 = vadd.f32 %v4920_v59, %v4918_v34 }
 0x5aa   : > { %v4924_v31 = vpop.eup %4923  ;;  %v2101_v43 = vpack.c.bf16 %v4918_v34, %v4922_v57 }
 0x5ab   : > { %2063 = vadd.xlane.f32.xlu1 %v2062_v55  ;;  %2060 = vadd.xlane.f32.xlu0 %v2059_v52  ;;  %v2065_v45 = vadd.f32 %v4924_v31, %v4922_v57  ;;  %v2102_v22 = vpack.c.bf16 %v4920_v59, %v4924_v31 }
 0x5ac   : > { %2256 = vmatmul.mubr.bf16.gmra.mxu0 %v2089_v51 }
 0x5ad   : > { %2263 = vmatprep.mubr.bf16.mxu0 %v2092_v8 }
 0x5af   : > { %2069 = vadd.xlane.f32.xlu1 %v2068_v6  ;;  %2066 = vadd.xlane.f32.xlu0 %v2065_v45 }
 0x5b4   : > { %2264 = vmatmul.mubr.bf16.gmra.mxu0 %v2091_v38 }
 0x5b5   : > { %2271 = vmatprep.mubr.bf16.mxu0 %v2094_v56 }
 0x5b8   : > { %v1977_v15 = vpop.xlane.xlu0 %1976 }
 0x5b9   : > { %4925 = vrcp.f32 %v1977_v15 }
 0x5bc   : > { %2272 = vmatmul.mubr.bf16.gmra.mxu0 %v2093_v49  ;;  %v1980_v42 = vpop.xlane.xlu1 %1979 }
 0x5bd   : > { %2279 = vmatprep.mubr.bf16.mxu0 %v2096_v10  ;;  %4927 = vrcp.f32 %v1980_v42 }
 0x5c0   : > { %v1983_v17 = vpop.xlane.xlu0 %1982 }
 0x5c1   : > { %4929 = vrcp.f32 %v1983_v17 }
 0x5c4   : > { %2280 = vmatmul.mubr.bf16.gmra.mxu0 %v2095_v5  ;;  %v1986_v60 = vpop.xlane.xlu1 %1985 }
 0x5c5   : > { %2287 = vmatprep.mubr.bf16.mxu0 %v2098_v62  ;;  %4931 = vrcp.f32 %v1986_v60 }
 0x5c6   : > { %v4926_v16 = vpop.eup %4925 }
 0x5c8   : > { %v1989_v61 = vpop.xlane.xlu0 %1988 }
 0x5c9   : > { %4933 = vrcp.f32 %v1989_v61 }
 0x5ca   : > { %v4928_v25 = vpop.eup %4927 }
 0x5cc   : > { %2288 = vmatmul.mubr.bf16.gmra.mxu0 %v2097_v24  ;;  %v1992_v33 = vpop.xlane.xlu1 %1991 }
 0x5cd   : > { %2295 = vmatprep.mubr.bf16.mxu0 %v2100_v19  ;;  %4935 = vrcp.f32 %v1992_v33 }
 0x5ce   : > { %v4930_v12 = vpop.eup %4929 }
 0x5d0   : > { %v1995_v3 = vpop.xlane.xlu0 %1994 }
 0x5d1   : > { %4937 = vrcp.f32 %v1995_v3 }
 0x5d2   : > { %v4932_v2 = vpop.eup %4931 }
 0x5d4   : > { %2296 = vmatmul.mubr.bf16.gmra.mxu0 %v2099_v36  ;;  %v1998_v39 = vpop.xlane.xlu1 %1997 }
 0x5d5   : > { %2303 = vmatprep.mubr.bf16.mxu0 %v2102_v22  ;;  %4939 = vrcp.f32 %v1998_v39 }
 0x5d6   : > { %v4934_v21 = vpop.eup %4933 }
 0x5da   : > { %v4936_v20 = vpop.eup %4935 }
 0x5dc   : > { %2304 = vmatmul.mubr.bf16.gmra.mxu0 %v2101_v43 }
 0x5de   : > { %v4938_v55 = vpop.eup %4937 }
 0x5e2   : > { %v4940_v31 = vpop.eup %4939 }
 0x5fd   : > { %v4342_v7 = vpop.f32.mrf.mxu0 }
 0x5ff   : > { %v4343_v4 = vpop.f32.mrf.mxu0 }
 0x600   : > { %v4344_v63 = vadd.f32 %v4343_v4, %v4342_v7 }
 0x601   : > { %v4345_v30 = vpop.f32.mrf.mxu0 }
 0x602   : > { %v2344_v47 = vmul.f32 %v4926_v16, %v4344_v63 }
 0x603   : > { %v4346_v23 = vpop.f32.mrf.mxu0 }
 0x604   : > { %v4347_v1 = vadd.f32 %v4346_v23, %v4345_v30 }
 0x605   : > { %v4348_v54 = vpop.f32.mrf.mxu0  ;;  %v2001_v45 = vpop.xlane.xlu0 %2000 }
 0x606   : > { %v2345_v18 = vmul.f32 %v4928_v25, %v4347_v1  ;;  %4941 = vrcp.f32 %v2001_v45 }
 0x607   : > { %v4349_v14 = vpop.f32.mrf.mxu0 }
 0x608   : > { %v2376_v26 = vpack.c.bf16 %v2345_v18, %v2344_v47  ;;  %v4350_v29 = vadd.f32 %v4349_v14, %v4348_v54 }
 0x609   : > { %v4351_v53 = vpop.f32.mrf.mxu0 }
 0x60a   : > { %4538 = vmatprep.mubr.msk.bf16.mxu0 %vm581_vm0, %v2376_v26  ;;  %v2346_v13 = vmul.f32 %v4930_v12, %v4350_v29 }
 0x60b   : > { %v4352_v58 = vpop.f32.mrf.mxu0 }
 0x60c   : > { %v4353_v35 = vadd.f32 %v4352_v58, %v4351_v53  ;;  %v2004_v38 = vpop.xlane.xlu1 %2003 }
 0x60d   : > { %v4354_v11 = vpop.f32.mrf.mxu0  ;;  %4943 = vrcp.f32 %v2004_v38 }
 0x60e   : > { %v2347_v40 = vmul.f32 %v4932_v2, %v4353_v35 }
 0x60f   : > { %v4355_v44 = vpop.f32.mrf.mxu0 }
 0x610   : > { %v2377_v32 = vpack.c.bf16 %v2347_v40, %v2346_v13  ;;  %v4356_v48 = vadd.f32 %v4355_v44, %v4354_v11  ;;  %v2010_v56 = vpop.xlane.xlu1 %2009  ;;  %v2007_v49 = vpop.xlane.xlu0 %2006 }
 0x611   : > { %v4357_v0 = vpop.f32.mrf.mxu0  ;;  %4945 = vrcp.f32 %v2010_v56 }
 0x612   : > { %4539 = vmatmul.mubr.msk.bf16.vlgmr.msra.gmra.mxu0 %vm581_vm0, %v2377_v32  ;;  %v2348_v9 = vmul.f32 %v4934_v21, %v4356_v48  ;;  %4947 = vrcp.f32 %v2007_v49 }
 0x613   : > { %v4358_v50 = vpop.f32.mrf.mxu0  ;;  %v4942_v36 = vpop.eup %4941 }
 0x614   : > { %v4359_v28 = vadd.f32 %v4358_v50, %v4357_v0  ;;  %v2016_v22 = vpop.xlane.xlu1 %2015  ;;  %v2013_v42 = vpop.xlane.xlu0 %2012 }
 0x615   : > { %v4360_v37 = vpop.f32.mrf.mxu0  ;;  %4949 = vrcp.f32 %v2016_v22 }
 0x616   : > { %v2349_v46 = vmul.f32 %v4936_v20, %v4359_v28  ;;  %4951 = vrcp.f32 %v2013_v42 }
 0x617   : > { %v4361_v27 = vpop.f32.mrf.mxu0 }
 0x618   : > { %v2378_v41 = vpack.c.bf16 %v2349_v46, %v2348_v9  ;;  %v4362_v52 = vadd.f32 %v4361_v27, %v4360_v37  ;;  %v2022_v1 = vpop.xlane.xlu1 %2021  ;;  %v2019_v54 = vpop.xlane.xlu0 %2018 }
 0x619   : > { %v4363_v34 = vpop.f32.mrf.mxu0  ;;  %4953 = vrcp.f32 %v2022_v1 }
 0x61a   : > { %4542 = vmatprep.mubr.msk.bf16.mxu0 %vm581_vm0, %v2378_v41  ;;  %v2350_v51 = vmul.f32 %v4938_v55, %v4362_v52  ;;  %v4944_v15 = vpop.eup %4943  ;;  %4955 = vrcp.f32 %v2019_v54 }
 0x61b   : > { %v4364_v59 = vpop.f32.mrf.mxu0 }
 0x61c   : > { %v4365_v57 = vadd.f32 %v4364_v59, %v4363_v34  ;;  %v2028_v35 = vpop.xlane.xlu1 %2027  ;;  %v2025_v11 = vpop.xlane.xlu0 %2024 }
 0x61d   : > { %4957 = vrcp.f32 %v2028_v35 }
 0x61e   : > { %v2351_v6 = vmul.f32 %v4940_v31, %v4365_v57  ;;  %v4946_v61 = vpop.eup %4945  ;;  %4959 = vrcp.f32 %v2025_v11 }
 0x61f   : > { %v4948_v33 = vpop.eup %4947 }
 0x620   : > { %v2379_v8 = vpack.c.bf16 %v2351_v6, %v2350_v51  ;;  %v2034_v20 = vpop.xlane.xlu1 %2033  ;;  %v2031_v46 = vpop.xlane.xlu0 %2030 }
 0x621   : > { %4961 = vrcp.f32 %v2034_v20 }
 0x622   : > { %4543 = vmatmul.mubr.msk.bf16.gmra.mxu0 %vm581_vm0, %v2379_v8  ;;  %v4950_v3 = vpop.eup %4949  ;;  %4963 = vrcp.f32 %v2031_v46 }
 0x623   : > { %v4952_v39 = vpop.eup %4951 }
 0x624   : > { %v2040_v6 = vpop.xlane.xlu1 %2039  ;;  %v2037_v38 = vpop.xlane.xlu0 %2036 }
 0x625   : > { %4965 = vrcp.f32 %v2040_v6 }
 0x626   : > { %v4954_v28 = vpop.eup %4953  ;;  %4967 = vrcp.f32 %v2037_v38 }
 0x627   : > { %v4956_v9 = vpop.eup %4955 }
 0x62a   : > { %v4958_v51 = vpop.eup %4957 }
 0x62b   : > { %v4960_v45 = vpop.eup %4959 }
 0x62e   : > { %v4962_v22 = vpop.eup %4961 }
 0x62f   : > { %v4964_v42 = vpop.eup %4963 }
 0x632   : > { %v4966_v1 = vpop.eup %4965 }
 0x633   : > { %v4968_v54 = vpop.eup %4967 }
 0x643   : > { %v4366_v10 = vpop.f32.mrf.mxu0 }
 0x645   : > { %v4367_v5 = vpop.f32.mrf.mxu0 }
 0x646   : > { %v4368_v24 = vadd.f32 %v4367_v5, %v4366_v10 }
 0x647   : > { %v4369_v62 = vpop.f32.mrf.mxu0 }
 0x648   : > { %v2352_v60 = vmul.f32 %v4942_v36, %v4368_v24 }
 0x649   : > { %v4370_v19 = vpop.f32.mrf.mxu0 }
 0x64a   : > { %v4371_v43 = vadd.f32 %v4370_v19, %v4369_v62 }
 0x64c   : > { %v4372_v17 = vpop.f32.mrf.mxu0  ;;  %v2353_v7 = vmul.f32 %v4944_v15, %v4371_v43  ;;  %v2046_v43 = vpop.xlane.xlu1 %2045 }
 0x64d   : > { %4969 = vrcp.f32 %v2046_v43 }
 0x64e   : > { %v4373_v4 = vpop.f32.mrf.mxu0  ;;  %v2380_v30 = vpack.c.bf16 %v2353_v7, %v2352_v60 }
 0x64f   : > { %v4374_v23 = vadd.f32 %v4373_v4, %v4372_v17  ;;  %v2043_v17 = vpop.xlane.xlu0 %2042 }
 0x650   : > { %v4375_v63 = vpop.f32.mrf.mxu0  ;;  %4546 = vmatprep.mubr.msk.bf16.mxu0 %vm581_vm0, %v2380_v30  ;;  %4971 = vrcp.f32 %v2043_v17 }
 0x651   : > { %v2354_v18 = vmul.f32 %v4948_v33, %v4374_v23 }
 0x652   : > { %v4376_v16 = vpop.f32.mrf.mxu0 }
 0x653   : > { %v4377_v25 = vadd.f32 %v4376_v16, %v4375_v63 }
 0x654   : > { %v4378_v47 = vpop.f32.mrf.mxu0 }
 0x655   : > { %v2355_v14 = vmul.f32 %v4946_v61, %v4377_v25  ;;  %v2052_v25 = vpop.xlane.xlu1 %2051 }
 0x656   : > { %v4379_v26 = vpop.f32.mrf.mxu0  ;;  %4973 = vrcp.f32 %v2052_v25 }
 0x657   : > { %v2381_v53 = vpack.c.bf16 %v2355_v14, %v2354_v18  ;;  %v4380_v58 = vadd.f32 %v4379_v26, %v4378_v47  ;;  %v2049_v47 = vpop.xlane.xlu0 %2048 }
 0x658   : > { %v4381_v29 = vpop.f32.mrf.mxu0  ;;  %4975 = vrcp.f32 %v2049_v47 }
 0x659   : > { %4547 = vmatmul.mubr.msk.bf16.gmra.mxu0 %vm581_vm0, %v2381_v53  ;;  %v2356_v40 = vmul.f32 %v4952_v39, %v4380_v58 }
 0x65a   : > { %v4382_v12 = vpop.f32.mrf.mxu0  ;;  %v4970_v35 = vpop.eup %4969 }
 0x65b   : > { %v4383_v2 = vadd.f32 %v4382_v12, %v4381_v29 }
 0x65c   : > { %v4384_v13 = vpop.f32.mrf.mxu0 }
 0x65d   : > { %v2357_v44 = vmul.f32 %v4950_v3, %v4383_v2  ;;  %v2058_v2 = vpop.xlane.xlu1 %2057  ;;  %v4972_v11 = vpop.eup %4971 }
 0x65e   : > { %v4385_v32 = vpop.f32.mrf.mxu0  ;;  %4977 = vrcp.f32 %v2058_v2  ;;  %v7730_v2 = vld [vmem:[#allocation16_spill] sm:$0xff] }
 0x65f   : > { %v2382_v0 = vpack.c.bf16 %v2357_v44, %v2356_v40  ;;  %v4386_v50 = vadd.f32 %v4385_v32, %v4384_v13  ;;  %v2055_v13 = vpop.xlane.xlu0 %2054 }
 0x660   : > { %v4387_v48 = vpop.f32.mrf.mxu0  ;;  %4979 = vrcp.f32 %v2055_v13 }
 0x661   : > { %4550 = vmatprep.mubr.msk.bf16.mxu0 %vm581_vm0, %v2382_v0  ;;  %v2358_v41 = vmul.f32 %v4956_v9, %v4386_v50 }
 0x662   : > { %v4388_v21 = vpop.f32.mrf.mxu0 }
 0x663   : > { %v4389_v37 = vadd.f32 %v4388_v21, %v4387_v48  ;;  %v4974_v20 = vpop.eup %4973 }
 0x664   : > { %v4390_v27 = vpop.f32.mrf.mxu0 }
 0x665   : > { %v2359_v34 = vmul.f32 %v4954_v28, %v4389_v37  ;;  %v2064_v37 = vpop.xlane.xlu1 %2063  ;;  %v4976_v46 = vpop.eup %4975 }
 0x666   : > { %v4391_v52 = vpop.f32.mrf.mxu0  ;;  %4981 = vrcp.f32 %v2064_v37 }
 0x667   : > { %v2383_v59 = vpack.c.bf16 %v2359_v34, %v2358_v41  ;;  %v4392_v57 = vadd.f32 %v4391_v52, %v4390_v27  ;;  %v2061_v27 = vpop.xlane.xlu0 %2060 }
 0x668   : > { %v4393_v55 = vpop.f32.mrf.mxu0  ;;  %4983 = vrcp.f32 %v2061_v27 }
 0x669   : > { %4551 = vmatmul.mubr.msk.bf16.gmra.mxu0 %vm581_vm0, %v2383_v59  ;;  %v2360_v49 = vmul.f32 %v4960_v45, %v4392_v57 }
 0x66a   : > { %v4394_v31 = vpop.f32.mrf.mxu0 }
 0x66b   : > { %v4395_v8 = vadd.f32 %v4394_v31, %v4393_v55  ;;  %v4978_v6 = vpop.eup %4977 }
 0x66c   : > { %v4396_v56 = vpop.f32.mrf.mxu0 }
 0x66d   : > { %v2361_v10 = vmul.f32 %v4958_v51, %v4395_v8  ;;  %v2070_v8 = vpop.xlane.xlu1 %2069  ;;  %v4980_v38 = vpop.eup %4979 }
 0x66e   : > { %v4397_v5 = vpop.f32.mrf.mxu0  ;;  %4985 = vrcp.f32 %v2070_v8 }
 0x66f   : > { %v2384_v62 = vpack.c.bf16 %v2361_v10, %v2360_v49  ;;  %v4398_v19 = vadd.f32 %v4397_v5, %v4396_v56  ;;  %v2067_v56 = vpop.xlane.xlu0 %2066 }
 0x670   : > { %v4399_v24 = vpop.f32.mrf.mxu0  ;;  %4987 = vrcp.f32 %v2067_v56 }
 0x671   : > { %4554 = vmatprep.mubr.msk.bf16.mxu1 %vm581_vm0, %v2384_v62  ;;  %v2362_v7 = vmul.f32 %v4964_v42, %v4398_v19 }
 0x672   : > { %v4400_v36 = vpop.f32.mrf.mxu0 }
 0x673   : > { %v4401_v15 = vadd.f32 %v4400_v36, %v4399_v24  ;;  %v4982_v43 = vpop.eup %4981 }
 0x674   : > { %v4402_v60 = vpop.f32.mrf.mxu0 }
 0x675   : > { %v2363_v4 = vmul.f32 %v4962_v22, %v4401_v15  ;;  %v4984_v42 = vpop.eup %4983 }
 0x676   : > { %v4403_v30 = vpop.f32.mrf.mxu0 }
 0x677   : > { %v2385_v63 = vpack.c.bf16 %v2363_v4, %v2362_v7  ;;  %v4404_v16 = vadd.f32 %v4403_v30, %v4402_v60 }
 0x678   : > { %v4405_v23 = vpop.f32.mrf.mxu0 }
 0x679   : > { %4555 = vmatmul.mubr.msk.bf16.vlgmr.msra.gmra.mxu1 %vm581_vm0, %v2385_v63  ;;  %v2364_v14 = vmul.f32 %v4968_v54, %v4404_v16 }
 0x67a   : > { %v4406_v61 = vpop.f32.mrf.mxu0 }
 0x67b   : > { %v4407_v33 = vadd.f32 %v4406_v61, %v4405_v23  ;;  %v4986_v61 = vpop.eup %4985 }
 0x67c   : > { %v4408_v18 = vpop.f32.mrf.mxu0 }
 0x67d   : > { %v2365_v26 = vmul.f32 %v4966_v1, %v4407_v33  ;;  %v4988_v25 = vpop.eup %4987 }
 0x67e   : > { %v4409_v53 = vpop.f32.mrf.mxu0 }
 0x67f   : > { %v2386_v29 = vpack.c.bf16 %v2365_v26, %v2364_v14  ;;  %v4410_v12 = vadd.f32 %v4409_v53, %v4408_v18  ;;  %v6626_v14 = vld [vmem:[%s7588_s5] ss:$0 sm:$0xff] }
 0x680   : > { %v4411_v58 = vpop.f32.mrf.mxu0 }
 0x681   : > { %4558 = vmatprep.mubr.msk.bf16.mxu1 %vm581_vm0, %v2386_v29  ;;  %v2366_v44 = vmul.f32 %v4972_v11, %v4410_v12  ;;  %v7729_v12 = vld [vmem:[#allocation14_spill] sm:$0xff] }
 0x682   : > { %v4412_v3 = vpop.f32.mrf.mxu0 }
 0x683   : > { %v4413_v39 = vadd.f32 %v4412_v3, %v4411_v58 }
 0x684   : > { %v4414_v40 = vpop.f32.mrf.mxu0 }
 0x685   : > { %v2367_v32 = vmul.f32 %v4970_v35, %v4413_v39 }
 0x686   : > { %v4415_v0 = vpop.f32.mrf.mxu0 }
 0x687   : > { %v2387_v48 = vpack.c.bf16 %v2367_v32, %v2366_v44  ;;  %v4416_v21 = vadd.f32 %v4415_v0, %v4414_v40  ;;  %v7731_v44 = vld [vmem:[#allocation15_spill] sm:$0xff]  ;;  %v7732_v0 = vld [vmem:[#allocation17_spill] sm:$0xff] }
 0x688   : > { %v4417_v50 = vpop.f32.mrf.mxu0 }
 0x689   : > { %4559 = vmatmul.mubr.msk.bf16.gmra.mxu1 %vm581_vm0, %v2387_v48  ;;  %v2368_v34 = vmul.f32 %v4976_v46, %v4416_v21 }
 0x68a   : > { %v4418_v28 = vpop.f32.mrf.mxu0 }
 0x68b   : > { %v4419_v9 = vadd.f32 %v4418_v28, %v4417_v50 }
 0x68c   : > { %v4420_v41 = vpop.f32.mrf.mxu0 }
 0x68d   : > { %v2369_v52 = vmul.f32 %v4974_v20, %v4419_v9 }
 0x68e   : > { %v4421_v59 = vpop.f32.mrf.mxu0 }
 0x68f   : > { %v2388_v55 = vpack.c.bf16 %v2369_v52, %v2368_v34  ;;  %v4422_v31 = vadd.f32 %v4421_v59, %v4420_v41  ;;  %v7733_v41 = vld [vmem:[#allocation18_spill] sm:$0xff]  ;;  %v7734_v59 = vld [vmem:[#allocation20_spill] sm:$0xff] }
 0x690   : > { %v4423_v57 = vpop.f32.mrf.mxu0 }
 0x691   : > { %4562 = vmatprep.mubr.msk.bf16.mxu1 %vm581_vm0, %v2388_v55  ;;  %v2370_v10 = vmul.f32 %v4980_v38, %v4422_v31 }
 0x692   : > { %v4424_v51 = vpop.f32.mrf.mxu0 }
 0x693   : > { %v4425_v45 = vadd.f32 %v4424_v51, %v4423_v57 }
 0x694   : > { %v4426_v49 = vpop.f32.mrf.mxu0 }
 0x695   : > { %v2371_v5 = vmul.f32 %v4978_v6, %v4425_v45  ;;  %v7735_v6 = vld [vmem:[#allocation19_spill] sm:$0xff]  ;;  %v7736_v45 = vld [vmem:[#allocation21_spill] sm:$0xff] }
 0x696   : > { %v4427_v62 = vpop.f32.mrf.mxu0 }
 0x697   : > { %v2389_v24 = vpack.c.bf16 %v2371_v5, %v2370_v10  ;;  %v4428_v36 = vadd.f32 %v4427_v62, %v4426_v49 }
 0x698   : > { %v4429_v19 = vpop.f32.mrf.mxu0 }
 0x699   : > { %4563 = vmatmul.mubr.msk.bf16.gmra.mxu1 %vm581_vm0, %v2389_v24  ;;  %v2372_v60 = vmul.f32 %v4984_v42, %v4428_v36  ;;  %v7738_v42 = vld [vmem:[#allocation24_spill] sm:$0xff] }
 0x69a   : > { %v4430_v22 = vpop.f32.mrf.mxu0 }
 0x69b   : > { %v4431_v15 = vadd.f32 %v4430_v22, %v4429_v19  ;;  %v7737_v22 = vld [vmem:[#allocation22_spill] sm:$0xff] }
 0x69c   : > { %v4432_v17 = vpop.f32.mrf.mxu0 }
 0x69d   : > { %v2373_v7 = vmul.f32 %v4982_v43, %v4431_v15 }
 0x69e   : > { %v4433_v4 = vpop.f32.mrf.mxu0 }
 0x69f   : > { %v2390_v30 = vpack.c.bf16 %v2373_v7, %v2372_v60  ;;  %v4434_v23 = vadd.f32 %v4433_v4, %v4432_v17 }
 0x6a0   : > { %v4435_v63 = vpop.f32.mrf.mxu0 }
 0x6a1   : > { %4566 = vmatprep.mubr.msk.bf16.mxu1 %vm581_vm0, %v2390_v30  ;;  %v2374_v33 = vmul.f32 %v4988_v25, %v4434_v23  ;;  %v7739_v30 = vld [vmem:[#allocation23_spill] sm:$0xff]  ;;  %v7740_v23 = vld [vmem:[#allocation25_spill] sm:$0xff] }
 0x6a2   : > { %v4436_v16 = vpop.f32.mrf.mxu0 }
 0x6a3   : > { %v4437_v1 = vadd.f32 %v4436_v16, %v4435_v63 }
 0x6a5   : > { %v2375_v54 = vmul.f32 %v4986_v61, %v4437_v1 }
 0x6a7   : > { %v2391_v47 = vpack.c.bf16 %v2375_v54, %v2374_v33 }
 0x6a9   : > { %4567 = vmatmul.mubr.msk.bf16.gmra.mxu1 %vm581_vm0, %v2391_v47 }
 0x6d2   : > { %v4540_v18 = vpop.f32.mrf.mxu0 }
 0x6d3   : > { %v2506_v53 = vadd.f32 %v4540_v18, %v6626_v14 }
 0x6d4   : > { %v2497_v26 = vpop.f32.mrf.mxu0 }
 0x6d5   : > { %v2498_v29 = vadd.f32 %v6626_v14, %v2497_v26  ;;  %v6634_v39 = vadd.f32 %v2506_v53, %v7730_v2  ;;  %v7741_v53 = vld [vmem:[#allocation26_spill] sm:$0xff] }
 0x6d6   : > { %v4541_v58 = vpop.f32.mrf.mxu0 }
 0x6d7   : > { %v6631_v3 = vadd.f32 %v2498_v29, %v7729_v12  ;;  %v2509_v11 = vadd.f32 %v4541_v58, %v6626_v14  ;;  %v2664_v21 = vsel %vm581_vm0, %v6634_v39, 0.0  ;;  %v7742_v12 = vld [vmem:[#allocation28_spill] sm:$0xff] }
 0x6d8   : > { %v2500_v35 = vpop.f32.mrf.mxu0 }
 0x6d9   : > { %v2501_v13 = vadd.f32 %v6626_v14, %v2500_v35  ;;  %v2658_v40 = vsel %vm581_vm0, %v6631_v3, 0.0  ;;  %v6644_v48 = vadd.f32 %v2509_v11, %v7732_v0  ;;  %v7744_v0 = vld [vmem:[#allocation29_spill] sm:$0xff] }
 0x6da   : > { %2659 = vadd.xlane.f32.xlu0 %v2658_v40  ;;  %v7743_v40 = vld [vmem:[#allocation27_spill] sm:$0xff] }
 0x6db   : > { %v6641_v32 = vadd.f32 %v2501_v13, %v7731_v44  ;;  %v2667_v28 = vsel %vm581_vm0, %v6644_v48, 0.0 }
 0x6dd   : > { %v2661_v50 = vsel %vm581_vm0, %v6641_v32, 0.0 }
 0x6de   : > { %2662 = vadd.xlane.f32.xlu1 %v2661_v50  ;;  %2665 = vadd.xlane.f32.xlu0 %v2664_v21 }
 0x6e2   : > { %2668 = vadd.xlane.f32.xlu1 %v2667_v28  ;;  %v4544_v20 = vpop.f32.mrf.mxu0 }
 0x6e3   : > { %v2522_v9 = vadd.f32 %v4544_v20, %v6626_v14 }
 0x6e4   : > { %v2513_v37 = vpop.f32.mrf.mxu0 }
 0x6e5   : > { %v2514_v46 = vadd.f32 %v6626_v14, %v2513_v37  ;;  %v6658_v55 = vadd.f32 %v2522_v9, %v7734_v59 }
 0x6e6   : > { %v4545_v27 = vpop.f32.mrf.mxu0 }
 0x6e7   : > { %v6655_v34 = vadd.f32 %v2514_v46, %v7733_v41  ;;  %v2525_v57 = vadd.f32 %v4545_v27, %v6626_v14  ;;  %v2676_v49 = vsel %vm581_vm0, %v6658_v55, 0.0 }
 0x6e8   : > { %v2516_v52 = vpop.f32.mrf.mxu0 }
 0x6e9   : > { %v2517_v31 = vadd.f32 %v6626_v14, %v2516_v52  ;;  %v2670_v51 = vsel %vm581_vm0, %v6655_v34, 0.0  ;;  %v6668_v38 = vadd.f32 %v2525_v57, %v7736_v45  ;;  %v7745_v52 = vld [vmem:[#allocation30_spill] sm:$0xff] }
 0x6ea   : > { %2671 = vadd.xlane.f32.xlu0 %v2670_v51 }
 0x6eb   : > { %v6665_v8 = vadd.f32 %v2517_v31, %v7735_v6  ;;  %v2679_v10 = vsel %vm581_vm0, %v6668_v38, 0.0  ;;  %v7746_v31 = vld [vmem:[#allocation32_spill] sm:$0xff] }
 0x6ed   : > { %v2673_v56 = vsel %vm581_vm0, %v6665_v8, 0.0 }
 0x6ee   : > { %2674 = vadd.xlane.f32.xlu1 %v2673_v56  ;;  %2677 = vadd.xlane.f32.xlu0 %v2676_v49  ;;  %v7747_v49 = vld [vmem:[#allocation31_spill] sm:$0xff] }
 0x6f2   : > { %2680 = vadd.xlane.f32.xlu1 %v2679_v10 }
 0x719   : > { %v4548_v5 = vpop.f32.mrf.mxu0 }
 0x71a   : > { %v2538_v24 = vadd.f32 %v4548_v5, %v6626_v14  ;;  %v7748_v5 = vld [vmem:[#allocation33_spill] sm:$0xff] }
 0x71b   : > { %v2529_v62 = vpop.f32.mrf.mxu0 }
 0x71c   : > { %v2530_v19 = vadd.f32 %v6626_v14, %v2529_v62  ;;  %v6682_v17 = vadd.f32 %v2538_v24, %v7738_v42 }
 0x71d   : > { %v4549_v36 = vpop.f32.mrf.mxu0 }
 0x71e   : > { %v6679_v43 = vadd.f32 %v2530_v19, %v7737_v22  ;;  %v2541_v60 = vadd.f32 %v4549_v36, %v6626_v14  ;;  %v2688_v1 = vsel %vm581_vm0, %v6682_v17, 0.0 }
 0x71f   : > { %v2532_v15 = vpop.f32.mrf.mxu0 }
 0x720   : > { %v2533_v7 = vadd.f32 %v6626_v14, %v2532_v15  ;;  %v2682_v4 = vsel %vm581_vm0, %v6679_v43, 0.0  ;;  %v6692_v16 = vadd.f32 %v2541_v60, %v7740_v23 }
 0x721   : > { %2683 = vadd.xlane.f32.xlu0 %v2682_v4  ;;  %v7749_v4 = vld [vmem:[#allocation34_spill] sm:$0xff] }
 0x722   : > { %v6689_v63 = vadd.f32 %v2533_v7, %v7739_v30  ;;  %v2691_v25 = vsel %vm581_vm0, %v6692_v16, 0.0 }
 0x724   : > { %v2685_v61 = vsel %vm581_vm0, %v6689_v63, 0.0 }
 0x725   : > { %2686 = vadd.xlane.f32.xlu1 %v2685_v61  ;;  %2689 = vadd.xlane.f32.xlu0 %v2688_v1  ;;  %v7750_v61 = vld [vmem:[#allocation36_spill] sm:$0xff] }
 0x729   : > { %2692 = vadd.xlane.f32.xlu1 %v2691_v25  ;;  %v4552_v33 = vpop.f32.mrf.mxu0 }
 0x72a   : > { %v2554_v47 = vadd.f32 %v4552_v33, %v6626_v14 }
 0x72b   : > { %v2545_v54 = vpop.f32.mrf.mxu0 }
 0x72c   : > { %v2546_v18 = vadd.f32 %v6626_v14, %v2545_v54  ;;  %v6706_v35 = vadd.f32 %v2554_v47, %v7742_v12  ;;  %v7751_v47 = vld [vmem:[#allocation35_spill] sm:$0xff] }
 0x72d   : > { %v4553_v26 = vpop.f32.mrf.mxu0 }
 0x72e   : > { %v6703_v29 = vadd.f32 %v2546_v18, %v7741_v53  ;;  %v2557_v2 = vadd.f32 %v4553_v26, %v6626_v14  ;;  %v2700_v28 = vsel %vm581_vm0, %v6706_v35, 0.0  ;;  %v7752_v26 = vld [vmem:[#allocation37_spill] sm:$0xff] }
 0x72f   : > { %v2548_v58 = vpop.f32.mrf.mxu0 }
 0x730   : > { %v2549_v11 = vadd.f32 %v6626_v14, %v2548_v58  ;;  %v2694_v13 = vsel %vm581_vm0, %v6703_v29, 0.0  ;;  %v6716_v50 = vadd.f32 %v2557_v2, %v7744_v0 }
 0x731   : > { %2695 = vadd.xlane.f32.xlu0 %v2694_v13 }
 0x732   : > { %v6713_v44 = vadd.f32 %v2549_v11, %v7743_v40  ;;  %v2703_v20 = vsel %vm581_vm0, %v6716_v50, 0.0 }
 0x734   : > { %v2697_v21 = vsel %vm581_vm0, %v6713_v44, 0.0 }
 0x735   : > { %2698 = vadd.xlane.f32.xlu1 %v2697_v21  ;;  %2701 = vadd.xlane.f32.xlu0 %v2700_v28  ;;  %v7753_v28 = vld [vmem:[#allocation38_spill] sm:$0xff] }
 0x739   : > { %2704 = vadd.xlane.f32.xlu1 %v2703_v20  ;;  %v4556_v37 = vpop.f32.mrf.mxu1 }
 0x73a   : > { %v2570_v46 = vadd.f32 %v4556_v37, %v6626_v14 }
 0x73b   : > { %v2561_v9 = vpop.f32.mrf.mxu1 }
 0x73c   : > { %v2562_v27 = vadd.f32 %v6626_v14, %v2561_v9  ;;  %v6730_v51 = vadd.f32 %v2570_v46, %v7746_v31  ;;  %v7754_v9 = vld [vmem:[#allocation40_spill] sm:$0xff] }
 0x73d   : > { %v4557_v41 = vpop.f32.mrf.mxu1 }
 0x73e   : > { %v6727_v59 = vadd.f32 %v2562_v27, %v7745_v52  ;;  %v2573_v6 = vadd.f32 %v4557_v41, %v6626_v14  ;;  %v2712_v19 = vsel %vm581_vm0, %v6730_v51, 0.0 }
 0x73f   : > { %v2564_v57 = vpop.f32.mrf.mxu1 }
 0x740   : > { %v2565_v45 = vadd.f32 %v6626_v14, %v2564_v57  ;;  %v2706_v56 = vsel %vm581_vm0, %v6727_v59, 0.0  ;;  %v6740_v62 = vadd.f32 %v2573_v6, %v7748_v5  ;;  %v7755_v57 = vld [vmem:[#allocation39_spill] sm:$0xff]  ;;  %v7756_v6 = vld [vmem:[#allocation41_spill] sm:$0xff] }
 0x741   : > { %2707 = vadd.xlane.f32.xlu0 %v2706_v56 }
 0x742   : > { %v6737_v10 = vadd.f32 %v2565_v45, %v7747_v49  ;;  %v2715_v36 = vsel %vm581_vm0, %v6740_v62, 0.0 }
 0x744   : > { %v2709_v24 = vsel %vm581_vm0, %v6737_v10, 0.0 }
 0x745   : > { %2710 = vadd.xlane.f32.xlu1 %v2709_v24  ;;  %2713 = vadd.xlane.f32.xlu0 %v2712_v19 }
 0x749   : > { %2716 = vadd.xlane.f32.xlu1 %v2715_v36  ;;  %v4560_v22 = vpop.f32.mrf.mxu1 }
 0x74a   : > { %v2586_v42 = vadd.f32 %v4560_v22, %v6626_v14 }
 0x74b   : > { %v2577_v15 = vpop.f32.mrf.mxu1 }
 0x74c   : > { %v2578_v60 = vadd.f32 %v6626_v14, %v2577_v15  ;;  %v6754_v1 = vadd.f32 %v2586_v42, %v7750_v61 }
 0x74d   : > { %v4561_v7 = vpop.f32.mrf.mxu1 }
 0x74e   : > { %v6751_v30 = vadd.f32 %v2578_v60, %v7749_v4  ;;  %v2589_v25 = vadd.f32 %v4561_v7, %v6626_v14  ;;  %v2724_v12 = vsel %vm581_vm0, %v6754_v1, 0.0 }
 0x74f   : > { %v2580_v23 = vpop.f32.mrf.mxu1 }
 0x750   : > { %v2581_v33 = vadd.f32 %v6626_v14, %v2580_v23  ;;  %v2718_v54 = vsel %vm581_vm0, %v6751_v30, 0.0  ;;  %v6764_v53 = vadd.f32 %v2589_v25, %v7752_v26  ;;  %v7757_v23 = vld [vmem:[#allocation42_spill] sm:$0xff]  ;;  %v7758_v26 = vld [vmem:[#allocation44_spill] sm:$0xff] }
 0x751   : > { %2719 = vadd.xlane.f32.xlu0 %v2718_v54 }
 0x752   : > { %v6761_v18 = vadd.f32 %v2581_v33, %v7751_v47  ;;  %v2727_v2 = vsel %vm581_vm0, %v6764_v53, 0.0 }
 0x754   : > { %v2721_v58 = vsel %vm581_vm0, %v6761_v18, 0.0 }
 0x755   : > { %2722 = vadd.xlane.f32.xlu1 %v2721_v58  ;;  %2725 = vadd.xlane.f32.xlu0 %v2724_v12 }
 0x759   : > { %2728 = vadd.xlane.f32.xlu1 %v2727_v2  ;;  %v4564_v11 = vpop.f32.mrf.mxu1 }
 0x75a   : > { %v2602_v40 = vadd.f32 %v4564_v11, %v6626_v14 }
 0x75b   : > { %v2593_v13 = vpop.f32.mrf.mxu1 }
 0x75c   : > { %v2594_v0 = vadd.f32 %v6626_v14, %v2593_v13  ;;  %v6778_v46 = vadd.f32 %v2602_v40, %v7754_v9  ;;  %v7759_v40 = vld [vmem:[#allocation43_spill] sm:$0xff] }
 0x75d   : > { %v4565_v21 = vpop.f32.mrf.mxu1 }
 0x75e   : > { %v6775_v20 = vadd.f32 %v2594_v0, %v7753_v28  ;;  %v2605_v27 = vadd.f32 %v4565_v21, %v6626_v14  ;;  %v2736_v49 = vsel %vm581_vm0, %v6778_v46, 0.0 }
 0x75f   : > { %v2596_v37 = vpop.f32.mrf.mxu1 }
 0x760   : > { %v2597_v41 = vadd.f32 %v6626_v14, %v2596_v37  ;;  %v2730_v52 = vsel %vm581_vm0, %v6775_v20, 0.0  ;;  %v6788_v45 = vadd.f32 %v2605_v27, %v7756_v6  ;;  %v7760_v27 = vld [vmem:[#allocation45_spill] sm:$0xff] }
 0x761   : > { %2731 = vadd.xlane.f32.xlu0 %v2730_v52 }
 0x762   : > { %v6785_v31 = vadd.f32 %v2597_v41, %v7755_v57  ;;  %v2739_v24 = vsel %vm581_vm0, %v6788_v45, 0.0 }
 0x763   : > { %v2660_v5 = vpop.xlane.xlu0 %2659 }
 0x764   : > { %v2733_v56 = vsel %vm581_vm0, %v6785_v31, 0.0  ;;  %v2754_v22 = vmul.f32 0.03125, %v2660_v5 }
 0x765   : > { %2734 = vadd.xlane.f32.xlu1 %v2733_v56  ;;  %2737 = vadd.xlane.f32.xlu0 %v2736_v49 }
 0x766   : > { %v6802_v25 = vsub.f32 %v6631_v3, %v2754_v22 }
 0x767   : > { %v2663_v36 = vpop.xlane.xlu1 %2662  ;;  %v2666_v7 = vpop.xlane.xlu0 %2665 }
 0x768   : > { %v2755_v33 = vmul.f32 0.03125, %v2663_v36  ;;  %v2756_v54 = vmul.f32 0.03125, %v2666_v7  ;;  %v2818_v9 = vmul.f32 %v6802_v25, %v6802_v25 }
 0x769   : > { %2740 = vadd.xlane.f32.xlu1 %v2739_v24  ;;  %v4568_v19 = vpop.f32.mrf.mxu1 }
 0x76a   : > { %v2618_v42 = vadd.f32 %v4568_v19, %v6626_v14  ;;  %v6815_v3 = vsub.f32 %v6641_v32, %v2755_v33  ;;  %v6818_v21 = vsub.f32 %v6634_v39, %v2756_v54  ;;  %v2850_v32 = vsel %vm581_vm0, %v2818_v9, 0.0 }
 0x76b   : > { %v2609_v15 = vpop.f32.mrf.mxu1  ;;  %v2669_v2 = vpop.xlane.xlu1 %2668 }
 0x76c   : > { %v2610_v60 = vadd.f32 %v6626_v14, %v2609_v15  ;;  %v6805_v58 = vadd.f32 %v2618_v42, %v7758_v26  ;;  %v2757_v28 = vmul.f32 0.03125, %v2669_v2  ;;  %v2819_v49 = vmul.f32 %v6815_v3, %v6815_v3 }
 0x76d   : > { %v4569_v4 = vpop.f32.mrf.mxu1  ;;  %v2820_v5 = vmul.f32 %v6818_v21, %v6818_v21 }
 0x76e   : > { %v6799_v61 = vadd.f32 %v2610_v60, %v7757_v23  ;;  %v2621_v12 = vadd.f32 %v4569_v4, %v6626_v14  ;;  %v2748_v52 = vsel %vm581_vm0, %v6805_v58, 0.0  ;;  %v6830_v39 = vsub.f32 %v6644_v48, %v2757_v28 }
 0x76f   : > { %v2612_v47 = vpop.f32.mrf.mxu1  ;;  %v2853_v48 = vsel %vm581_vm0, %v2819_v49, 0.0  ;;  %v2856_v15 = vsel %vm581_vm0, %v2820_v5, 0.0 }
 0x770   : > { %v2613_v11 = vadd.f32 %v6626_v14, %v2612_v47  ;;  %v2742_v13 = vsel %vm581_vm0, %v6799_v61, 0.0  ;;  %v6823_v14 = vadd.f32 %v2621_v12, %v7760_v27  ;;  %v2821_v60 = vmul.f32 %v6830_v39, %v6830_v39 }
 0x771   : > { %2743 = vadd.xlane.f32.xlu0 %v2742_v13  ;;  %v4724_v13 = vld [vmem:[%s7593_s10] sm:$0xff]  }
 0x772   : > { %v6812_v0 = vadd.f32 %v2613_v11, %v7759_v40  ;;  %v2751_v19 = vsel %vm581_vm0, %v6823_v14, 0.0  ;;  %v2859_v33 = vsel %vm581_vm0, %v2821_v60, 0.0  ;;  %v4723_v11 = vld [vmem:[%s7593_s10 + $0x8] sm:$0xff]  }
 0x773   : > { %v2672_v37 = vpop.xlane.xlu0 %2671  ;;  %4570 = vmatprep.subr.bf16.mxu0 %v4723_v11 }
 0x774   : > { %v2745_v41 = vsel %vm581_vm0, %v6812_v0, 0.0  ;;  %v2758_v57 = vmul.f32 0.03125, %v2672_v37  ;;  %4571 = vmatpush3.bf16.msra.mxu0 %v4723_v11 }
 0x775   : > { %2746 = vadd.xlane.f32.xlu1 %v2745_v41  ;;  %2749 = vadd.xlane.f32.xlu0 %v2748_v52 }
 0x776   : > { %v6838_v24 = vsub.f32 %v6655_v34, %v2758_v57  ;;  %4572 = vmatprep.subr.bf16.mxu0 %v4724_v13 }
 0x777   : > { %v2675_v6 = vpop.xlane.xlu1 %2674  ;;  %v2678_v56 = vpop.xlane.xlu0 %2677 }
 0x778   : > { %v2759_v36 = vmul.f32 0.03125, %v2675_v6  ;;  %v2760_v22 = vmul.f32 0.03125, %v2678_v56  ;;  %v2822_v23 = vmul.f32 %v6838_v24, %v6838_v24  ;;  %4573 = vmatpush3.bf16.msra.mxu0 %v4724_v13 }
 0x779   : > { %2752 = vadd.xlane.f32.xlu1 %v2751_v19  ;;  %2851 = vadd.xlane.f32.xlu0 %v2850_v32 }
 0x77a   : > { %v6847_v7 = vsub.f32 %v6665_v8, %v2759_v36  ;;  %v6850_v34 = vsub.f32 %v6658_v55, %v2760_v22  ;;  %v2862_v47 = vsel %vm581_vm0, %v2822_v23, 0.0 }
 0x77b   : > { %v2681_v42 = vpop.xlane.xlu1 %2680 }
 0x77c   : > { %v2761_v4 = vmul.f32 0.03125, %v2681_v42  ;;  %v2823_v8 = vmul.f32 %v6847_v7, %v6847_v7  ;;  %v2824_v55 = vmul.f32 %v6850_v34, %v6850_v34 }
 0x77d   : > { %2854 = vadd.xlane.f32.xlu1 %v2853_v48  ;;  %2857 = vadd.xlane.f32.xlu0 %v2856_v15 }
 0x77e   : > { %v6856_v54 = vsub.f32 %v6668_v38, %v2761_v4  ;;  %v2865_v26 = vsel %vm581_vm0, %v2823_v8, 0.0  ;;  %v2868_v12 = vsel %vm581_vm0, %v2824_v55, 0.0 }
 0x780   : > { %v2825_v2 = vmul.f32 %v6856_v54, %v6856_v54 }
 0x781   : > { %2860 = vadd.xlane.f32.xlu1 %v2859_v33  ;;  %2863 = vadd.xlane.f32.xlu0 %v2862_v47 }
 0x782   : > { %v2871_v38 = vsel %vm581_vm0, %v2825_v2, 0.0 }
 0x785   : > { %2866 = vadd.xlane.f32.xlu1 %v2865_v26  ;;  %2869 = vadd.xlane.f32.xlu0 %v2868_v12 }
 0x789   : > { %2872 = vadd.xlane.f32.xlu1 %v2871_v38 }
 0x7aa   : > { %v2684_v40 = vpop.xlane.xlu0 %2683 }
 0x7ab   : > { %v2762_v28 = vmul.f32 0.03125, %v2684_v40 }
 0x7ad   : > { %v6875_v37 = vsub.f32 %v6679_v43, %v2762_v28 }
 0x7ae   : > { %v2687_v9 = vpop.xlane.xlu1 %2686  ;;  %v2690_v27 = vpop.xlane.xlu0 %2689 }
 0x7af   : > { %v2763_v41 = vmul.f32 0.03125, %v2687_v9  ;;  %v2764_v52 = vmul.f32 0.03125, %v2690_v27  ;;  %v2826_v57 = vmul.f32 %v6875_v37, %v6875_v37 }
 0x7b1   : > { %v6880_v32 = vsub.f32 %v6689_v63, %v2763_v41  ;;  %v6883_v6 = vsub.f32 %v6682_v17, %v2764_v52  ;;  %v2874_v56 = vsel %vm581_vm0, %v2826_v57, 0.0 }
 0x7b2   : > { %v2693_v49 = vpop.xlane.xlu1 %2692  ;;  %2875 = vadd.xlane.f32.xlu0 %v2874_v56 }
 0x7b3   : > { %v2765_v5 = vmul.f32 0.03125, %v2693_v49  ;;  %v2827_v43 = vmul.f32 %v6880_v32, %v6880_v32  ;;  %v2828_v19 = vmul.f32 %v6883_v6, %v6883_v6 }
 0x7b5   : > { %v6891_v36 = vsub.f32 %v6692_v16, %v2765_v5  ;;  %v2877_v63 = vsel %vm581_vm0, %v2827_v43, 0.0  ;;  %v2880_v22 = vsel %vm581_vm0, %v2828_v19, 0.0 }
 0x7b6   : > { %2878 = vadd.xlane.f32.xlu1 %v2877_v63  ;;  %2881 = vadd.xlane.f32.xlu0 %v2880_v22 }
 0x7b7   : > { %v2829_v17 = vmul.f32 %v6891_v36, %v6891_v36 }
 0x7b9   : > { %v2883_v48 = vsel %vm581_vm0, %v2829_v17, 0.0 }
 0x7ba   : > { %2884 = vadd.xlane.f32.xlu1 %v2883_v48  ;;  %v2696_v15 = vpop.xlane.xlu0 %2695 }
 0x7bb   : > { %v2766_v42 = vmul.f32 0.03125, %v2696_v15 }
 0x7bd   : > { %v6899_v60 = vsub.f32 %v6703_v29, %v2766_v42 }
 0x7be   : > { %v2699_v4 = vpop.xlane.xlu1 %2698  ;;  %v2702_v16 = vpop.xlane.xlu0 %2701 }
 0x7bf   : > { %v2767_v23 = vmul.f32 0.03125, %v2699_v4  ;;  %v2768_v33 = vmul.f32 0.03125, %v2702_v16  ;;  %v2830_v47 = vmul.f32 %v6899_v60, %v6899_v60 }
 0x7c1   : > { %v6904_v8 = vsub.f32 %v6713_v44, %v2767_v23  ;;  %v6907_v55 = vsub.f32 %v6706_v35, %v2768_v33  ;;  %v2886_v26 = vsel %vm581_vm0, %v2830_v47, 0.0 }
 0x7c2   : > { %v2705_v12 = vpop.xlane.xlu1 %2704  ;;  %2887 = vadd.xlane.f32.xlu0 %v2886_v26 }
 0x7c3   : > { %v2769_v2 = vmul.f32 0.03125, %v2705_v12  ;;  %v2831_v29 = vmul.f32 %v6904_v8, %v6904_v8  ;;  %v2832_v38 = vmul.f32 %v6907_v55, %v6907_v55 }
 0x7c5   : > { %v6915_v11 = vsub.f32 %v6716_v50, %v2769_v2  ;;  %v2889_v44 = vsel %vm581_vm0, %v2831_v29, 0.0  ;;  %v2892_v13 = vsel %vm581_vm0, %v2832_v38, 0.0 }
 0x7c6   : > { %2890 = vadd.xlane.f32.xlu1 %v2889_v44  ;;  %2893 = vadd.xlane.f32.xlu0 %v2892_v13 }
 0x7c7   : > { %v2833_v35 = vmul.f32 %v6915_v11, %v6915_v11 }
 0x7c9   : > { %v2895_v40 = vsel %vm581_vm0, %v2833_v35, 0.0 }
 0x7ca   : > { %2896 = vadd.xlane.f32.xlu1 %v2895_v40  ;;  %v2708_v28 = vpop.xlane.xlu0 %2707 }
 0x7cb   : > { %v2770_v9 = vmul.f32 0.03125, %v2708_v28 }
 0x7cd   : > { %v6923_v27 = vsub.f32 %v6727_v59, %v2770_v9 }
 0x7ce   : > { %v2711_v41 = vpop.xlane.xlu1 %2710  ;;  %v2714_v50 = vpop.xlane.xlu0 %2713 }
 0x7cf   : > { %v2771_v52 = vmul.f32 0.03125, %v2711_v41  ;;  %v2772_v57 = vmul.f32 0.03125, %v2714_v50  ;;  %v2834_v56 = vmul.f32 %v6923_v27, %v6923_v27 }
 0x7d1   : > { %v6928_v49 = vsub.f32 %v6737_v10, %v2771_v52  ;;  %v6931_v5 = vsub.f32 %v6730_v51, %v2772_v57  ;;  %v2898_v43 = vsel %vm581_vm0, %v2834_v56, 0.0 }
 0x7d2   : > { %v2717_v19 = vpop.xlane.xlu1 %2716  ;;  %2899 = vadd.xlane.f32.xlu0 %v2898_v43 }
 0x7d3   : > { %v2773_v63 = vmul.f32 0.03125, %v2717_v19  ;;  %v2835_v59 = vmul.f32 %v6928_v49, %v6928_v49  ;;  %v2836_v22 = vmul.f32 %v6931_v5, %v6931_v5 }
 0x7d5   : > { %v6939_v17 = vsub.f32 %v6740_v62, %v2773_v63  ;;  %v2901_v10 = vsel %vm581_vm0, %v2835_v59, 0.0  ;;  %v2904_v48 = vsel %vm581_vm0, %v2836_v22, 0.0 }
 0x7d6   : > { %2902 = vadd.xlane.f32.xlu1 %v2901_v10  ;;  %2905 = vadd.xlane.f32.xlu0 %v2904_v48 }
 0x7d7   : > { %v2837_v51 = vmul.f32 %v6939_v17, %v6939_v17 }
 0x7d9   : > { %v2907_v15 = vsel %vm581_vm0, %v2837_v51, 0.0 }
 0x7da   : > { %2908 = vadd.xlane.f32.xlu1 %v2907_v15  ;;  %v2720_v42 = vpop.xlane.xlu0 %2719 }
 0x7db   : > { %v2774_v4 = vmul.f32 0.03125, %v2720_v42 }
 0x7dd   : > { %v6947_v16 = vsub.f32 %v6751_v30, %v2774_v4 }
 0x7de   : > { %v2723_v23 = vpop.xlane.xlu1 %2722  ;;  %v2726_v62 = vpop.xlane.xlu0 %2725 }
 0x7df   : > { %v2775_v33 = vmul.f32 0.03125, %v2723_v23  ;;  %v2776_v47 = vmul.f32 0.03125, %v2726_v62  ;;  %v2838_v26 = vmul.f32 %v6947_v16, %v6947_v16 }
 0x7e1   : > { %v6952_v12 = vsub.f32 %v6761_v18, %v2775_v33  ;;  %v6955_v2 = vsub.f32 %v6754_v1, %v2776_v47  ;;  %v2910_v29 = vsel %vm581_vm0, %v2838_v26, 0.0 }
 0x7e2   : > { %v2729_v38 = vpop.xlane.xlu1 %2728  ;;  %2911 = vadd.xlane.f32.xlu0 %v2910_v29 }
 0x7e3   : > { %v2777_v44 = vmul.f32 0.03125, %v2729_v38  ;;  %v2839_v30 = vmul.f32 %v6952_v12, %v6952_v12  ;;  %v2840_v13 = vmul.f32 %v6955_v2, %v6955_v2 }
 0x7e5   : > { %v6963_v35 = vsub.f32 %v6764_v53, %v2777_v44  ;;  %v2913_v18 = vsel %vm581_vm0, %v2839_v30, 0.0  ;;  %v2916_v40 = vsel %vm581_vm0, %v2840_v13, 0.0 }
 0x7e6   : > { %2914 = vadd.xlane.f32.xlu1 %v2913_v18  ;;  %2917 = vadd.xlane.f32.xlu0 %v2916_v40 }
 0x7e7   : > { %v2841_v1 = vmul.f32 %v6963_v35, %v6963_v35 }
 0x7e9   : > { %v2919_v28 = vsel %vm581_vm0, %v2841_v1, 0.0 }
 0x7ea   : > { %2920 = vadd.xlane.f32.xlu1 %v2919_v28  ;;  %v2732_v9 = vpop.xlane.xlu0 %2731 }
 0x7eb   : > { %v2778_v41 = vmul.f32 0.03125, %v2732_v9 }
 0x7ed   : > { %v6971_v50 = vsub.f32 %v6775_v20, %v2778_v41 }
 0x7ee   : > { %v2735_v52 = vpop.xlane.xlu1 %2734  ;;  %v2738_v53 = vpop.xlane.xlu0 %2737 }
 0x7ef   : > { %v2779_v57 = vmul.f32 0.03125, %v2735_v52  ;;  %v2780_v56 = vmul.f32 0.03125, %v2738_v53  ;;  %v2842_v43 = vmul.f32 %v6971_v50, %v6971_v50 }
 0x7f1   : > { %v6976_v19 = vsub.f32 %v6785_v31, %v2779_v57  ;;  %v6979_v63 = vsub.f32 %v6778_v46, %v2780_v56  ;;  %v2922_v59 = vsel %vm581_vm0, %v2842_v43, 0.0 }
 0x7f2   : > { %v2741_v22 = vpop.xlane.xlu1 %2740  ;;  %2923 = vadd.xlane.f32.xlu0 %v2922_v59 }
 0x7f3   : > { %v2781_v10 = vmul.f32 0.03125, %v2741_v22  ;;  %v2843_v20 = vmul.f32 %v6976_v19, %v6976_v19  ;;  %v2844_v48 = vmul.f32 %v6979_v63, %v6979_v63 }
 0x7f5   : > { %v6987_v51 = vsub.f32 %v6788_v45, %v2781_v10  ;;  %v2925_v31 = vsel %vm581_vm0, %v2843_v20, 0.0  ;;  %v2928_v15 = vsel %vm581_vm0, %v2844_v48, 0.0 }
 0x7f6   : > { %2926 = vadd.xlane.f32.xlu1 %v2925_v31  ;;  %2929 = vadd.xlane.f32.xlu0 %v2928_v15 }
 0x7f7   : > { %v2845_v46 = vmul.f32 %v6987_v51, %v6987_v51 }
 0x7f9   : > { %v2931_v42 = vsel %vm581_vm0, %v2845_v46, 0.0 }
 0x7fa   : > { %2932 = vadd.xlane.f32.xlu1 %v2931_v42  ;;  %v2744_v4 = vpop.xlane.xlu0 %2743 }
 0x7fb   : > { %v2782_v23 = vmul.f32 0.03125, %v2744_v4 }
 0x7fd   : > { %v6995_v62 = vsub.f32 %v6799_v61, %v2782_v23 }
 0x7fe   : > { %v2747_v33 = vpop.xlane.xlu1 %2746  ;;  %v2750_v45 = vpop.xlane.xlu0 %2749 }
 0x7ff   : > { %v2783_v47 = vmul.f32 0.03125, %v2747_v33  ;;  %v2784_v26 = vmul.f32 0.03125, %v2750_v45  ;;  %v2846_v29 = vmul.f32 %v6995_v62, %v6995_v62 }
 0x801   : > { %v7000_v38 = vsub.f32 %v6812_v0, %v2783_v47  ;;  %v7003_v44 = vsub.f32 %v6805_v58, %v2784_v26  ;;  %v2934_v30 = vsel %vm581_vm0, %v2846_v29, 0.0 }
 0x802   : > { %v2753_v13 = vpop.xlane.xlu1 %2752  ;;  %2935 = vadd.xlane.f32.xlu0 %v2934_v30  ;;  %v2852_v18 = vpop.xlane.xlu0 %2851 }
 0x803   : > { %v2785_v61 = vmul.f32 0.03125, %v2753_v13  ;;  %v2946_v40 = vmul.f32 0.03125, %v2852_v18  ;;  %v2847_v1 = vmul.f32 %v7000_v38, %v7000_v38  ;;  %v2848_v28 = vmul.f32 %v7003_v44, %v7003_v44 }
 0x805   : > { %v7011_v9 = vsub.f32 %v6823_v14, %v2785_v61  ;;  %v2978_v0 = vadd.f32 1e-05, %v2946_v40  ;;  %v2937_v58 = vsel %vm581_vm0, %v2847_v1, 0.0  ;;  %v2940_v41 = vsel %vm581_vm0, %v2848_v28, 0.0  ;;  %v7022_v61 = vld [vmem:[%s7591_s8] ss:$0 sm:$0xff] }
 0x806   : > { %2938 = vadd.xlane.f32.xlu1 %v2937_v58  ;;  %v2855_v52 = vpop.xlane.xlu1 %2854  ;;  %2941 = vadd.xlane.f32.xlu0 %v2940_v41  ;;  %v2858_v53 = vpop.xlane.xlu0 %2857  ;;  %v7029_v58 = vld [vmem:[%s7592_s9] ss:$0 sm:$0xff] }
 0x807   : > { %4989 = vrsqrt.f32 %v2978_v0  ;;  %v2947_v57 = vmul.f32 0.03125, %v2855_v52  ;;  %v2948_v56 = vmul.f32 0.03125, %v2858_v53  ;;  %v2849_v43 = vmul.f32 %v7011_v9, %v7011_v9 }
 0x809   : > { %v2979_v59 = vadd.f32 1e-05, %v2947_v57  ;;  %v2980_v22 = vadd.f32 1e-05, %v2948_v56  ;;  %v2943_v14 = vsel %vm581_vm0, %v2849_v43, 0.0 }
 0x80a   : > { %2944 = vadd.xlane.f32.xlu1 %v2943_v14  ;;  %v2861_v10 = vpop.xlane.xlu1 %2860  ;;  %v2864_v20 = vpop.xlane.xlu0 %2863 }
 0x80b   : > { %4991 = vrsqrt.f32 %v2979_v59  ;;  %v2949_v48 = vmul.f32 0.03125, %v2861_v10  ;;  %v2950_v31 = vmul.f32 0.03125, %v2864_v20 }
 0x80c   : > { %4993 = vrsqrt.f32 %v2980_v22 }
 0x80d   : > { %v2981_v15 = vadd.f32 1e-05, %v2949_v48  ;;  %v2982_v46 = vadd.f32 1e-05, %v2950_v31 }
 0x80e   : > { %v2867_v42 = vpop.xlane.xlu1 %2866  ;;  %v2870_v4 = vpop.xlane.xlu0 %2869 }
 0x80f   : > { %4995 = vrsqrt.f32 %v2981_v15  ;;  %v2951_v23 = vmul.f32 0.03125, %v2867_v42  ;;  %v2952_v33 = vmul.f32 0.03125, %v2870_v4 }
 0x810   : > { %4997 = vrsqrt.f32 %v2982_v46 }
 0x811   : > { %v2983_v45 = vadd.f32 1e-05, %v2951_v23  ;;  %v2984_v47 = vadd.f32 1e-05, %v2952_v33 }
 0x812   : > { %v2873_v26 = vpop.xlane.xlu1 %2872 }
 0x813   : > { %4999 = vrsqrt.f32 %v2983_v45  ;;  %v2953_v29 = vmul.f32 0.03125, %v2873_v26 }
 0x814   : > { %v4990_v30 = vpop.eup %4989  ;;  %5001 = vrsqrt.f32 %v2984_v47 }
 0x815   : > { %v2985_v13 = vadd.f32 1e-05, %v2953_v29  ;;  %v3042_v18 = vmul.f32 %v4990_v30, %v6802_v25 }
 0x817   : > { %5003 = vrsqrt.f32 %v2985_v13  ;;  %v3080_v0 = vmul.f32 %v7022_v61, %v3042_v18 }
 0x818   : > { %v4992_v40 = vpop.eup %4991 }
 0x819   : > { %v4994_v1 = vpop.eup %4993  ;;  %v3043_v28 = vmul.f32 %v4992_v40, %v6815_v3  ;;  %v7036_v43 = vadd.f32 %v7029_v58, %v3080_v0 }
 0x81a   : > { %v3044_v41 = vmul.f32 %v4994_v1, %v6818_v21 }
 0x81b   : > { %v3081_v25 = vmul.f32 %v7022_v61, %v3043_v28 }
 0x81c   : > { %v4996_v52 = vpop.eup %4995  ;;  %v3082_v57 = vmul.f32 %v7022_v61, %v3044_v41 }
 0x81d   : > { %v4998_v53 = vpop.eup %4997  ;;  %v3045_v56 = vmul.f32 %v4996_v52, %v6830_v39  ;;  %v7039_v3 = vadd.f32 %v7029_v58, %v3081_v25 }
 0x81e   : > { %v3046_v59 = vmul.f32 %v4998_v53, %v6838_v24  ;;  %v7046_v20 = vadd.f32 %v7029_v58, %v3082_v57 }
 0x81f   : > { %v3083_v22 = vmul.f32 %v7022_v61, %v3045_v56  ;;  %v3150_v21 = vpack.c.bf16 %v7039_v3, %v7036_v43 }
 0x820   : > { %v5000_v14 = vpop.eup %4999  ;;  %v3084_v31 = vmul.f32 %v7022_v61, %v3046_v59 }
 0x821   : > { %v5002_v10 = vpop.eup %5001  ;;  %v7049_v39 = vadd.f32 %v7029_v58, %v3083_v22  ;;  %4574 = vmatprep.mubr.msk.bf16.mxu0 %vm581_vm0, %v3150_v21  ;;  %v3047_v48 = vmul.f32 %v5000_v14, %v6847_v7 }
 0x822   : > { %v3048_v24 = vmul.f32 %v5002_v10, %v6850_v34  ;;  %v7061_v23 = vadd.f32 %v7029_v58, %v3084_v31 }
 0x823   : > { %v3151_v15 = vpack.c.bf16 %v7049_v39, %v7046_v20  ;;  %v3085_v46 = vmul.f32 %v7022_v61, %v3047_v48 }
 0x824   : > { %v5004_v42 = vpop.eup %5003  ;;  %v3086_v7 = vmul.f32 %v7022_v61, %v3048_v24 }
 0x825   : > { %v3049_v4 = vmul.f32 %v5004_v42, %v6856_v54  ;;  %4575 = vmatmul.mubr.msk.bf16.vlgmr.msra.gmra.mxu0 %vm581_vm0, %v3151_v15  ;;  %v7064_v33 = vadd.f32 %v7029_v58, %v3085_v46 }
 0x826   : > { %v7072_v47 = vadd.f32 %v7029_v58, %v3086_v7 }
 0x827   : > { %v3152_v34 = vpack.c.bf16 %v7064_v33, %v7061_v23  ;;  %v3087_v45 = vmul.f32 %v7022_v61, %v3049_v4 }
 0x829   : > { %4578 = vmatprep.mubr.msk.bf16.mxu0 %vm581_vm0, %v3152_v34  ;;  %v7075_v54 = vadd.f32 %v7029_v58, %v3087_v45 }
 0x82b   : > { %v3153_v26 = vpack.c.bf16 %v7075_v54, %v7072_v47 }
 0x82d   : > { %4579 = vmatmul.mubr.msk.bf16.gmra.mxu0 %vm581_vm0, %v3153_v26 }
 0x83b   : > { %v2876_v29 = vpop.xlane.xlu0 %2875 }
 0x83c   : > { %v2954_v30 = vmul.f32 0.03125, %v2876_v29 }
 0x83e   : > { %v2986_v13 = vadd.f32 1e-05, %v2954_v30 }
 0x83f   : > { %v2879_v18 = vpop.xlane.xlu1 %2878  ;;  %v2882_v40 = vpop.xlane.xlu0 %2881 }
 0x840   : > { %5005 = vrsqrt.f32 %v2986_v13  ;;  %v2955_v1 = vmul.f32 0.03125, %v2879_v18  ;;  %v2956_v28 = vmul.f32 0.03125, %v2882_v40 }
 0x842   : > { %v2987_v0 = vadd.f32 1e-05, %v2955_v1  ;;  %v2988_v41 = vadd.f32 1e-05, %v2956_v28 }
 0x843   : > { %v2885_v25 = vpop.xlane.xlu1 %2884 }
 0x844   : > { %5007 = vrsqrt.f32 %v2987_v0  ;;  %v2957_v52 = vmul.f32 0.03125, %v2885_v25 }
 0x845   : > { %5009 = vrsqrt.f32 %v2988_v41 }
 0x846   : > { %v2989_v53 = vadd.f32 1e-05, %v2957_v52 }
 0x848   : > { %5011 = vrsqrt.f32 %v2989_v53 }
 0x84b   : > { %v2888_v57 = vpop.xlane.xlu0 %2887 }
 0x84c   : > { %v2958_v56 = vmul.f32 0.03125, %v2888_v57 }
 0x84d   : > { %v5006_v59 = vpop.eup %5005 }
 0x84e   : > { %v2990_v22 = vadd.f32 1e-05, %v2958_v56  ;;  %v3050_v21 = vmul.f32 %v5006_v59, %v6875_v37 }
 0x84f   : > { %v2891_v14 = vpop.xlane.xlu1 %2890  ;;  %v2894_v10 = vpop.xlane.xlu0 %2893 }
 0x850   : > { %5013 = vrsqrt.f32 %v2990_v22  ;;  %v2959_v48 = vmul.f32 0.03125, %v2891_v14  ;;  %v2960_v31 = vmul.f32 0.03125, %v2894_v10  ;;  %v3088_v15 = vmul.f32 %v7022_v61, %v3050_v21 }
 0x851   : > { %v5008_v24 = vpop.eup %5007 }
 0x852   : > { %v5010_v46 = vpop.eup %5009  ;;  %v2991_v42 = vadd.f32 1e-05, %v2959_v48  ;;  %v2992_v4 = vadd.f32 1e-05, %v2960_v31  ;;  %v3051_v7 = vmul.f32 %v5008_v24, %v6880_v32  ;;  %v7086_v30 = vadd.f32 %v7029_v58, %v3088_v15 }
 0x853   : > { %v3052_v34 = vmul.f32 %v5010_v46, %v6883_v6  ;;  %v2897_v45 = vpop.xlane.xlu1 %2896 }
 0x854   : > { %5015 = vrsqrt.f32 %v2991_v42  ;;  %v2961_v26 = vmul.f32 0.03125, %v2897_v45  ;;  %v3089_v37 = vmul.f32 %v7022_v61, %v3051_v7 }
 0x855   : > { %v5012_v29 = vpop.eup %5011  ;;  %5017 = vrsqrt.f32 %v2992_v4  ;;  %v3090_v32 = vmul.f32 %v7022_v61, %v3052_v34 }
 0x856   : > { %v3053_v13 = vmul.f32 %v5012_v29, %v6891_v36  ;;  %v2993_v18 = vadd.f32 1e-05, %v2961_v26  ;;  %v7090_v40 = vadd.f32 %v7029_v58, %v3089_v37 }
 0x857   : > { %v7098_v28 = vadd.f32 %v7029_v58, %v3090_v32 }
 0x858   : > { %5019 = vrsqrt.f32 %v2993_v18  ;;  %v3154_v6 = vpack.c.bf16 %v7090_v40, %v7086_v30  ;;  %v3091_v1 = vmul.f32 %v7022_v61, %v3053_v13 }
 0x85a   : > { %4582 = vmatprep.mubr.msk.bf16.mxu0 %vm581_vm0, %v3154_v6  ;;  %v7101_v0 = vadd.f32 %v7029_v58, %v3091_v1  ;;  %v4725_v1 = vld [vmem:[%s7595_s12 + $0x38] sm:$0xff]  }
 0x85b   : > { %v2900_v36 = vpop.xlane.xlu0 %2899  ;;  %4606 = vmatprep.subr.bf16.mxu1 %v4725_v1 }
 0x85c   : > { %v2962_v41 = vmul.f32 0.03125, %v2900_v36  ;;  %v3155_v25 = vpack.c.bf16 %v7101_v0, %v7098_v28  ;;  %4607 = vmatpush3.bf16.msra.mxu1 %v4725_v1 }
 0x85d   : > { %v5014_v52 = vpop.eup %5013 }
 0x85e   : > { %v2994_v53 = vadd.f32 1e-05, %v2962_v41  ;;  %4583 = vmatmul.mubr.msk.bf16.gmra.mxu0 %vm581_vm0, %v3155_v25  ;;  %v3054_v57 = vmul.f32 %v5014_v52, %v6899_v60 }
 0x85f   : > { %v2903_v56 = vpop.xlane.xlu1 %2902  ;;  %v2906_v59 = vpop.xlane.xlu0 %2905 }
 0x860   : > { %5021 = vrsqrt.f32 %v2994_v53  ;;  %v2963_v22 = vmul.f32 0.03125, %v2903_v56  ;;  %v2964_v21 = vmul.f32 0.03125, %v2906_v59  ;;  %v3092_v10 = vmul.f32 %v7022_v61, %v3054_v57  ;;  %v4726_v59 = vld [vmem:[%s7595_s12 + $0x30] sm:$0xff]  }
 0x861   : > { %v5016_v14 = vpop.eup %5015  ;;  %4608 = vmatprep.subr.bf16.mxu1 %v4726_v59 }
 0x862   : > { %v5018_v48 = vpop.eup %5017  ;;  %v2995_v31 = vadd.f32 1e-05, %v2963_v22  ;;  %v2996_v24 = vadd.f32 1e-05, %v2964_v21  ;;  %v3055_v15 = vmul.f32 %v5016_v14, %v6904_v8  ;;  %v7112_v34 = vadd.f32 %v7029_v58, %v3092_v10  ;;  %4609 = vmatpush3.bf16.msra.mxu1 %v4726_v59 }
 0x863   : > { %v3056_v46 = vmul.f32 %v5018_v48, %v6907_v55  ;;  %v2909_v42 = vpop.xlane.xlu1 %2908 }
 0x864   : > { %5023 = vrsqrt.f32 %v2995_v31  ;;  %v2965_v4 = vmul.f32 0.03125, %v2909_v42  ;;  %v3093_v60 = vmul.f32 %v7022_v61, %v3055_v15  ;;  %v4727_v42 = vld [vmem:[%s7595_s12 + $0x28] sm:$0xff]  }
 0x865   : > { %v5020_v7 = vpop.eup %5019  ;;  %5025 = vrsqrt.f32 %v2996_v24  ;;  %v3094_v8 = vmul.f32 %v7022_v61, %v3056_v46  ;;  %4610 = vmatprep.subr.bf16.mxu1 %v4727_v42 }
 0x866   : > { %v3057_v45 = vmul.f32 %v5020_v7, %v6915_v11  ;;  %v2997_v26 = vadd.f32 1e-05, %v2965_v4  ;;  %v7116_v37 = vadd.f32 %v7029_v58, %v3093_v60  ;;  %4611 = vmatpush3.bf16.msra.mxu1 %v4727_v42  ;;  %v4732_v42 = vld [vmem:[%s7595_s12] sm:$0xff]  }
 0x867   : > { %v7124_v13 = vadd.f32 %v7029_v58, %v3094_v8 }
 0x868   : > { %5027 = vrsqrt.f32 %v2997_v26  ;;  %v3156_v55 = vpack.c.bf16 %v7116_v37, %v7112_v34  ;;  %v3095_v29 = vmul.f32 %v7022_v61, %v3057_v45 }
 0x86a   : > { %4586 = vmatprep.mubr.msk.bf16.mxu0 %vm581_vm0, %v3156_v55  ;;  %v7127_v18 = vadd.f32 %v7029_v58, %v3095_v29  ;;  %v4728_v55 = vld [vmem:[%s7595_s12 + $0x20] sm:$0xff]  }
 0x86b   : > { %v2912_v11 = vpop.xlane.xlu0 %2911  ;;  %4612 = vmatprep.subr.bf16.mxu1 %v4728_v55 }
 0x86c   : > { %v2966_v32 = vmul.f32 0.03125, %v2912_v11  ;;  %v3157_v6 = vpack.c.bf16 %v7127_v18, %v7124_v13  ;;  %v4729_v11 = vld [vmem:[%s7595_s12 + $0x18] sm:$0xff]   ;;  %4613 = vmatpush3.bf16.msra.mxu1 %v4728_v55 }
 0x86d   : > { %v5022_v36 = vpop.eup %5021  ;;  %4614 = vmatprep.subr.bf16.mxu1 %v4729_v11 }
 0x86e   : > { %v2998_v41 = vadd.f32 1e-05, %v2966_v32  ;;  %4587 = vmatmul.mubr.msk.bf16.gmra.mxu0 %vm581_vm0, %v3157_v6  ;;  %v3058_v25 = vmul.f32 %v5022_v36, %v6923_v27  ;;  %v4730_v36 = vld [vmem:[%s7595_s12 + $0x10] sm:$0xff]  }
 0x86f   : > { %v2915_v52 = vpop.xlane.xlu1 %2914  ;;  %v2918_v53 = vpop.xlane.xlu0 %2917 }
 0x870   : > { %5029 = vrsqrt.f32 %v2998_v41  ;;  %v2967_v57 = vmul.f32 0.03125, %v2915_v52  ;;  %v2968_v56 = vmul.f32 0.03125, %v2918_v53  ;;  %v3096_v21 = vmul.f32 %v7022_v61, %v3058_v25  ;;  %4615 = vmatpush3.bf16.msra.mxu1 %v4729_v11 }
 0x871   : > { %v5024_v22 = vpop.eup %5023  ;;  %4616 = vmatprep.subr.bf16.mxu1 %v4730_v36 }
 0x872   : > { %v5026_v14 = vpop.eup %5025  ;;  %v2999_v10 = vadd.f32 1e-05, %v2967_v57  ;;  %v3000_v48 = vadd.f32 1e-05, %v2968_v56  ;;  %v3059_v31 = vmul.f32 %v5024_v22, %v6928_v49  ;;  %v7147_v60 = vadd.f32 %v7029_v58, %v3096_v21  ;;  %v4731_v22 = vld [vmem:[%s7595_s12 + $0x8] sm:$0xff]  }
 0x873   : > { %v3060_v27 = vmul.f32 %v5026_v14, %v6931_v5  ;;  %v2921_v24 = vpop.xlane.xlu1 %2920 }
 0x874   : > { %5031 = vrsqrt.f32 %v2999_v10  ;;  %v2969_v15 = vmul.f32 0.03125, %v2921_v24  ;;  %v3097_v46 = vmul.f32 %v7022_v61, %v3059_v31  ;;  %4617 = vmatpush3.bf16.msra.mxu1 %v4730_v36 }
 0x875   : > { %v5028_v4 = vpop.eup %5027  ;;  %5033 = vrsqrt.f32 %v3000_v48  ;;  %v3098_v45 = vmul.f32 %v7022_v61, %v3060_v27  ;;  %4618 = vmatprep.subr.bf16.mxu1 %v4731_v22 }
 0x876   : > { %v3061_v49 = vmul.f32 %v5028_v4, %v6939_v17  ;;  %v3001_v7 = vadd.f32 1e-05, %v2969_v15  ;;  %v7151_v5 = vadd.f32 %v7029_v58, %v3097_v46 }
 0x877   : > { %v7162_v17 = vadd.f32 %v7029_v58, %v3098_v45 }
 0x878   : > { %5035 = vrsqrt.f32 %v3001_v7  ;;  %v3158_v26 = vpack.c.bf16 %v7151_v5, %v7147_v60  ;;  %v3099_v8 = vmul.f32 %v7022_v61, %v3061_v49  ;;  %4619 = vmatpush3.bf16.msra.mxu1 %v4731_v22 }
 0x879   : > { %4620 = vmatprep.subr.bf16.mxu1 %v4732_v42 }
 0x87a   : > { %4590 = vmatprep.mubr.msk.bf16.mxu0 %vm581_vm0, %v3158_v26  ;;  %v7165_v29 = vadd.f32 %v7029_v58, %v3099_v8 }
 0x87b   : > { %v2924_v32 = vpop.xlane.xlu0 %2923 }
 0x87c   : > { %v2970_v6 = vmul.f32 0.03125, %v2924_v32  ;;  %v3159_v1 = vpack.c.bf16 %v7165_v29, %v7162_v17  ;;  %4621 = vmatpush3.bf16.msra.mxu1 %v4732_v42 }
 0x87d   : > { %v5030_v41 = vpop.eup %5029 }
 0x87e   : > { %v3002_v25 = vadd.f32 1e-05, %v2970_v6  ;;  %4591 = vmatmul.mubr.msk.bf16.gmra.mxu0 %vm581_vm0, %v3159_v1  ;;  %v3062_v52 = vmul.f32 %v5030_v41, %v6947_v16 }
 0x87f   : > { %v2927_v53 = vpop.xlane.xlu1 %2926  ;;  %v2930_v57 = vpop.xlane.xlu0 %2929 }
 0x880   : > { %5037 = vrsqrt.f32 %v3002_v25  ;;  %v2971_v56 = vmul.f32 0.03125, %v2927_v53  ;;  %v2972_v59 = vmul.f32 0.03125, %v2930_v57  ;;  %v3100_v14 = vmul.f32 %v7022_v61, %v3062_v52 }
 0x881   : > { %v5032_v21 = vpop.eup %5031 }
 0x882   : > { %v5034_v10 = vpop.eup %5033  ;;  %v3003_v48 = vadd.f32 1e-05, %v2971_v56  ;;  %v3004_v31 = vadd.f32 1e-05, %v2972_v59  ;;  %v3063_v27 = vmul.f32 %v5032_v21, %v6952_v12  ;;  %v7188_v49 = vadd.f32 %v7029_v58, %v3100_v14 }
 0x883   : > { %v3064_v16 = vmul.f32 %v5034_v10, %v6955_v2  ;;  %v2933_v24 = vpop.xlane.xlu1 %2932 }
 0x884   : > { %5039 = vrsqrt.f32 %v3003_v48  ;;  %v2973_v15 = vmul.f32 0.03125, %v2933_v24  ;;  %v3101_v46 = vmul.f32 %v7022_v61, %v3063_v27 }
 0x885   : > { %v5036_v4 = vpop.eup %5035  ;;  %5041 = vrsqrt.f32 %v3004_v31  ;;  %v3102_v45 = vmul.f32 %v7022_v61, %v3064_v16 }
 0x886   : > { %v3065_v12 = vmul.f32 %v5036_v4, %v6963_v35  ;;  %v3005_v7 = vadd.f32 1e-05, %v2973_v15  ;;  %v7192_v2 = vadd.f32 %v7029_v58, %v3101_v46 }
 0x887   : > { %v7200_v55 = vadd.f32 %v7029_v58, %v3102_v45 }
 0x888   : > { %5043 = vrsqrt.f32 %v3005_v7  ;;  %v3160_v26 = vpack.c.bf16 %v7192_v2, %v7188_v49  ;;  %v3103_v8 = vmul.f32 %v7022_v61, %v3065_v12 }
 0x88a   : > { %4594 = vmatprep.mubr.msk.bf16.mxu0 %vm581_vm0, %v3160_v26  ;;  %v7203_v35 = vadd.f32 %v7029_v58, %v3103_v8 }
 0x88b   : > { %v2936_v11 = vpop.xlane.xlu0 %2935 }
 0x88c   : > { %v2974_v32 = vmul.f32 0.03125, %v2936_v11  ;;  %v3161_v6 = vpack.c.bf16 %v7203_v35, %v7200_v55 }
 0x88d   : > { %v5038_v1 = vpop.eup %5037 }
 0x88e   : > { %v3006_v36 = vadd.f32 1e-05, %v2974_v32  ;;  %4595 = vmatmul.mubr.msk.bf16.gmra.mxu0 %vm581_vm0, %v3161_v6  ;;  %v3066_v41 = vmul.f32 %v5038_v1, %v6971_v50 }
 0x88f   : > { %v2939_v25 = vpop.xlane.xlu1 %2938  ;;  %v2942_v52 = vpop.xlane.xlu0 %2941 }
 0x890   : > { %5045 = vrsqrt.f32 %v3006_v36  ;;  %v2975_v53 = vmul.f32 0.03125, %v2939_v25  ;;  %v2976_v57 = vmul.f32 0.03125, %v2942_v52  ;;  %v3104_v59 = vmul.f32 %v7022_v61, %v3066_v41 }
 0x891   : > { %v5040_v56 = vpop.eup %5039 }
 0x892   : > { %v5042_v22 = vpop.eup %5041  ;;  %v3007_v21 = vadd.f32 1e-05, %v2975_v53  ;;  %v3008_v14 = vadd.f32 1e-05, %v2976_v57  ;;  %v3067_v10 = vmul.f32 %v5040_v56, %v6976_v19  ;;  %v7214_v24 = vadd.f32 %v7029_v58, %v3104_v59  ;;  %v7263_v59 = vld [vmem:[%s7594_s11] ss:$0 sm:$0xff] }
 0x893   : > { %v3068_v48 = vmul.f32 %v5042_v22, %v6979_v63  ;;  %v2945_v31 = vpop.xlane.xlu1 %2944 }
 0x894   : > { %5047 = vrsqrt.f32 %v3007_v21  ;;  %v2977_v27 = vmul.f32 0.03125, %v2945_v31  ;;  %v3105_v50 = vmul.f32 %v7022_v61, %v3067_v10 }
 0x895   : > { %v5044_v16 = vpop.eup %5043  ;;  %5049 = vrsqrt.f32 %v3008_v14  ;;  %v3106_v19 = vmul.f32 %v7022_v61, %v3068_v48 }
 0x896   : > { %v3069_v15 = vmul.f32 %v5044_v16, %v6987_v51  ;;  %v3009_v46 = vadd.f32 1e-05, %v2977_v27  ;;  %v7218_v42 = vadd.f32 %v7029_v58, %v3105_v50 }
 0x897   : > { %v7226_v12 = vadd.f32 %v7029_v58, %v3106_v19 }
 0x898   : > { %5051 = vrsqrt.f32 %v3009_v46  ;;  %v3162_v63 = vpack.c.bf16 %v7218_v42, %v7214_v24  ;;  %v3107_v4 = vmul.f32 %v7022_v61, %v3069_v15 }
 0x89a   : > { %4598 = vmatprep.mubr.msk.bf16.mxu0 %vm581_vm0, %v3162_v63  ;;  %v7229_v7 = vadd.f32 %v7029_v58, %v3107_v4 }
 0x89c   : > { %v3163_v51 = vpack.c.bf16 %v7229_v7, %v7226_v12 }
 0x89d   : > { %v5046_v45 = vpop.eup %5045 }
 0x89e   : > { %4599 = vmatmul.mubr.msk.bf16.gmra.mxu0 %vm581_vm0, %v3163_v51  ;;  %v3070_v26 = vmul.f32 %v5046_v45, %v6995_v62 }
 0x8a0   : > { %v3108_v6 = vmul.f32 %v7022_v61, %v3070_v26 }
 0x8a1   : > { %v5048_v8 = vpop.eup %5047 }
 0x8a2   : > { %v5050_v11 = vpop.eup %5049  ;;  %v3071_v32 = vmul.f32 %v5048_v8, %v7000_v38  ;;  %v7241_v52 = vadd.f32 %v7029_v58, %v3108_v6 }
 0x8a3   : > { %v3072_v1 = vmul.f32 %v5050_v11, %v7003_v44 }
 0x8a4   : > { %v3109_v36 = vmul.f32 %v7022_v61, %v3071_v32 }
 0x8a5   : > { %v5052_v41 = vpop.eup %5051  ;;  %v3110_v62 = vmul.f32 %v7022_v61, %v3072_v1 }
 0x8a6   : > { %v3073_v25 = vmul.f32 %v5052_v41, %v7011_v9  ;;  %v7244_v53 = vadd.f32 %v7029_v58, %v3109_v36 }
 0x8a7   : > { %v7252_v44 = vadd.f32 %v7029_v58, %v3110_v62 }
 0x8a8   : > { %v3164_v38 = vpack.c.bf16 %v7244_v53, %v7241_v52  ;;  %v3111_v57 = vmul.f32 %v7022_v61, %v3073_v25 }
 0x8aa   : > { %4602 = vmatprep.mubr.msk.bf16.mxu0 %vm581_vm0, %v3164_v38  ;;  %v7255_v9 = vadd.f32 %v7029_v58, %v3111_v57 }
 0x8ac   : > { %v3165_v56 = vpack.c.bf16 %v7255_v9, %v7252_v44 }
 0x8ae   : > { %4603 = vmatmul.mubr.msk.bf16.gmra.mxu0 %vm581_vm0, %v3165_v56 }
 0x8e5   : > { %v4576_v22 = vpop.f32.mrf.mxu0 }
 0x8e6   : > { %v7266_v61 = vadd.f32 %v4576_v22, %v7263_v59 }
 0x8e7   : > { %v3271_v21 = vpop.f32.mrf.mxu0 }
 0x8e8   : > { %v3432_v14 = vmul.f32 0.044715, %v7266_v61  ;;  %v7270_v58 = vadd.f32 %v7263_v59, %v3271_v21 }
 0x8e9   : > { %v4577_v10 = vpop.f32.mrf.mxu0 }
 0x8ea   : > { %v3464_v48 = vmul.f32 %v3432_v14, %v7266_v61  ;;  %v3430_v31 = vmul.f32 0.044715, %v7270_v58  ;;  %v3283_v27 = vadd.f32 %v4577_v10, %v7263_v59 }
 0x8eb   : > { %v3274_v50 = vpop.f32.mrf.mxu0 }
 0x8ec   : > { %v3496_v16 = vmul.f32 %v3464_v48, %v7266_v61  ;;  %v3462_v15 = vmul.f32 %v3430_v31, %v7270_v58  ;;  %v3433_v46 = vmul.f32 0.044715, %v3283_v27  ;;  %v3275_v19 = vadd.f32 %v7263_v59, %v3274_v50 }
 0x8ed   : > { %v4580_v63 = vpop.f32.mrf.mxu0 }
 0x8ee   : > { %v3528_v4 = vadd.f32 %v3496_v16, %v7266_v61  ;;  %v3494_v51 = vmul.f32 %v3462_v15, %v7270_v58  ;;  %v3465_v45 = vmul.f32 %v3433_v46, %v3283_v27  ;;  %v7281_v26 = vadd.f32 %v4580_v63, %v7263_v59 }
 0x8ef   : > { %v3431_v8 = vmul.f32 0.044715, %v3275_v19  ;;  %v3287_v11 = vpop.f32.mrf.mxu0 }
 0x8f0   : > { %v3560_v32 = vmul.f32 0.7978846, %v3528_v4  ;;  %v3497_v6 = vmul.f32 %v3465_v45, %v3283_v27  ;;  %v3436_v1 = vmul.f32 0.044715, %v7281_v26  ;;  %v7285_v36 = vadd.f32 %v7263_v59, %v3287_v11 }
 0x8f1   : > { %v3463_v41 = vmul.f32 %v3431_v8, %v3275_v19  ;;  %v4581_v25 = vpop.f32.mrf.mxu0  ;;  %v3526_v62 = vadd.f32 %v3494_v51, %v7270_v58 }
 0x8f2   : > { %v3529_v38 = vadd.f32 %v3497_v6, %v3283_v27  ;;  %v3468_v57 = vmul.f32 %v3436_v1, %v7281_v26  ;;  %v3434_v56 = vmul.f32 0.044715, %v7285_v36  ;;  %5053 = vtanh.f32 %v3560_v32 }
 0x8f3   : > { %v3495_v22 = vmul.f32 %v3463_v41, %v3275_v19  ;;  %v3299_v21 = vadd.f32 %v4581_v25, %v7263_v59  ;;  %v3290_v14 = vpop.f32.mrf.mxu0  ;;  %v3558_v10 = vmul.f32 0.7978846, %v3526_v62 }
 0x8f4   : > { %v3561_v48 = vmul.f32 0.7978846, %v3529_v38  ;;  %v3500_v31 = vmul.f32 %v3468_v57, %v7281_v26  ;;  %v3466_v50 = vmul.f32 %v3434_v56, %v7285_v36  ;;  %v3291_v16 = vadd.f32 %v7263_v59, %v3290_v14 }
 0x8f5   : > { %v3437_v15 = vmul.f32 0.044715, %v3299_v21  ;;  %v3527_v46 = vadd.f32 %v3495_v22, %v3275_v19  ;;  %5055 = vtanh.f32 %v3558_v10 }
 0x8f6   : > { %5057 = vtanh.f32 %v3561_v48  ;;  %v3498_v63 = vmul.f32 %v3466_v50, %v7285_v36  ;;  %v3435_v4 = vmul.f32 0.044715, %v3291_v16  ;;  %v3532_v8 = vadd.f32 %v3500_v31, %v7281_v26 }
 0x8f7   : > { %v3469_v51 = vmul.f32 %v3437_v15, %v3299_v21  ;;  %v3559_v45 = vmul.f32 0.7978846, %v3527_v46  ;;  %v3401_v15 = vmul.f32 0.5, %v3283_v27  ;;  %v3402_v27 = vmul.f32 0.5, %v7285_v36 }
 0x8f8   : > { %v3467_v11 = vmul.f32 %v3435_v4, %v3291_v16  ;;  %v3530_v32 = vadd.f32 %v3498_v63, %v7285_v36  ;;  %v3564_v25 = vmul.f32 0.7978846, %v3532_v8  ;;  %v3398_v63 = vmul.f32 0.5, %v7270_v58 }
 0x8f9   : > { %v3501_v6 = vmul.f32 %v3469_v51, %v3299_v21  ;;  %5059 = vtanh.f32 %v3559_v45  ;;  %v3399_v4 = vmul.f32 0.5, %v3275_v19  ;;  %v3400_v45 = vmul.f32 0.5, %v7266_v61 }
 0x8fa   : > { %v3499_v1 = vmul.f32 %v3467_v11, %v3291_v16  ;;  %v3562_v41 = vmul.f32 0.7978846, %v3530_v32  ;;  %v3403_v58 = vmul.f32 0.5, %v3291_v16 }
 0x8fb   : > { %v3533_v62 = vadd.f32 %v3501_v6, %v3299_v21 }
 0x8fc   : > { %v3531_v38 = vadd.f32 %v3499_v1, %v3291_v16  ;;  %5061 = vtanh.f32 %v3562_v41 }
 0x8fd   : > { %v3565_v57 = vmul.f32 0.7978846, %v3533_v62  ;;  %5063 = vtanh.f32 %v3564_v25 }
 0x8fe   : > { %v3563_v56 = vmul.f32 0.7978846, %v3531_v38 }
 0x8ff   : > { %5065 = vtanh.f32 %v3565_v57  ;;  %v5054_v22 = vpop.eup %5053 }
 0x900   : > { %5067 = vtanh.f32 %v3563_v56  ;;  %v3624_v46 = vadd.f32 1.0, %v5054_v22 }
 0x902   : > { %v5056_v14 = vpop.eup %5055  ;;  %v3656_v1 = vmul.f32 %v3624_v46, %v3400_v45 }
 0x903   : > { %v5058_v10 = vpop.eup %5057  ;;  %v3622_v31 = vadd.f32 1.0, %v5056_v14  ;;  %v3405_v14 = vmul.f32 0.5, %v3299_v21 }
 0x904   : > { %v3625_v48 = vadd.f32 1.0, %v5058_v10 }
 0x905   : > { %v3654_v32 = vmul.f32 %v3622_v31, %v3398_v63  ;;  %v3404_v31 = vmul.f32 0.5, %v7281_v26 }
 0x906   : > { %v5060_v50 = vpop.eup %5059  ;;  %v3657_v8 = vmul.f32 %v3625_v48, %v3401_v15 }
 0x907   : > { %v3623_v51 = vadd.f32 1.0, %v5060_v50 }
 0x908   : > { %v3687_v38 = vpack.c.bf16 %v3657_v8, %v3656_v1 }
 0x909   : > { %v5062_v11 = vpop.eup %5061  ;;  %v3655_v6 = vmul.f32 %v3623_v51, %v3399_v4 }
 0x90a   : > { %v5064_v41 = vpop.eup %5063  ;;  %v3626_v57 = vadd.f32 1.0, %v5062_v11 }
 0x90b   : > { %v3686_v25 = vpack.c.bf16 %v3655_v6, %v3654_v32  ;;  %v3628_v61 = vadd.f32 1.0, %v5064_v41 }
 0x90c   : > { %v5066_v62 = vpop.eup %5065  ;;  %v3658_v10 = vmul.f32 %v3626_v57, %v3402_v27 }
 0x90d   : > { %v5068_v56 = vpop.eup %5067  ;;  %4622 = vmatprep.mubr.bf16.mxu1 %v3686_v25  ;;  %v3629_v22 = vadd.f32 1.0, %v5066_v62  ;;  %v3660_v46 = vmul.f32 %v3628_v61, %v3404_v31 }
 0x90e   : > { %4623 = vmatmul.mubr.bf16.vlgmr.msra.gmra.mxu1 %v3687_v38  ;;  %v3627_v19 = vadd.f32 1.0, %v5068_v56 }
 0x90f   : > { %v3661_v50 = vmul.f32 %v3629_v22, %v3405_v14 }
 0x910   : > { %v3659_v48 = vmul.f32 %v3627_v19, %v3403_v58 }
 0x911   : > { %v3689_v63 = vpack.c.bf16 %v3661_v50, %v3660_v46 }
 0x912   : > { %v3688_v15 = vpack.c.bf16 %v3659_v48, %v3658_v10 }
 0x914   : > { %4626 = vmatprep.mubr.bf16.mxu1 %v3688_v15 }
 0x916   : > { %4627 = vmatmul.mubr.bf16.gmra.mxu1 %v3689_v63 }
 0x91e   : > { %v4584_v4 = vpop.f32.mrf.mxu0 }
 0x91f   : > { %v7302_v51 = vadd.f32 %v4584_v4, %v7263_v59 }
 0x920   : > { %v3303_v36 = vpop.f32.mrf.mxu0 }
 0x921   : > { %v3440_v16 = vmul.f32 0.044715, %v7302_v51  ;;  %v3304_v21 = vadd.f32 %v7263_v59, %v3303_v36 }
 0x922   : > { %v4585_v45 = vpop.f32.mrf.mxu0 }
 0x923   : > { %v3472_v8 = vmul.f32 %v3440_v16, %v7302_v51  ;;  %v3438_v11 = vmul.f32 0.044715, %v3304_v21  ;;  %v3315_v26 = vadd.f32 %v4585_v45, %v7263_v59 }
 0x924   : > { %v3306_v32 = vpop.f32.mrf.mxu0 }
 0x925   : > { %v3504_v6 = vmul.f32 %v3472_v8, %v7302_v51  ;;  %v3470_v1 = vmul.f32 %v3438_v11, %v3304_v21  ;;  %v3441_v41 = vmul.f32 0.044715, %v3315_v26  ;;  %v3307_v25 = vadd.f32 %v7263_v59, %v3306_v32 }
 0x927   : > { %v3502_v62 = vmul.f32 %v3470_v1, %v3304_v21  ;;  %v3473_v38 = vmul.f32 %v3441_v41, %v3315_v26  ;;  %v3439_v57 = vmul.f32 0.044715, %v3307_v25  ;;  %v3536_v56 = vadd.f32 %v3504_v6, %v7302_v51 }
 0x929   : > { %v3505_v27 = vmul.f32 %v3473_v38, %v3315_v26  ;;  %v3471_v22 = vmul.f32 %v3439_v57, %v3307_v25  ;;  %v3534_v58 = vadd.f32 %v3502_v62, %v3304_v21  ;;  %v3568_v19 = vmul.f32 0.7978846, %v3536_v56 }
 0x92b   : > { %v3503_v14 = vmul.f32 %v3471_v22, %v3307_v25  ;;  %v3566_v61 = vmul.f32 0.7978846, %v3534_v58  ;;  %v3537_v10 = vadd.f32 %v3505_v27, %v3315_v26 }
 0x92d   : > { %v3535_v48 = vadd.f32 %v3503_v14, %v3307_v25  ;;  %5069 = vtanh.f32 %v3566_v61  ;;  %v3569_v31 = vmul.f32 0.7978846, %v3537_v10 }
 0x92e   : > { %v4588_v50 = vpop.f32.mrf.mxu0  ;;  %5071 = vtanh.f32 %v3568_v19 }
 0x92f   : > { %v7312_v15 = vadd.f32 %v4588_v50, %v7263_v59  ;;  %v3567_v46 = vmul.f32 0.7978846, %v3535_v48  ;;  %5073 = vtanh.f32 %v3569_v31 }
 0x930   : > { %v3319_v63 = vpop.f32.mrf.mxu0 }
 0x931   : > { %v3444_v4 = vmul.f32 0.044715, %v7312_v15  ;;  %v7316_v36 = vadd.f32 %v7263_v59, %v3319_v63  ;;  %5075 = vtanh.f32 %v3567_v46  ;;  %v3406_v63 = vmul.f32 0.5, %v3304_v21 }
 0x932   : > { %v4589_v16 = vpop.f32.mrf.mxu0  ;;  %v3408_v21 = vmul.f32 0.5, %v7302_v51 }
 0x933   : > { %v3476_v45 = vmul.f32 %v3444_v4, %v7312_v15  ;;  %v3442_v8 = vmul.f32 0.044715, %v7316_v36  ;;  %v7321_v11 = vadd.f32 %v4589_v16, %v7263_v59 }
 0x934   : > { %v3322_v32 = vpop.f32.mrf.mxu0 }
 0x935   : > { %v3508_v6 = vmul.f32 %v3476_v45, %v7312_v15  ;;  %v3474_v1 = vmul.f32 %v3442_v8, %v7316_v36  ;;  %v3445_v41 = vmul.f32 0.044715, %v7321_v11  ;;  %v7327_v62 = vadd.f32 %v7263_v59, %v3322_v32 }
 0x937   : > { %v3506_v38 = vmul.f32 %v3474_v1, %v7316_v36  ;;  %v3477_v57 = vmul.f32 %v3445_v41, %v7321_v11  ;;  %v3443_v56 = vmul.f32 0.044715, %v7327_v62  ;;  %v3540_v27 = vadd.f32 %v3508_v6, %v7312_v15 }
 0x938   : > { %v3409_v6 = vmul.f32 0.5, %v3315_v26 }
 0x939   : > { %v3509_v22 = vmul.f32 %v3477_v57, %v7321_v11  ;;  %v3475_v58 = vmul.f32 %v3443_v56, %v7327_v62  ;;  %v3538_v19 = vadd.f32 %v3506_v38, %v7316_v36  ;;  %v3572_v61 = vmul.f32 0.7978846, %v3540_v27 }
 0x93a   : > { %v5070_v14 = vpop.eup %5069  ;;  %v3407_v57 = vmul.f32 0.5, %v3307_v25 }
 0x93b   : > { %v5072_v10 = vpop.eup %5071  ;;  %v3507_v48 = vmul.f32 %v3475_v58, %v7327_v62  ;;  %v3570_v31 = vmul.f32 0.7978846, %v3538_v19  ;;  %v3541_v50 = vadd.f32 %v3509_v22, %v7321_v11  ;;  %v3630_v4 = vadd.f32 1.0, %v5070_v14 }
 0x93c   : > { %v5074_v46 = vpop.eup %5073  ;;  %5077 = vtanh.f32 %v3572_v61  ;;  %v3632_v1 = vadd.f32 1.0, %v5072_v10 }
 0x93d   : > { %v3633_v16 = vadd.f32 1.0, %v5074_v46  ;;  %v3539_v45 = vadd.f32 %v3507_v48, %v7327_v62  ;;  %5079 = vtanh.f32 %v3570_v31  ;;  %v3573_v41 = vmul.f32 0.7978846, %v3541_v50 }
 0x93e   : > { %v5076_v8 = vpop.eup %5075  ;;  %v4592_v32 = vpop.f32.mrf.mxu0  ;;  %v3662_v26 = vmul.f32 %v3630_v4, %v3406_v63  ;;  %v3664_v48 = vmul.f32 %v3632_v1, %v3408_v21 }
 0x93f   : > { %v7340_v38 = vadd.f32 %v4592_v32, %v7263_v59  ;;  %v3631_v56 = vadd.f32 1.0, %v5076_v8  ;;  %v3571_v27 = vmul.f32 0.7978846, %v3539_v45  ;;  %v3665_v58 = vmul.f32 %v3633_v16, %v3409_v6 }
 0x940   : > { %v3335_v22 = vpop.f32.mrf.mxu0  ;;  %5081 = vtanh.f32 %v3573_v41 }
 0x941   : > { %v3448_v19 = vmul.f32 0.044715, %v7340_v38  ;;  %v7345_v14 = vadd.f32 %v7263_v59, %v3335_v22  ;;  %v3663_v61 = vmul.f32 %v3631_v56, %v3407_v57  ;;  %5083 = vtanh.f32 %v3571_v27 }
 0x942   : > { %v4593_v10 = vpop.f32.mrf.mxu0  ;;  %v3691_v16 = vpack.c.bf16 %v3665_v58, %v3664_v48  ;;  %v3413_v48 = vmul.f32 0.5, %v7321_v11  ;;  %v3410_v11 = vmul.f32 0.5, %v7316_v36 }
 0x943   : > { %v3480_v31 = vmul.f32 %v3448_v19, %v7340_v38  ;;  %v3446_v25 = vmul.f32 0.044715, %v7345_v14  ;;  %v7350_v50 = vadd.f32 %v4593_v10, %v7263_v59  ;;  %v3690_v51 = vpack.c.bf16 %v3663_v61, %v3662_v26 }
 0x944   : > { %v3338_v46 = vpop.f32.mrf.mxu0 }
 0x945   : > { %v3512_v45 = vmul.f32 %v3480_v31, %v7340_v38  ;;  %v3478_v8 = vmul.f32 %v3446_v25, %v7345_v14  ;;  %v3449_v63 = vmul.f32 0.044715, %v7350_v50  ;;  %v7356_v4 = vadd.f32 %v7263_v59, %v3338_v46  ;;  %4630 = vmatprep.mubr.bf16.mxu1 %v3690_v51 }
 0x946   : > { %4631 = vmatmul.mubr.bf16.gmra.mxu1 %v3691_v16 }
 0x947   : > { %v3510_v32 = vmul.f32 %v3478_v8, %v7345_v14  ;;  %v3481_v6 = vmul.f32 %v3449_v63, %v7350_v50  ;;  %v3447_v1 = vmul.f32 0.044715, %v7356_v4  ;;  %v3544_v41 = vadd.f32 %v3512_v45, %v7340_v38 }
 0x949   : > { %v3513_v57 = vmul.f32 %v3481_v6, %v7350_v50  ;;  %v3479_v56 = vmul.f32 %v3447_v1, %v7356_v4  ;;  %v3542_v27 = vadd.f32 %v3510_v32, %v7345_v14  ;;  %v5078_v22 = vpop.eup %5077  ;;  %v3576_v21 = vmul.f32 0.7978846, %v3544_v41 }
 0x94a   : > { %v5080_v58 = vpop.eup %5079  ;;  %v3636_v16 = vadd.f32 1.0, %v5078_v22  ;;  %v3412_v32 = vmul.f32 0.5, %v7312_v15  ;;  %v3411_v41 = vmul.f32 0.5, %v7327_v62 }
 0x94b   : > { %v3511_v19 = vmul.f32 %v3479_v56, %v7356_v4  ;;  %v3574_v26 = vmul.f32 0.7978846, %v3542_v27  ;;  %v3545_v61 = vadd.f32 %v3513_v57, %v7350_v50  ;;  %v3634_v46 = vadd.f32 1.0, %v5080_v58 }
 0x94d   : > { %v5082_v10 = vpop.eup %5081  ;;  %v3543_v31 = vadd.f32 %v3511_v19, %v7356_v4  ;;  %5085 = vtanh.f32 %v3574_v26  ;;  %v3577_v25 = vmul.f32 0.7978846, %v3545_v61  ;;  %v3666_v58 = vmul.f32 %v3634_v46, %v3410_v11 }
 0x94e   : > { %v4596_v51 = vpop.f32.mrf.mxu0  ;;  %v3637_v45 = vadd.f32 1.0, %v5082_v10  ;;  %5087 = vtanh.f32 %v3576_v21  ;;  %v5084_v8 = vpop.eup %5083  ;;  %v3668_v26 = vmul.f32 %v3636_v16, %v3412_v32 }
 0x94f   : > { %v7370_v63 = vadd.f32 %v4596_v51, %v7263_v59  ;;  %v3575_v6 = vmul.f32 0.7978846, %v3543_v31  ;;  %5089 = vtanh.f32 %v3577_v25  ;;  %v3635_v57 = vadd.f32 1.0, %v5084_v8 }
 0x950   : > { %v3351_v1 = vpop.f32.mrf.mxu0  ;;  %v3669_v56 = vmul.f32 %v3637_v45, %v3413_v48 }
 0x951   : > { %v3452_v27 = vmul.f32 0.044715, %v7370_v63  ;;  %v7377_v22 = vadd.f32 %v7263_v59, %v3351_v1  ;;  %5091 = vtanh.f32 %v3575_v6  ;;  %v3667_v19 = vmul.f32 %v3635_v57, %v3411_v41 }
 0x952   : > { %v4597_v21 = vpop.f32.mrf.mxu0  ;;  %v3693_v48 = vpack.c.bf16 %v3669_v56, %v3668_v26  ;;  %v3414_v26 = vmul.f32 0.5, %v7345_v14 }
 0x953   : > { %v3484_v15 = vmul.f32 %v3452_v27, %v7370_v63  ;;  %v3450_v61 = vmul.f32 0.044715, %v7377_v22  ;;  %v7382_v36 = vadd.f32 %v4597_v21, %v7263_v59  ;;  %v3692_v10 = vpack.c.bf16 %v3667_v19, %v3666_v58 }
 0x954   : > { %v3354_v62 = vpop.f32.mrf.mxu0 }
 0x955   : > { %v3516_v31 = vmul.f32 %v3484_v15, %v7370_v63  ;;  %v3482_v25 = vmul.f32 %v3450_v61, %v7377_v22  ;;  %v3453_v51 = vmul.f32 0.044715, %v7382_v36  ;;  %v7388_v46 = vadd.f32 %v7263_v59, %v3354_v62  ;;  %4634 = vmatprep.mubr.bf16.mxu1 %v3692_v10 }
 0x956   : > { %4635 = vmatmul.mubr.bf16.gmra.mxu1 %v3693_v48 }
 0x957   : > { %v3514_v16 = vmul.f32 %v3482_v25, %v7377_v22  ;;  %v3485_v45 = vmul.f32 %v3453_v51, %v7382_v36  ;;  %v3451_v8 = vmul.f32 0.044715, %v7388_v46  ;;  %v3548_v32 = vadd.f32 %v3516_v31, %v7370_v63 }
 0x958   : > { %v3417_v31 = vmul.f32 0.5, %v7350_v50 }
 0x959   : > { %v3517_v6 = vmul.f32 %v3485_v45, %v7382_v36  ;;  %v3483_v1 = vmul.f32 %v3451_v8, %v7388_v46  ;;  %v3546_v11 = vadd.f32 %v3514_v16, %v7377_v22  ;;  %v3580_v57 = vmul.f32 0.7978846, %v3548_v32 }
 0x95a   : > { %v5086_v41 = vpop.eup %5085  ;;  %v3415_v45 = vmul.f32 0.5, %v7356_v4 }
 0x95b   : > { %v5088_v56 = vpop.eup %5087  ;;  %v3515_v27 = vmul.f32 %v3483_v1, %v7388_v46  ;;  %v3578_v21 = vmul.f32 0.7978846, %v3546_v11  ;;  %v3549_v58 = vadd.f32 %v3517_v6, %v7382_v36  ;;  %v3638_v15 = vadd.f32 1.0, %v5086_v41 }
 0x95c   : > { %v5090_v19 = vpop.eup %5089  ;;  %5093 = vtanh.f32 %v3580_v57  ;;  %v3640_v25 = vadd.f32 1.0, %v5088_v56  ;;  %v3416_v6 = vmul.f32 0.5, %v7340_v38 }
 0x95d   : > { %v3641_v61 = vadd.f32 1.0, %v5090_v19  ;;  %v3547_v62 = vadd.f32 %v3515_v27, %v7388_v46  ;;  %5095 = vtanh.f32 %v3578_v21  ;;  %v3581_v51 = vmul.f32 0.7978846, %v3549_v58 }
 0x95e   : > { %v5092_v10 = vpop.eup %5091  ;;  %v4600_v48 = vpop.f32.mrf.mxu0  ;;  %v3670_v50 = vmul.f32 %v3638_v15, %v3414_v26  ;;  %v3672_v27 = vmul.f32 %v3640_v25, %v3416_v6 }
 0x95f   : > { %v7403_v16 = vadd.f32 %v4600_v48, %v7263_v59  ;;  %v3639_v8 = vadd.f32 1.0, %v5092_v10  ;;  %v3579_v32 = vmul.f32 0.7978846, %v3547_v62  ;;  %v3673_v1 = vmul.f32 %v3641_v61, %v3417_v31 }
 0x960   : > { %v3367_v14 = vpop.f32.mrf.mxu0  ;;  %5097 = vtanh.f32 %v3581_v51 }
 0x961   : > { %v3456_v11 = vmul.f32 0.044715, %v7403_v16  ;;  %v7409_v41 = vadd.f32 %v7263_v59, %v3367_v14  ;;  %v3671_v57 = vmul.f32 %v3639_v8, %v3415_v45  ;;  %5099 = vtanh.f32 %v3579_v32 }
 0x962   : > { %v4601_v56 = vpop.f32.mrf.mxu0  ;;  %v3695_v61 = vpack.c.bf16 %v3673_v1, %v3672_v27  ;;  %v3421_v27 = vmul.f32 0.5, %v7382_v36  ;;  %v3418_v36 = vmul.f32 0.5, %v7377_v22 }
 0x963   : > { %v3488_v21 = vmul.f32 %v3456_v11, %v7403_v16  ;;  %v3454_v4 = vmul.f32 0.044715, %v7409_v41  ;;  %v7414_v58 = vadd.f32 %v4601_v56, %v7263_v59  ;;  %v3694_v38 = vpack.c.bf16 %v3671_v57, %v3670_v50 }
 0x964   : > { %v3370_v19 = vpop.f32.mrf.mxu0 }
 0x965   : > { %v3520_v62 = vmul.f32 %v3488_v21, %v7403_v16  ;;  %v3486_v10 = vmul.f32 %v3454_v4, %v7409_v41  ;;  %v3457_v26 = vmul.f32 0.044715, %v7414_v58  ;;  %v7420_v15 = vadd.f32 %v7263_v59, %v3370_v19  ;;  %4638 = vmatprep.mubr.bf16.mxu1 %v3694_v38 }
 0x966   : > { %4639 = vmatmul.mubr.bf16.gmra.mxu1 %v3695_v61 }
 0x967   : > { %v3518_v48 = vmul.f32 %v3486_v10, %v7409_v41  ;;  %v3489_v31 = vmul.f32 %v3457_v26, %v7414_v58  ;;  %v3455_v25 = vmul.f32 0.044715, %v7420_v15  ;;  %v3552_v51 = vadd.f32 %v3520_v62, %v7403_v16 }
 0x969   : > { %v3521_v45 = vmul.f32 %v3489_v31, %v7414_v58  ;;  %v3487_v8 = vmul.f32 %v3455_v25, %v7420_v15  ;;  %v3550_v32 = vadd.f32 %v3518_v48, %v7409_v41  ;;  %v5094_v14 = vpop.eup %5093  ;;  %v3584_v6 = vmul.f32 0.7978846, %v3552_v51 }
 0x96a   : > { %v5096_v1 = vpop.eup %5095  ;;  %v3644_v61 = vadd.f32 1.0, %v5094_v14  ;;  %v3420_v48 = vmul.f32 0.5, %v7370_v63  ;;  %v3419_v51 = vmul.f32 0.5, %v7388_v46 }
 0x96b   : > { %v3519_v11 = vmul.f32 %v3487_v8, %v7420_v15  ;;  %v3582_v50 = vmul.f32 0.7978846, %v3550_v32  ;;  %v3553_v57 = vadd.f32 %v3521_v45, %v7414_v58  ;;  %v3642_v19 = vadd.f32 1.0, %v5096_v1 }
 0x96d   : > { %v5098_v56 = vpop.eup %5097  ;;  %v3551_v21 = vadd.f32 %v3519_v11, %v7420_v15  ;;  %5101 = vtanh.f32 %v3582_v50  ;;  %v3585_v4 = vmul.f32 0.7978846, %v3553_v57  ;;  %v3674_v1 = vmul.f32 %v3642_v19, %v3418_v36 }
 0x96e   : > { %v4604_v38 = vpop.f32.mrf.mxu0  ;;  %v3645_v62 = vadd.f32 1.0, %v5098_v56  ;;  %5103 = vtanh.f32 %v3584_v6  ;;  %v5100_v10 = vpop.eup %5099  ;;  %v3676_v50 = vmul.f32 %v3644_v61, %v3420_v48 }
 0x96f   : > { %v7434_v26 = vadd.f32 %v4604_v38, %v7263_v59  ;;  %v3583_v31 = vmul.f32 0.7978846, %v3551_v21  ;;  %5105 = vtanh.f32 %v3585_v4  ;;  %v3643_v45 = vadd.f32 1.0, %v5100_v10 }
 0x970   : > { %v3383_v25 = vpop.f32.mrf.mxu0  ;;  %v3677_v8 = vmul.f32 %v3645_v62, %v3421_v27 }
 0x971   : > { %v3460_v32 = vmul.f32 0.044715, %v7434_v26  ;;  %v7441_v14 = vadd.f32 %v7263_v59, %v3383_v25  ;;  %5107 = vtanh.f32 %v3583_v31  ;;  %v3675_v11 = vmul.f32 %v3643_v45, %v3419_v51 }
 0x972   : > { %v4605_v6 = vpop.f32.mrf.mxu0  ;;  %v3697_v21 = vpack.c.bf16 %v3677_v8, %v3676_v50 }
 0x973   : > { %v3492_v63 = vmul.f32 %v3460_v32, %v7434_v26  ;;  %v3458_v57 = vmul.f32 0.044715, %v7441_v14  ;;  %v3395_v22 = vadd.f32 %v4605_v6, %v7263_v59  ;;  %v3696_v46 = vpack.c.bf16 %v3675_v11, %v3674_v1 }
 0x974   : > { %v3386_v56 = vpop.f32.mrf.mxu0 }
 0x975   : > { %v3524_v27 = vmul.f32 %v3492_v63, %v7434_v26  ;;  %v3490_v4 = vmul.f32 %v3458_v57, %v7441_v14  ;;  %v3461_v38 = vmul.f32 0.044715, %v3395_v22  ;;  %v3387_v62 = vadd.f32 %v7263_v59, %v3386_v56  ;;  %4642 = vmatprep.mubr.bf16.mxu1 %v3696_v46 }
 0x976   : > { %4643 = vmatmul.mubr.bf16.gmra.mxu1 %v3697_v21  ;;  %v3425_v56 = vmul.f32 0.5, %v7414_v58 }
 0x977   : > { %v3522_v19 = vmul.f32 %v3490_v4, %v7441_v14  ;;  %v3493_v61 = vmul.f32 %v3461_v38, %v3395_v22  ;;  %v3459_v10 = vmul.f32 0.044715, %v3387_v62  ;;  %v3556_v48 = vadd.f32 %v3524_v27, %v7434_v26 }
 0x978   : > { %v3422_v27 = vmul.f32 0.5, %v7409_v41  ;;  %v3423_v4 = vmul.f32 0.5, %v7420_v15  ;;  %v3429_v15 = vmul.f32 0.5, %v3395_v22 }
 0x979   : > { %v3525_v31 = vmul.f32 %v3493_v61, %v3395_v22  ;;  %v3491_v25 = vmul.f32 %v3459_v10, %v3387_v62  ;;  %v3554_v36 = vadd.f32 %v3522_v19, %v7441_v14  ;;  %v3588_v45 = vmul.f32 0.7978846, %v3556_v48 }
 0x97a   : > { %v5102_v51 = vpop.eup %5101  ;;  %v3424_v61 = vmul.f32 0.5, %v7403_v16  ;;  %v3426_v16 = vmul.f32 0.5, %v7441_v14 }
 0x97b   : > { %v5104_v8 = vpop.eup %5103  ;;  %v3523_v32 = vmul.f32 %v3491_v25, %v3387_v62  ;;  %v3586_v6 = vmul.f32 0.7978846, %v3554_v36  ;;  %v3557_v1 = vadd.f32 %v3525_v31, %v3395_v22  ;;  %v3646_v59 = vadd.f32 1.0, %v5102_v51  ;;  %v7461_v22 = vld [vmem:[%s7596_s13] ss:$0 sm:$0xff] }
 0x97c   : > { %v5106_v11 = vpop.eup %5105  ;;  %v3648_v46 = vadd.f32 1.0, %v5104_v8 }
 0x97d   : > { %v3649_v50 = vadd.f32 1.0, %v5106_v11  ;;  %v3555_v63 = vadd.f32 %v3523_v32, %v3387_v62  ;;  %5109 = vtanh.f32 %v3586_v6  ;;  %v3589_v21 = vmul.f32 0.7978846, %v3557_v1 }
 0x97e   : > { %v5108_v57 = vpop.eup %5107  ;;  %5111 = vtanh.f32 %v3588_v45  ;;  %v3678_v48 = vmul.f32 %v3646_v59, %v3422_v27  ;;  %v3680_v25 = vmul.f32 %v3648_v46, %v3424_v61  ;;  %v3427_v11 = vmul.f32 0.5, %v3387_v62 }
 0x97f   : > { %v3647_v38 = vadd.f32 1.0, %v5108_v57  ;;  %v3587_v19 = vmul.f32 0.7978846, %v3555_v63  ;;  %v3681_v10 = vmul.f32 %v3649_v50, %v3425_v56  ;;  %5113 = vtanh.f32 %v3589_v21 }
 0x980   : > { %v3428_v59 = vmul.f32 0.5, %v7434_v26 }
 0x981   : > { %v3679_v31 = vmul.f32 %v3647_v38, %v3423_v4  ;;  %5115 = vtanh.f32 %v3587_v19  ;;  %v3699_v51 = vpack.c.bf16 %v3681_v10, %v3680_v25 }
 0x983   : > { %v3698_v36 = vpack.c.bf16 %v3679_v31, %v3678_v48 }
 0x985   : > { %4646 = vmatprep.mubr.bf16.mxu1 %v3698_v36 }
 0x986   : > { %4647 = vmatmul.mubr.bf16.gmra.mxu1 %v3699_v51 }
 0x98a   : > { %v5110_v58 = vpop.eup %5109 }
 0x98b   : > { %v5112_v45 = vpop.eup %5111  ;;  %v3650_v41 = vadd.f32 1.0, %v5110_v58 }
 0x98c   : > { %v5114_v8 = vpop.eup %5113  ;;  %v3652_v6 = vadd.f32 1.0, %v5112_v45 }
 0x98d   : > { %v3653_v1 = vadd.f32 1.0, %v5114_v8  ;;  %v3682_v57 = vmul.f32 %v3650_v41, %v3426_v16 }
 0x98e   : > { %v5116_v32 = vpop.eup %5115  ;;  %v3684_v46 = vmul.f32 %v3652_v6, %v3428_v59 }
 0x98f   : > { %v3651_v50 = vadd.f32 1.0, %v5116_v32  ;;  %v3685_v63 = vmul.f32 %v3653_v1, %v3429_v15 }
 0x991   : > { %v3683_v56 = vmul.f32 %v3651_v50, %v3427_v11  ;;  %v3701_v27 = vpack.c.bf16 %v3685_v63, %v3684_v46 }
 0x993   : > { %v3700_v21 = vpack.c.bf16 %v3683_v56, %v3682_v57 }
 0x995   : > { %4650 = vmatprep.mubr.bf16.mxu1 %v3700_v21 }
 0x996   : > { %4651 = vmatmul.mubr.bf16.gmra.mxu1 %v3701_v27 }
 0x9ce   : > { %v4624_v4 = vpop.f32.mrf.mxu1 }
 0x9cf   : > { %v3816_v48 = vadd.f32 %v4624_v4, %v7461_v22 }
 0x9d0   : > { %v3807_v38 = vpop.f32.mrf.mxu1 }
 0x9d1   : > { %v3808_v14 = vadd.f32 %v7461_v22, %v3807_v38  ;;  %v3936_v36 = vadd.f32 %v3816_v48, %v7046_v20 }
 0x9d2   : > { %v4625_v62 = vpop.f32.mrf.mxu1 }
 0x9d3   : > { %v3934_v26 = vadd.f32 %v3808_v14, %v7036_v43  ;;  %v3819_v51 = vadd.f32 %v4625_v62, %v7461_v22 }
 0x9d4   : > { %v3810_v19 = vpop.f32.mrf.mxu1 }
 0x9d5   : > { %v3811_v61 = vadd.f32 %v7461_v22, %v3810_v19  ;;  %3966 = vxpose.xlu0.b32.start [1/16] (narrow) %v3934_v26, 32  ;;  %v3937_v45 = vadd.f32 %v3819_v51, %v7049_v39 }
 0x9d6   : > { %v4628_v10 = vpop.f32.mrf.mxu1 }
 0x9d7   : > { %v3935_v31 = vadd.f32 %v3811_v61, %v7039_v3  ;;  %v3832_v3 = vadd.f32 %v4628_v10, %v7461_v22 }
 0x9d8   : > { %v3823_v25 = vpop.f32.mrf.mxu1 }
 0x9d9   : > { %3967 = vxpose.xlu0.b32.cont [2/16] (narrow) %v3935_v31, 32  ;;  %v3824_v43 = vadd.f32 %v7461_v22, %v3823_v25  ;;  %v3940_v20 = vadd.f32 %v3832_v3, %v7072_v47 }
 0x9da   : > { %v4629_v58 = vpop.f32.mrf.mxu1 }
 0x9db   : > { %v3938_v41 = vadd.f32 %v3824_v43, %v7061_v23  ;;  %v3835_v6 = vadd.f32 %v4629_v58, %v7461_v22 }
 0x9dc   : > { %v3826_v8 = vpop.f32.mrf.mxu1 }
 0x9dd   : > { %3968 = vxpose.xlu0.b32.cont [3/16] (narrow) %v3936_v36, 32  ;;  %v3827_v32 = vadd.f32 %v7461_v22, %v3826_v8  ;;  %v3941_v39 = vadd.f32 %v3835_v6, %v7075_v54 }
 0x9df   : > { %v3939_v15 = vadd.f32 %v3827_v32, %v7064_v33 }
 0x9e1   : > { %3969 = vxpose.xlu0.b32.cont [4/16] (narrow) %v3937_v45, 32 }
 0x9e5   : > { %3970 = vxpose.xlu0.b32.cont [5/16] (narrow) %v3938_v41, 32 }
 0x9e9   : > { %3971 = vxpose.xlu0.b32.cont [6/16] (narrow) %v3939_v15, 32 }
 0x9ed   : > { %3972 = vxpose.xlu0.b32.cont [7/16] (narrow) %v3940_v20, 32 }
 0x9f1   : > { %3973 = vxpose.xlu0.b32.cont [8/16] (narrow) %v3941_v39, 32 }
 0xa06   : > { %v4632_v1 = vpop.f32.mrf.mxu1 }
 0xa07   : > { %v3848_v33 = vadd.f32 %v4632_v1, %v7461_v22 }
 0xa08   : > { %v3839_v16 = vpop.f32.mrf.mxu1 }
 0xa09   : > { %v3840_v23 = vadd.f32 %v7461_v22, %v3839_v16  ;;  %v3944_v57 = vadd.f32 %v3848_v33, %v7098_v28 }
 0xa0a   : > { %v4633_v11 = vpop.f32.mrf.mxu1 }
 0xa0b   : > { %v3942_v50 = vadd.f32 %v3840_v23, %v7086_v30  ;;  %v3851_v54 = vadd.f32 %v4633_v11, %v7461_v22 }
 0xa0c   : > { %v3842_v59 = vpop.f32.mrf.mxu1 }
 0xa0d   : > { %v3843_v63 = vadd.f32 %v7461_v22, %v3842_v59  ;;  %3974 = vxpose.xlu0.b32.cont [9/16] (narrow) %v3942_v50, 32  ;;  %v3945_v56 = vadd.f32 %v3851_v54, %v7101_v0 }
 0xa0f   : > { %v3943_v47 = vadd.f32 %v3843_v63, %v7090_v40 }
 0xa11   : > { %3975 = vxpose.xlu0.b32.cont [10/16] (narrow) %v3943_v47, 32 }
 0xa15   : > { %3976 = vxpose.xlu0.b32.cont [11/16] (narrow) %v3944_v57, 32 }
 0xa16   : > { %v4636_v46 = vpop.f32.mrf.mxu1 }
 0xa17   : > { %v3864_v40 = vadd.f32 %v4636_v46, %v7461_v22  ;;  %v5117_v46 = vld [vmem:[%s6163_s24] sm:$0x3]  ;;  %s4071_s24 = sshll.u32 %s498_s18, 4  ;;  %s7535_s24 = int_to_ptr.vmem [resolvable:$true] %s4071_s24 }
 0xa18   : > { %v3855_v21 = vpop.f32.mrf.mxu1  ;;  %s5146_s29 = scalar_lea.vmem %s7535_s24, 1024  ;;  %p5153_p7 = scmp.lt.s32.totalorder %s7535_s24, %s5151_s15 }
 0xa19   : > { %3977 = vxpose.xlu0.b32.cont [12/16] (narrow) %v3945_v56, 32  ;;  %v3856_v30 = vadd.f32 %v7461_v22, %v3855_v21  ;;  %v3948_v62 = vadd.f32 %v3864_v40, %v7124_v13  ;;  %v7761_v21 = vld [vmem:[#allocation46_spill] sm:$0xff]  ;;  %p5147_p12 = scmp.ne.s32.totalorder %s7535_s24, %s5146_s29  ;;  %p5154_p8 = scmp.lt.s32.totalorder %s5152_s19, %s5146_s29 }
 0xa1a   : > { %v4637_v27 = vpop.f32.mrf.mxu1 }
 0xa1b   : > { %v3946_v4 = vadd.f32 %v3856_v30, %v7112_v34  ;;  %v3867_v0 = vadd.f32 %v4637_v27, %v7461_v22  ;;  %v7762_v30 = vsub.s32 0, %v7761_v21  ;;  %p5148_p4 = pnand %p5147_p12, %p7766_p13  ;;  %p5155_p10 = por %p5154_p8, %p5153_p7 }
 0xa1c   : > { %v3858_v38 = vpop.f32.mrf.mxu1 }
 0xa1d   : > { %v3859_v14 = vadd.f32 %v7461_v22, %v3858_v38  ;;  %3978 = vxpose.xlu0.b32.cont [13/16] (narrow) %v3946_v4, 32  ;;  %v3949_v19 = vadd.f32 %v3867_v0, %v7127_v18  ;;  %v4034_v27 = vrot.slane %v5117_v46, %v7762_v30  ;;  %p5149_p5 = pneg %p5148_p4 }
 0xa1f   : > { %v3947_v28 = vadd.f32 %v3859_v14, %v7116_v37  ;;  %p5156_p0 = pnand %p5155_p10, %p5149_p5 }
 0xa21   : > { %3979 = vxpose.xlu0.b32.cont [14/16] (narrow) %v3947_v28, 32 }
 0xa25   : > { %3980 = vxpose.xlu0.b32.cont [15/16] (narrow) %v3948_v62, 32  ;;  %v7763_v62 = vsub.s32 1, %v7761_v21 }
 0xa26   : > { %v4640_v26 = vpop.f32.mrf.mxu1 }
 0xa27   : > { %v3880_v37 = vadd.f32 %v4640_v26, %v7461_v22  ;;  %v4038_v0 = vrot.slane %v5117_v46, %v7763_v62 }
 0xa28   : > { %v3871_v61 = vpop.f32.mrf.mxu1 }
 0xa29   : > { %v3872_v34 = vadd.f32 %v7461_v22, %v3871_v61  ;;  %3981 = vxpose.xlu0.b32.end [16/16] (narrow) %v3949_v19, 32  ;;  %v3952_v36 = vadd.f32 %v3880_v37, %v7162_v17 }
 0xa2a   : > { %v4641_v10 = vpop.f32.mrf.mxu1 }
 0xa2b   : > { %v3950_v48 = vadd.f32 %v3872_v34, %v7147_v60  ;;  %v3883_v18 = vadd.f32 %v4641_v10, %v7461_v22 }
 0xa2c   : > { %v3874_v31 = vpop.f32.mrf.mxu1 }
 0xa2d   : > { %v3875_v25 = vadd.f32 %v7461_v22, %v3874_v31  ;;  %3998 = vxpose.xlu1.b32.start [1/16] (narrow) %v3950_v48, 32  ;;  %v3953_v51 = vadd.f32 %v3883_v18, %v7165_v29 }
 0xa2f   : > { %v3951_v13 = vadd.f32 %v3875_v25, %v7151_v5 }
 0xa31   : > { %3999 = vxpose.xlu1.b32.cont [2/16] (narrow) %v3951_v13, 32 }
 0xa35   : > { %4000 = vxpose.xlu1.b32.cont [3/16] (narrow) %v3952_v36, 32 }
 0xa36   : > { %v4644_v58 = vpop.f32.mrf.mxu1 }
 0xa37   : > { %v3896_v5 = vadd.f32 %v4644_v58, %v7461_v22 }
 0xa38   : > { %v3887_v45 = vpop.f32.mrf.mxu1 }
 0xa39   : > { %4001 = vxpose.xlu1.b32.cont [4/16] (narrow) %v3953_v51, 32  ;;  %v3888_v60 = vadd.f32 %v7461_v22, %v3887_v45  ;;  %v3956_v3 = vadd.f32 %v3896_v5, %v7200_v55 }
 0xa3a   : > { %v4645_v43 = vpop.f32.mrf.mxu1 }
 0xa3b   : > { %v3954_v8 = vadd.f32 %v3888_v60, %v7188_v49  ;;  %v3899_v29 = vadd.f32 %v4645_v43, %v7461_v22 }
 0xa3c   : > { %v3890_v41 = vpop.f32.mrf.mxu1 }
 0xa3d   : > { %v3891_v32 = vadd.f32 %v7461_v22, %v3890_v41  ;;  %4002 = vxpose.xlu1.b32.cont [5/16] (narrow) %v3954_v8, 32  ;;  %v3957_v20 = vadd.f32 %v3899_v29, %v7203_v35 }
 0xa3f   : > { %v3955_v17 = vadd.f32 %v3891_v32, %v7192_v2 }
 0xa41   : > { %4003 = vxpose.xlu1.b32.cont [6/16] (narrow) %v3955_v17, 32 }
 0xa45   : > { %4004 = vxpose.xlu1.b32.cont [7/16] (narrow) %v3956_v3, 32 }
 0xa46   : > { %v4648_v15 = vpop.f32.mrf.mxu1 }
 0xa47   : > { %v3912_v55 = vadd.f32 %v4648_v15, %v7461_v22 }
 0xa48   : > { %v3903_v6 = vpop.f32.mrf.mxu1 }
 0xa49   : > { %v3904_v49 = vadd.f32 %v7461_v22, %v3903_v6  ;;  %4005 = vxpose.xlu1.b32.cont [8/16] (narrow) %v3957_v20, 32  ;;  %v3960_v11 = vadd.f32 %v3912_v55, %v7226_v12 }
 0xa4a   : > { %v4649_v39 = vpop.f32.mrf.mxu1 }
 0xa4b   : > { %v3958_v1 = vadd.f32 %v3904_v49, %v7214_v24  ;;  %v3915_v35 = vadd.f32 %v4649_v39, %v7461_v22 }
 0xa4c   : > { %v3906_v16 = vpop.f32.mrf.mxu1 }
 0xa4d   : > { %v3907_v23 = vadd.f32 %v7461_v22, %v3906_v16  ;;  %4006 = vxpose.xlu1.b32.cont [9/16] (narrow) %v3958_v1, 32  ;;  %v3961_v59 = vadd.f32 %v3915_v35, %v7229_v7 }
 0xa4f   : > { %v3959_v2 = vadd.f32 %v3907_v23, %v7218_v42 }
 0xa51   : > { %4007 = vxpose.xlu1.b32.cont [10/16] (narrow) %v3959_v2, 32 }
 0xa55   : > { %4008 = vxpose.xlu1.b32.cont [11/16] (narrow) %v3960_v11, 32 }
 0xa56   : > { %v4652_v50 = vpop.f32.mrf.mxu1 }
 0xa57   : > { %v3928_v54 = vadd.f32 %v4652_v50, %v7461_v22 }
 0xa58   : > { %v3919_v63 = vpop.f32.mrf.mxu1 }
 0xa59   : > { %v3920_v24 = vadd.f32 %v7461_v22, %v3919_v63  ;;  %4009 = vxpose.xlu1.b32.cont [12/16] (narrow) %v3961_v59, 32  ;;  %v3964_v56 = vadd.f32 %v3928_v54, %v7252_v44 }
 0xa5a   : > { %v4653_v33 = vpop.f32.mrf.mxu1 }
 0xa5b   : > { %v3962_v47 = vadd.f32 %v3920_v24, %v7241_v52  ;;  %v3931_v7 = vadd.f32 %v4653_v33, %v7461_v22 }
 0xa5c   : > { %v3922_v42 = vpop.f32.mrf.mxu1 }
 0xa5d   : > { %v3923_v57 = vadd.f32 %v7461_v22, %v3922_v42  ;;  %4010 = vxpose.xlu1.b32.cont [13/16] (narrow) %v3962_v47, 32  ;;  %v3965_v52 = vadd.f32 %v3931_v7, %v7255_v9 }
 0xa5f   : > { %v3963_v12 = vadd.f32 %v3923_v57, %v7244_v53 }
 0xa61   : > { %4011 = vxpose.xlu1.b32.cont [14/16] (narrow) %v3963_v12, 32 }
 0xa65   : > { %4012 = vxpose.xlu1.b32.cont [15/16] (narrow) %v3964_v56, 32 }
 0xa69   : > { %4013 = vxpose.xlu1.b32.end [16/16] (narrow) %v3965_v52, 32  ;;  %v3982_v4 = vpop.trf.xlu0 }
 0xa6a   : > { %v4041_v38 = vmul.f32 %v4034_v27, %v3982_v4 }
 0xa6c   : > { %4049 = vst [vmem:[%s498_s18] sm:$0xff] %v4041_v38 }
 0xa6d   : > { %v3983_v53 = vpop.trf.xlu0 }
 0xa6e   : > { %v4043_v14 = vmul.f32 %v4034_v27, %v3983_v53 }
 0xa70   : > { %4051 = vst [vmem:[%s498_s18 + $0x10] sm:$0xff] %v4043_v14 }
 0xa71   : > { %v3984_v40 = vpop.trf.xlu0 }
 0xa72   : > { %v4045_v44 = vmul.f32 %v4034_v27, %v3984_v40 }
 0xa74   : > { %4053 = vst [vmem:[%s498_s18 + $0x20] sm:$0xff] %v4045_v44 }
 0xa75   : > { %v3985_v22 = vpop.trf.xlu0 }
 0xa76   : > { %v4047_v28 = vmul.f32 %v4034_v27, %v3985_v22 }
 0xa78   : > { %4055 = vst [vmem:[%s498_s18 + $0x30] sm:$0xff] %v4047_v28 }
 0xaa9   : > { %v4014_v9 = vpop.trf.xlu1 }
 0xaaa   : > { %v4042_v26 = vmul.f32 %v4038_v0, %v4014_v9 }
 0xaac   : > { %4050 = vst [vmem:[%s498_s18 + $0x8] sm:$0xff] %v4042_v26 }
 0xaad   : > { %v4015_v19 = vpop.trf.xlu1 }
 0xaae   : > { %v4044_v61 = vmul.f32 %v4038_v0, %v4015_v19 }
 0xab0   : > { %4052 = vst [vmem:[%s498_s18 + $0x18] sm:$0xff] %v4044_v61 }
 0xab1   : > { %v4016_v34 = vpop.trf.xlu1 }
 0xab2   : > { %v4046_v10 = vmul.f32 %v4038_v0, %v4016_v34 }
 0xab4   : > { %4054 = vst [vmem:[%s498_s18 + $0x28] sm:$0xff] %v4046_v10 }
 0xab5   : > { %v4017_v48 = vpop.trf.xlu1 }
 0xab6   : > { %v4048_v31 = vmul.f32 %v4038_v0, %v4017_v48 }
 0xab8   : > { %4056 = vst [vmem:[%s498_s18 + $0x38] sm:$0xff] %v4048_v31 }
 0xab9   : > { %5159 = shalt.err (!%p5156_p0)
}
 0xaba   : > { %s5160_s27 = scalar_lea.hbm %s7540_s21, 1024  ;;  %s5164_s26 = scalar_lea.hbm %s7765_s23, 2048 }
 0xabb   : > { %p5161_p2 = scmp.ne.s32.totalorder %s7540_s21, %s5160_s27  ;;  %p5165_p3 = scmp.lt.s32.totalorder %s7540_s21, %s7765_s23 }
 0xabc   : > { %p5166_p6 = scmp.lt.s32.totalorder %s5164_s26, %s5160_s27 }
 0xabd   : > { %p5162_p9 = pnand %p5161_p2, %p7766_p13 }
 0xabe   : > { %p5167_p11 = por %p5166_p6, %p5165_p3 }
 0xabf   : > { %p5163_p1 = pneg %p5162_p9 }
 0xac1   : > { %p5168_p12 = pnand %p5167_p11, %p5163_p1 }
 0xac3   : > { %5171 = shalt.err (!%p5168_p12)
}
 0xac4   : > { %s5218_s29 = smov 256   ;;  %s5219_s15 = smov 16  }
 0xac5   : > { %4668 = dma.vmem_to_hbm [thread:$0]  (%p7766_p13), %s7535_s24, 1024, %s7540_s21, %s4058_s14, %s5218_s29, %s5218_s29, %s5219_s15  }
 0xac6 PF: > { %s7767_s19 = sld [smem:[#allocation8_spill]]  ;;  %p7770_p5 = scmp.ge.s32.totalorder %s5210_s16, 2 }
 0xac7   : > { %s7768_s18 = sld [smem:[#allocation13_spill]] }
 0xacc   : > { %s4086_s22 = sand.u32 1, %s7767_s19  }
 0xacd   : > { %p7769_p4 = scmp.ne.s32.totalorder %s7768_s18, 0  ;;  %s4087_s27 = scalar_lea.sflag [#allocation4], %s4086_s22 }
 0xacf   : > { %p4675_p7 = pnand %p7770_p5, %p7769_p4 }
 0xad1   : > { %p4676_p8 = pneg %p4675_p7 }
 0xad3   : > { %5193 = dma.done.wait (%p4676_p8), %s4087_s27, 1024  }
 0xad4   : > { %5195 = vsyncadd (%p4676_p8), %s4087_s27, 4294966272  ;;  %s7771_s16 = sld [smem:[#allocation10_spill]]  ;;  %s7774_s29 = smov %s5202_s30 }
 0xad5   : > { %s7772_s26 = sld [smem:[#allocation9_spill]] }
 0xad6   : > { %s7773_s15 = sld [smem:[#allocation11_spill]] }
 0xada   : > { %p27_p10 = scmp.ge.s32.totalorder %s7771_s16, 4  }
 0xadb   : > { %s7775_s30 = smov %s7772_s26 }
 0xadc   :  { %29 = sbr.rel (!%p27_p10) target bundleno = 7 (0x7), region = 124 }
 0xae1   :  { %4092 = vsyncpa [#allocation3], 1 }
 0xae2   :  { %4094 = vsyncpa [#allocation3 + $0x1], 1 }
 0xae3   :  { %4095 = vsyncpa [#allocation4], 1 }
 0xae4   :  { %4097 = vsyncpa [#allocation4 + $0x1], 1 }

</bundles_post_ra>
